<compile_context>
chip_gen: v5e
topology: v5e:2x2
jax: 0.10.0
libtpu: 0.0.40
codegen_flags: <defaults>
</compile_context>

<pallas_src>
import jax
import jax.numpy as jnp
from jax import lax
from jax.experimental import pallas as pl
from jax.experimental.pallas import tpu as pltpu


def _make_siren_kernel(layer_dims, num_rows, chunk_rows):
    """Builds the fused kernel.

    Args:
      layer_dims: [(c_in, c_out), ...] per 1x1-conv layer.
      num_rows: sublane rows (of 128 pixels each) per grid-step block.
      chunk_rows: rows per inner sub-chunk (divides num_rows); 8 rows = 1024 px
        keeps every per-channel slab exactly one vreg.
    Kernel refs: (w0, b0, w1, b1, ..., x_ref, out_ref); weights flattened to
    (c_out*c_in,) and biases to (c_out,) f32 in SMEM.
    """
    num_layers = len(layer_dims)
    c_in0 = layer_dims[0][0]
    n_chunks = num_rows // chunk_rows

    def kernel(*refs):
        x_ref = refs[2 * num_layers]        # (C_in, num_rows, 128)  VMEM
        out_ref = refs[2 * num_layers + 1]  # (C_out, num_rows, 128) VMEM

        def process(row0):
            xs = x_ref[:, pl.ds(row0, chunk_rows), :]        # (C_in, chunk, 128)
            h = [xs[c] for c in range(c_in0)]                # per-channel slabs
            for li, (cin, cout) in enumerate(layer_dims):
                w_ref = refs[2 * li]       # SMEM (cout*cin,)
                b_ref = refs[2 * li + 1]   # SMEM (cout,)
                nh = []
                for o in range(cout):
                    # VPU broadcast-FMA over the (tiny) channel dim.
                    acc = h[0] * w_ref[o * cin]
                    for c in range(1, cin):
                        acc = acc + h[c] * w_ref[o * cin + c]
                    acc = acc + b_ref[o]
                    if li < num_layers - 1:
                        # dropout == identity in eval mode, then SIREN sine.
                        acc = jnp.sin(acc)
                    nh.append(acc)
                h = nh
            for o in range(len(h)):
                out_ref[o, pl.ds(row0, chunk_rows), :] = h[o].astype(out_ref.dtype)

        if n_chunks == 1:
            process(0)
        else:
            # fori_loop (not a Python for) bounds live ranges across chunks.
            def body(ci, carry):
                process(pl.multiple_of(ci * chunk_rows, chunk_rows))
                return carry
            lax.fori_loop(0, n_chunks, body, 0)

    return kernel


def siren2d_forward(x_nchw, params, *, tile_px=32768):
    """Fused Siren2d forward.

    Args:
      x_nchw: (N, C_in, H, W) float32.
      params: [(w, b), ...] with w of shape (C_out_layer, C_in_layer) (the
        squeezed 1x1 conv weight) and b of shape (C_out_layer,).
      tile_px: target pixels per grid step (>=32K amortizes per-step overhead).
    Returns:
      (N, C_out, H, W) float32.
    """
    N, C_in, H, W = x_nchw.shape
    C_out = params[-1][0].shape[0]

    P = N * H * W
    P_pad = pl.cdiv(P, 128) * 128          # <=127 extra pixels for the whole batch
    S_p = P_pad // 128                      # sublane rows of the dense pixel slab

    # One relayout pass to the channels-major pixel-dense slab (C_in, S_p, 128).
    # NCHW with small W is already lane-padded (W -> 128) in HBM, so a relayout
    # copy was unavoidable; this one makes every byte the kernel moves useful.
    x_cp = jnp.transpose(x_nchw, (1, 0, 2, 3)).reshape(C_in, P).astype(jnp.float32)
    if P_pad != P:
        x_cp = jnp.pad(x_cp, ((0, 0), (0, P_pad - P)))
    x_cp = x_cp.reshape(C_in, S_p, 128)

    # Pixel-row tile per grid step: large, a multiple of 8 rows, capped so the
    # double-buffered in+out blocks stay well inside the scoped-VMEM limit on
    # v5e (16 MiB default) and v7x (64 MiB physical).
    bytes_per_row = (C_in + C_out) * 128 * 4
    cap_rows = max(8, (24 * 2**20 // (4 * bytes_per_row)) // 8 * 8)
    if S_p <= 8:
        S_t, chunk_rows = S_p, S_p
    else:
        S_t = max(8, (min(tile_px // 128, S_p, cap_rows) // 8) * 8)
        chunk_rows = 8
    grid = (pl.cdiv(S_p, S_t),)            # ragged tail handled by boundary clipping

    in_bytes = C_in * S_t * 128 * 4
    out_bytes = C_out * S_t * 128 * 4
    vmem_limit = int(min(32 * 2**20, max(16 * 2**20, 4 * (in_bytes + out_bytes) + 2 * 2**20)))

    # Weights/biases: tiny -> flattened f32 arrays resident in SMEM, read as
    # scalars and broadcast on the VPU (no MXU weight reloads per step).
    flat = []
    layer_dims = []
    for (w, b) in params:
        cout, cin = w.shape
        layer_dims.append((cin, cout))
        flat.append(w.reshape(-1).astype(jnp.float32))
        flat.append(b.reshape(-1).astype(jnp.float32))

    kernel = _make_siren_kernel(layer_dims, S_t, chunk_rows)

    out_cp = pl.pallas_call(
        kernel,
        out_shape=jax.ShapeDtypeStruct((C_out, S_p, 128), jnp.float32),
        grid_spec=pltpu.PrefetchScalarGridSpec(
            num_scalar_prefetch=0,
            grid=grid,
            in_specs=[pl.BlockSpec(memory_space=pltpu.MemorySpace.SMEM) for _ in flat]
                     + [pl.BlockSpec((C_in, S_t, 128), lambda t: (0, t, 0))],
            out_specs=pl.BlockSpec((C_out, S_t, 128), lambda t: (0, t, 0)),
        ),
        compiler_params=pltpu.CompilerParams(
            dimension_semantics=("parallel",),
            vmem_limit_bytes=vmem_limit,
        ),
    )(*flat, x_cp)

    out = out_cp.reshape(C_out, P_pad)[:, :P]
    return jnp.transpose(out.reshape(C_out, N, H, W), (1, 0, 2, 3))


def init_siren2d_params(key, n=1, in_channels=4, hidden_channels=16, output_channels=1):
    """Conv2d-default-style init; layer count = initial + (n-1) hidden + final."""
    dims = [in_channels] + [hidden_channels] * n + [output_channels]
    params = []
    for i in range(len(dims) - 1):
        cin, cout = dims[i], dims[i + 1]
        key, kw, kb = jax.random.split(key, 3)
        bound = 1.0 / (cin ** 0.5)          # 1x1 conv -> fan_in = cin
        w = jax.random.uniform(kw, (cout, cin), jnp.float32, -bound, bound)
        b = jax.random.uniform(kb, (cout,), jnp.float32, -bound, bound)
        params.append((w, b))
    return params


def siren2d_reference(x_nchw, params):
    """Plain-JAX reference of the same forward (eval-mode dropout)."""
    h = x_nchw.astype(jnp.float32)
    for li, (w, b) in enumerate(params):
        h = jnp.einsum("oc,nchw->nohw", w, h) + b.reshape(1, -1, 1, 1)
        if li < len(params) - 1:
            h = jnp.sin(h)
    return h


def _check(name, x, params, tile_px=32768):
    out = jax.block_until_ready(siren2d_forward(x, params, tile_px=tile_px))
    ref = siren2d_reference(x, params)
    assert out.shape == ref.shape, (name, out.shape, ref.shape)
    err = float(jnp.max(jnp.abs(out - ref)))
    assert jnp.allclose(out, ref, atol=5e-5, rtol=5e-5), (name, err)


if __name__ == "__main__":
    key = jax.random.PRNGKey(0)
    k_x1, k_p1, k_x2, k_p2, k_x3, k_p3 = jax.random.split(key, 6)

    # 1) Siren2d defaults (n=1 -> no hidden convs): N=2, C_in=4, 16x16.
    x1 = jax.random.normal(k_x1, (2, 4, 16, 16), jnp.float32)
    p1 = init_siren2d_params(k_p1, n=1)
    _check("default", x1, p1)

    # 2) n=2 (one hidden conv) with a spatial size needing the <=127-pixel pad.
    x2 = jax.random.normal(k_x2, (2, 4, 10, 10), jnp.float32)
    p2 = init_siren2d_params(k_p2, n=2)
    _check("hidden+pad", x2, p2)

    # 3) Larger image with a small tile so the multi-step grid and the inner
    #    8-row chunk loop are both exercised (S_p=64, S_t=16 -> grid=(4,)).
    x3 = jax.random.normal(k_x3, (2, 4, 64, 64), jnp.float32)
    p3 = init_siren2d_params(k_p3, n=2)
    _check("tiled", x3, p3, tile_px=2048)

    print("KERNEL_OK")
</pallas_src>

<mosaic_0001>
module attributes {stable_mosaic.version = 11 : i64} {
  func.func @kernel(%arg0: i32, %arg1: memref<64xf32, #tpu.memory_space<smem>>, %arg2: memref<16xf32, #tpu.memory_space<smem>>, %arg3: memref<16xf32, #tpu.memory_space<smem>>, %arg4: memref<1xf32, #tpu.memory_space<smem>>, %arg5: memref<4x4x128xf32, #tpu.memory_space<vmem>>, %arg6: memref<1x4x128xf32, #tpu.memory_space<vmem>>) attributes {dimension_semantics = [#tpu.dimension_semantics<parallel>], iteration_bounds = array<i64: 1>, scalar_prefetch = 0 : i64, scratch_operands = 0 : i64, tpu.core_type = #tpu.core_type<tc>, window_params = [{transform_indices = @transform_0, window_bounds = array<i64: 64>}, {transform_indices = @transform_1, window_bounds = array<i64: 16>}, {transform_indices = @transform_2, window_bounds = array<i64: 16>}, {transform_indices = @transform_3, window_bounds = array<i64: 1>}, {transform_indices = @transform_4, window_bounds = array<i64: 4, 4, 128>}, {transform_indices = @transform_5, window_bounds = array<i64: 1, 4, 128>}]} {
    %c0 = arith.constant 0 : index
    %c0_0 = arith.constant 0 : index
    %c0_1 = arith.constant 0 : index
    %0 = vector.load %arg5[%c0, %c0_0, %c0_1] : memref<4x4x128xf32, #tpu.memory_space<vmem>>, vector<4x4x128xf32>
    %1 = vector.extract_strided_slice %0 {offsets = [0, 0, 0], sizes = [1, 4, 128], strides = [1, 1, 1]} : vector<4x4x128xf32> to vector<1x4x128xf32>
    %2 = vector.shape_cast %1 : vector<1x4x128xf32> to vector<4x128xf32>
    %3 = vector.extract_strided_slice %0 {offsets = [1, 0, 0], sizes = [1, 4, 128], strides = [1, 1, 1]} : vector<4x4x128xf32> to vector<1x4x128xf32>
    %4 = vector.shape_cast %3 : vector<1x4x128xf32> to vector<4x128xf32>
    %5 = vector.extract_strided_slice %0 {offsets = [2, 0, 0], sizes = [1, 4, 128], strides = [1, 1, 1]} : vector<4x4x128xf32> to vector<1x4x128xf32>
    %6 = vector.shape_cast %5 : vector<1x4x128xf32> to vector<4x128xf32>
    %7 = vector.extract_strided_slice %0 {offsets = [3, 0, 0], sizes = [1, 4, 128], strides = [1, 1, 1]} : vector<4x4x128xf32> to vector<1x4x128xf32>
    %8 = vector.shape_cast %7 : vector<1x4x128xf32> to vector<4x128xf32>
    %c0_2 = arith.constant 0 : index
    %9 = memref.load %arg1[%c0_2] : memref<64xf32, #tpu.memory_space<smem>>
    %10 = vector.broadcast %9 : f32 to vector<4x128xf32>
    %11 = arith.mulf %2, %10 : vector<4x128xf32>
    %c1 = arith.constant 1 : index
    %12 = memref.load %arg1[%c1] : memref<64xf32, #tpu.memory_space<smem>>
    %13 = vector.broadcast %12 : f32 to vector<4x128xf32>
    %14 = arith.mulf %4, %13 : vector<4x128xf32>
    %15 = arith.addf %11, %14 : vector<4x128xf32>
    %c2 = arith.constant 2 : index
    %16 = memref.load %arg1[%c2] : memref<64xf32, #tpu.memory_space<smem>>
    %17 = vector.broadcast %16 : f32 to vector<4x128xf32>
    %18 = arith.mulf %6, %17 : vector<4x128xf32>
    %19 = arith.addf %15, %18 : vector<4x128xf32>
    %c3 = arith.constant 3 : index
    %20 = memref.load %arg1[%c3] : memref<64xf32, #tpu.memory_space<smem>>
    %21 = vector.broadcast %20 : f32 to vector<4x128xf32>
    %22 = arith.mulf %8, %21 : vector<4x128xf32>
    %23 = arith.addf %19, %22 : vector<4x128xf32>
    %c0_3 = arith.constant 0 : index
    %24 = memref.load %arg2[%c0_3] : memref<16xf32, #tpu.memory_space<smem>>
    %25 = vector.broadcast %24 : f32 to vector<4x128xf32>
    %26 = arith.addf %23, %25 : vector<4x128xf32>
    %27 = math.sin %26 : vector<4x128xf32>
    %c4 = arith.constant 4 : index
    %28 = memref.load %arg1[%c4] : memref<64xf32, #tpu.memory_space<smem>>
    %29 = vector.broadcast %28 : f32 to vector<4x128xf32>
    %30 = arith.mulf %2, %29 : vector<4x128xf32>
    %c5 = arith.constant 5 : index
    %31 = memref.load %arg1[%c5] : memref<64xf32, #tpu.memory_space<smem>>
    %32 = vector.broadcast %31 : f32 to vector<4x128xf32>
    %33 = arith.mulf %4, %32 : vector<4x128xf32>
    %34 = arith.addf %30, %33 : vector<4x128xf32>
    %c6 = arith.constant 6 : index
    %35 = memref.load %arg1[%c6] : memref<64xf32, #tpu.memory_space<smem>>
    %36 = vector.broadcast %35 : f32 to vector<4x128xf32>
    %37 = arith.mulf %6, %36 : vector<4x128xf32>
    %38 = arith.addf %34, %37 : vector<4x128xf32>
    %c7 = arith.constant 7 : index
    %39 = memref.load %arg1[%c7] : memref<64xf32, #tpu.memory_space<smem>>
    %40 = vector.broadcast %39 : f32 to vector<4x128xf32>
    %41 = arith.mulf %8, %40 : vector<4x128xf32>
    %42 = arith.addf %38, %41 : vector<4x128xf32>
    %c1_4 = arith.constant 1 : index
    %43 = memref.load %arg2[%c1_4] : memref<16xf32, #tpu.memory_space<smem>>
    %44 = vector.broadcast %43 : f32 to vector<4x128xf32>
    %45 = arith.addf %42, %44 : vector<4x128xf32>
    %46 = math.sin %45 : vector<4x128xf32>
    %c8 = arith.constant 8 : index
    %47 = memref.load %arg1[%c8] : memref<64xf32, #tpu.memory_space<smem>>
    %48 = vector.broadcast %47 : f32 to vector<4x128xf32>
    %49 = arith.mulf %2, %48 : vector<4x128xf32>
    %c9 = arith.constant 9 : index
    %50 = memref.load %arg1[%c9] : memref<64xf32, #tpu.memory_space<smem>>
    %51 = vector.broadcast %50 : f32 to vector<4x128xf32>
    %52 = arith.mulf %4, %51 : vector<4x128xf32>
    %53 = arith.addf %49, %52 : vector<4x128xf32>
    %c10 = arith.constant 10 : index
    %54 = memref.load %arg1[%c10] : memref<64xf32, #tpu.memory_space<smem>>
    %55 = vector.broadcast %54 : f32 to vector<4x128xf32>
    %56 = arith.mulf %6, %55 : vector<4x128xf32>
    %57 = arith.addf %53, %56 : vector<4x128xf32>
    %c11 = arith.constant 11 : index
    %58 = memref.load %arg1[%c11] : memref<64xf32, #tpu.memory_space<smem>>
    %59 = vector.broadcast %58 : f32 to vector<4x128xf32>
    %60 = arith.mulf %8, %59 : vector<4x128xf32>
    %61 = arith.addf %57, %60 : vector<4x128xf32>
    %c2_5 = arith.constant 2 : index
    %62 = memref.load %arg2[%c2_5] : memref<16xf32, #tpu.memory_space<smem>>
    %63 = vector.broadcast %62 : f32 to vector<4x128xf32>
    %64 = arith.addf %61, %63 : vector<4x128xf32>
    %65 = math.sin %64 : vector<4x128xf32>
    %c12 = arith.constant 12 : index
    %66 = memref.load %arg1[%c12] : memref<64xf32, #tpu.memory_space<smem>>
    %67 = vector.broadcast %66 : f32 to vector<4x128xf32>
    %68 = arith.mulf %2, %67 : vector<4x128xf32>
    %c13 = arith.constant 13 : index
    %69 = memref.load %arg1[%c13] : memref<64xf32, #tpu.memory_space<smem>>
    %70 = vector.broadcast %69 : f32 to vector<4x128xf32>
    %71 = arith.mulf %4, %70 : vector<4x128xf32>
    %72 = arith.addf %68, %71 : vector<4x128xf32>
    %c14 = arith.constant 14 : index
    %73 = memref.load %arg1[%c14] : memref<64xf32, #tpu.memory_space<smem>>
    %74 = vector.broadcast %73 : f32 to vector<4x128xf32>
    %75 = arith.mulf %6, %74 : vector<4x128xf32>
    %76 = arith.addf %72, %75 : vector<4x128xf32>
    %c15 = arith.constant 15 : index
    %77 = memref.load %arg1[%c15] : memref<64xf32, #tpu.memory_space<smem>>
    %78 = vector.broadcast %77 : f32 to vector<4x128xf32>
    %79 = arith.mulf %8, %78 : vector<4x128xf32>
    %80 = arith.addf %76, %79 : vector<4x128xf32>
    %c3_6 = arith.constant 3 : index
    %81 = memref.load %arg2[%c3_6] : memref<16xf32, #tpu.memory_space<smem>>
    %82 = vector.broadcast %81 : f32 to vector<4x128xf32>
    %83 = arith.addf %80, %82 : vector<4x128xf32>
    %84 = math.sin %83 : vector<4x128xf32>
    %c16 = arith.constant 16 : index
    %85 = memref.load %arg1[%c16] : memref<64xf32, #tpu.memory_space<smem>>
    %86 = vector.broadcast %85 : f32 to vector<4x128xf32>
    %87 = arith.mulf %2, %86 : vector<4x128xf32>
    %c17 = arith.constant 17 : index
    %88 = memref.load %arg1[%c17] : memref<64xf32, #tpu.memory_space<smem>>
    %89 = vector.broadcast %88 : f32 to vector<4x128xf32>
    %90 = arith.mulf %4, %89 : vector<4x128xf32>
    %91 = arith.addf %87, %90 : vector<4x128xf32>
    %c18 = arith.constant 18 : index
    %92 = memref.load %arg1[%c18] : memref<64xf32, #tpu.memory_space<smem>>
    %93 = vector.broadcast %92 : f32 to vector<4x128xf32>
    %94 = arith.mulf %6, %93 : vector<4x128xf32>
    %95 = arith.addf %91, %94 : vector<4x128xf32>
    %c19 = arith.constant 19 : index
    %96 = memref.load %arg1[%c19] : memref<64xf32, #tpu.memory_space<smem>>
    %97 = vector.broadcast %96 : f32 to vector<4x128xf32>
    %98 = arith.mulf %8, %97 : vector<4x128xf32>
    %99 = arith.addf %95, %98 : vector<4x128xf32>
    %c4_7 = arith.constant 4 : index
    %100 = memref.load %arg2[%c4_7] : memref<16xf32, #tpu.memory_space<smem>>
    %101 = vector.broadcast %100 : f32 to vector<4x128xf32>
    %102 = arith.addf %99, %101 : vector<4x128xf32>
    %103 = math.sin %102 : vector<4x128xf32>
    %c20 = arith.constant 20 : index
    %104 = memref.load %arg1[%c20] : memref<64xf32, #tpu.memory_space<smem>>
    %105 = vector.broadcast %104 : f32 to vector<4x128xf32>
    %106 = arith.mulf %2, %105 : vector<4x128xf32>
    %c21 = arith.constant 21 : index
    %107 = memref.load %arg1[%c21] : memref<64xf32, #tpu.memory_space<smem>>
    %108 = vector.broadcast %107 : f32 to vector<4x128xf32>
    %109 = arith.mulf %4, %108 : vector<4x128xf32>
    %110 = arith.addf %106, %109 : vector<4x128xf32>
    %c22 = arith.constant 22 : index
    %111 = memref.load %arg1[%c22] : memref<64xf32, #tpu.memory_space<smem>>
    %112 = vector.broadcast %111 : f32 to vector<4x128xf32>
    %113 = arith.mulf %6, %112 : vector<4x128xf32>
    %114 = arith.addf %110, %113 : vector<4x128xf32>
    %c23 = arith.constant 23 : index
    %115 = memref.load %arg1[%c23] : memref<64xf32, #tpu.memory_space<smem>>
    %116 = vector.broadcast %115 : f32 to vector<4x128xf32>
    %117 = arith.mulf %8, %116 : vector<4x128xf32>
    %118 = arith.addf %114, %117 : vector<4x128xf32>
    %c5_8 = arith.constant 5 : index
    %119 = memref.load %arg2[%c5_8] : memref<16xf32, #tpu.memory_space<smem>>
    %120 = vector.broadcast %119 : f32 to vector<4x128xf32>
    %121 = arith.addf %118, %120 : vector<4x128xf32>
    %122 = math.sin %121 : vector<4x128xf32>
    %c24 = arith.constant 24 : index
    %123 = memref.load %arg1[%c24] : memref<64xf32, #tpu.memory_space<smem>>
    %124 = vector.broadcast %123 : f32 to vector<4x128xf32>
    %125 = arith.mulf %2, %124 : vector<4x128xf32>
    %c25 = arith.constant 25 : index
    %126 = memref.load %arg1[%c25] : memref<64xf32, #tpu.memory_space<smem>>
    %127 = vector.broadcast %126 : f32 to vector<4x128xf32>
    %128 = arith.mulf %4, %127 : vector<4x128xf32>
    %129 = arith.addf %125, %128 : vector<4x128xf32>
    %c26 = arith.constant 26 : index
    %130 = memref.load %arg1[%c26] : memref<64xf32, #tpu.memory_space<smem>>
    %131 = vector.broadcast %130 : f32 to vector<4x128xf32>
    %132 = arith.mulf %6, %131 : vector<4x128xf32>
    %133 = arith.addf %129, %132 : vector<4x128xf32>
    %c27 = arith.constant 27 : index
    %134 = memref.load %arg1[%c27] : memref<64xf32, #tpu.memory_space<smem>>
    %135 = vector.broadcast %134 : f32 to vector<4x128xf32>
    %136 = arith.mulf %8, %135 : vector<4x128xf32>
    %137 = arith.addf %133, %136 : vector<4x128xf32>
    %c6_9 = arith.constant 6 : index
    %138 = memref.load %arg2[%c6_9] : memref<16xf32, #tpu.memory_space<smem>>
    %139 = vector.broadcast %138 : f32 to vector<4x128xf32>
    %140 = arith.addf %137, %139 : vector<4x128xf32>
    %141 = math.sin %140 : vector<4x128xf32>
    %c28 = arith.constant 28 : index
    %142 = memref.load %arg1[%c28] : memref<64xf32, #tpu.memory_space<smem>>
    %143 = vector.broadcast %142 : f32 to vector<4x128xf32>
    %144 = arith.mulf %2, %143 : vector<4x128xf32>
    %c29 = arith.constant 29 : index
    %145 = memref.load %arg1[%c29] : memref<64xf32, #tpu.memory_space<smem>>
    %146 = vector.broadcast %145 : f32 to vector<4x128xf32>
    %147 = arith.mulf %4, %146 : vector<4x128xf32>
    %148 = arith.addf %144, %147 : vector<4x128xf32>
    %c30 = arith.constant 30 : index
    %149 = memref.load %arg1[%c30] : memref<64xf32, #tpu.memory_space<smem>>
    %150 = vector.broadcast %149 : f32 to vector<4x128xf32>
    %151 = arith.mulf %6, %150 : vector<4x128xf32>
    %152 = arith.addf %148, %151 : vector<4x128xf32>
    %c31 = arith.constant 31 : index
    %153 = memref.load %arg1[%c31] : memref<64xf32, #tpu.memory_space<smem>>
    %154 = vector.broadcast %153 : f32 to vector<4x128xf32>
    %155 = arith.mulf %8, %154 : vector<4x128xf32>
    %156 = arith.addf %152, %155 : vector<4x128xf32>
    %c7_10 = arith.constant 7 : index
    %157 = memref.load %arg2[%c7_10] : memref<16xf32, #tpu.memory_space<smem>>
    %158 = vector.broadcast %157 : f32 to vector<4x128xf32>
    %159 = arith.addf %156, %158 : vector<4x128xf32>
    %160 = math.sin %159 : vector<4x128xf32>
    %c32 = arith.constant 32 : index
    %161 = memref.load %arg1[%c32] : memref<64xf32, #tpu.memory_space<smem>>
    %162 = vector.broadcast %161 : f32 to vector<4x128xf32>
    %163 = arith.mulf %2, %162 : vector<4x128xf32>
    %c33 = arith.constant 33 : index
    %164 = memref.load %arg1[%c33] : memref<64xf32, #tpu.memory_space<smem>>
    %165 = vector.broadcast %164 : f32 to vector<4x128xf32>
    %166 = arith.mulf %4, %165 : vector<4x128xf32>
    %167 = arith.addf %163, %166 : vector<4x128xf32>
    %c34 = arith.constant 34 : index
    %168 = memref.load %arg1[%c34] : memref<64xf32, #tpu.memory_space<smem>>
    %169 = vector.broadcast %168 : f32 to vector<4x128xf32>
    %170 = arith.mulf %6, %169 : vector<4x128xf32>
    %171 = arith.addf %167, %170 : vector<4x128xf32>
    %c35 = arith.constant 35 : index
    %172 = memref.load %arg1[%c35] : memref<64xf32, #tpu.memory_space<smem>>
    %173 = vector.broadcast %172 : f32 to vector<4x128xf32>
    %174 = arith.mulf %8, %173 : vector<4x128xf32>
    %175 = arith.addf %171, %174 : vector<4x128xf32>
    %c8_11 = arith.constant 8 : index
    %176 = memref.load %arg2[%c8_11] : memref<16xf32, #tpu.memory_space<smem>>
    %177 = vector.broadcast %176 : f32 to vector<4x128xf32>
    %178 = arith.addf %175, %177 : vector<4x128xf32>
    %179 = math.sin %178 : vector<4x128xf32>
    %c36 = arith.constant 36 : index
    %180 = memref.load %arg1[%c36] : memref<64xf32, #tpu.memory_space<smem>>
    %181 = vector.broadcast %180 : f32 to vector<4x128xf32>
    %182 = arith.mulf %2, %181 : vector<4x128xf32>
    %c37 = arith.constant 37 : index
    %183 = memref.load %arg1[%c37] : memref<64xf32, #tpu.memory_space<smem>>
    %184 = vector.broadcast %183 : f32 to vector<4x128xf32>
    %185 = arith.mulf %4, %184 : vector<4x128xf32>
    %186 = arith.addf %182, %185 : vector<4x128xf32>
    %c38 = arith.constant 38 : index
    %187 = memref.load %arg1[%c38] : memref<64xf32, #tpu.memory_space<smem>>
    %188 = vector.broadcast %187 : f32 to vector<4x128xf32>
    %189 = arith.mulf %6, %188 : vector<4x128xf32>
    %190 = arith.addf %186, %189 : vector<4x128xf32>
    %c39 = arith.constant 39 : index
    %191 = memref.load %arg1[%c39] : memref<64xf32, #tpu.memory_space<smem>>
    %192 = vector.broadcast %191 : f32 to vector<4x128xf32>
    %193 = arith.mulf %8, %192 : vector<4x128xf32>
    %194 = arith.addf %190, %193 : vector<4x128xf32>
    %c9_12 = arith.constant 9 : index
    %195 = memref.load %arg2[%c9_12] : memref<16xf32, #tpu.memory_space<smem>>
    %196 = vector.broadcast %195 : f32 to vector<4x128xf32>
    %197 = arith.addf %194, %196 : vector<4x128xf32>
    %198 = math.sin %197 : vector<4x128xf32>
    %c40 = arith.constant 40 : index
    %199 = memref.load %arg1[%c40] : memref<64xf32, #tpu.memory_space<smem>>
    %200 = vector.broadcast %199 : f32 to vector<4x128xf32>
    %201 = arith.mulf %2, %200 : vector<4x128xf32>
    %c41 = arith.constant 41 : index
    %202 = memref.load %arg1[%c41] : memref<64xf32, #tpu.memory_space<smem>>
    %203 = vector.broadcast %202 : f32 to vector<4x128xf32>
    %204 = arith.mulf %4, %203 : vector<4x128xf32>
    %205 = arith.addf %201, %204 : vector<4x128xf32>
    %c42 = arith.constant 42 : index
    %206 = memref.load %arg1[%c42] : memref<64xf32, #tpu.memory_space<smem>>
    %207 = vector.broadcast %206 : f32 to vector<4x128xf32>
    %208 = arith.mulf %6, %207 : vector<4x128xf32>
    %209 = arith.addf %205, %208 : vector<4x128xf32>
    %c43 = arith.constant 43 : index
    %210 = memref.load %arg1[%c43] : memref<64xf32, #tpu.memory_space<smem>>
    %211 = vector.broadcast %210 : f32 to vector<4x128xf32>
    %212 = arith.mulf %8, %211 : vector<4x128xf32>
    %213 = arith.addf %209, %212 : vector<4x128xf32>
    %c10_13 = arith.constant 10 : index
    %214 = memref.load %arg2[%c10_13] : memref<16xf32, #tpu.memory_space<smem>>
    %215 = vector.broadcast %214 : f32 to vector<4x128xf32>
    %216 = arith.addf %213, %215 : vector<4x128xf32>
    %217 = math.sin %216 : vector<4x128xf32>
    %c44 = arith.constant 44 : index
    %218 = memref.load %arg1[%c44] : memref<64xf32, #tpu.memory_space<smem>>
    %219 = vector.broadcast %218 : f32 to vector<4x128xf32>
    %220 = arith.mulf %2, %219 : vector<4x128xf32>
    %c45 = arith.constant 45 : index
    %221 = memref.load %arg1[%c45] : memref<64xf32, #tpu.memory_space<smem>>
    %222 = vector.broadcast %221 : f32 to vector<4x128xf32>
    %223 = arith.mulf %4, %222 : vector<4x128xf32>
    %224 = arith.addf %220, %223 : vector<4x128xf32>
    %c46 = arith.constant 46 : index
    %225 = memref.load %arg1[%c46] : memref<64xf32, #tpu.memory_space<smem>>
    %226 = vector.broadcast %225 : f32 to vector<4x128xf32>
    %227 = arith.mulf %6, %226 : vector<4x128xf32>
    %228 = arith.addf %224, %227 : vector<4x128xf32>
    %c47 = arith.constant 47 : index
    %229 = memref.load %arg1[%c47] : memref<64xf32, #tpu.memory_space<smem>>
    %230 = vector.broadcast %229 : f32 to vector<4x128xf32>
    %231 = arith.mulf %8, %230 : vector<4x128xf32>
    %232 = arith.addf %228, %231 : vector<4x128xf32>
    %c11_14 = arith.constant 11 : index
    %233 = memref.load %arg2[%c11_14] : memref<16xf32, #tpu.memory_space<smem>>
    %234 = vector.broadcast %233 : f32 to vector<4x128xf32>
    %235 = arith.addf %232, %234 : vector<4x128xf32>
    %236 = math.sin %235 : vector<4x128xf32>
    %c48 = arith.constant 48 : index
    %237 = memref.load %arg1[%c48] : memref<64xf32, #tpu.memory_space<smem>>
    %238 = vector.broadcast %237 : f32 to vector<4x128xf32>
    %239 = arith.mulf %2, %238 : vector<4x128xf32>
    %c49 = arith.constant 49 : index
    %240 = memref.load %arg1[%c49] : memref<64xf32, #tpu.memory_space<smem>>
    %241 = vector.broadcast %240 : f32 to vector<4x128xf32>
    %242 = arith.mulf %4, %241 : vector<4x128xf32>
    %243 = arith.addf %239, %242 : vector<4x128xf32>
    %c50 = arith.constant 50 : index
    %244 = memref.load %arg1[%c50] : memref<64xf32, #tpu.memory_space<smem>>
    %245 = vector.broadcast %244 : f32 to vector<4x128xf32>
    %246 = arith.mulf %6, %245 : vector<4x128xf32>
    %247 = arith.addf %243, %246 : vector<4x128xf32>
    %c51 = arith.constant 51 : index
    %248 = memref.load %arg1[%c51] : memref<64xf32, #tpu.memory_space<smem>>
    %249 = vector.broadcast %248 : f32 to vector<4x128xf32>
    %250 = arith.mulf %8, %249 : vector<4x128xf32>
    %251 = arith.addf %247, %250 : vector<4x128xf32>
    %c12_15 = arith.constant 12 : index
    %252 = memref.load %arg2[%c12_15] : memref<16xf32, #tpu.memory_space<smem>>
    %253 = vector.broadcast %252 : f32 to vector<4x128xf32>
    %254 = arith.addf %251, %253 : vector<4x128xf32>
    %255 = math.sin %254 : vector<4x128xf32>
    %c52 = arith.constant 52 : index
    %256 = memref.load %arg1[%c52] : memref<64xf32, #tpu.memory_space<smem>>
    %257 = vector.broadcast %256 : f32 to vector<4x128xf32>
    %258 = arith.mulf %2, %257 : vector<4x128xf32>
    %c53 = arith.constant 53 : index
    %259 = memref.load %arg1[%c53] : memref<64xf32, #tpu.memory_space<smem>>
    %260 = vector.broadcast %259 : f32 to vector<4x128xf32>
    %261 = arith.mulf %4, %260 : vector<4x128xf32>
    %262 = arith.addf %258, %261 : vector<4x128xf32>
    %c54 = arith.constant 54 : index
    %263 = memref.load %arg1[%c54] : memref<64xf32, #tpu.memory_space<smem>>
    %264 = vector.broadcast %263 : f32 to vector<4x128xf32>
    %265 = arith.mulf %6, %264 : vector<4x128xf32>
    %266 = arith.addf %262, %265 : vector<4x128xf32>
    %c55 = arith.constant 55 : index
    %267 = memref.load %arg1[%c55] : memref<64xf32, #tpu.memory_space<smem>>
    %268 = vector.broadcast %267 : f32 to vector<4x128xf32>
    %269 = arith.mulf %8, %268 : vector<4x128xf32>
    %270 = arith.addf %266, %269 : vector<4x128xf32>
    %c13_16 = arith.constant 13 : index
    %271 = memref.load %arg2[%c13_16] : memref<16xf32, #tpu.memory_space<smem>>
    %272 = vector.broadcast %271 : f32 to vector<4x128xf32>
    %273 = arith.addf %270, %272 : vector<4x128xf32>
    %274 = math.sin %273 : vector<4x128xf32>
    %c56 = arith.constant 56 : index
    %275 = memref.load %arg1[%c56] : memref<64xf32, #tpu.memory_space<smem>>
    %276 = vector.broadcast %275 : f32 to vector<4x128xf32>
    %277 = arith.mulf %2, %276 : vector<4x128xf32>
    %c57 = arith.constant 57 : index
    %278 = memref.load %arg1[%c57] : memref<64xf32, #tpu.memory_space<smem>>
    %279 = vector.broadcast %278 : f32 to vector<4x128xf32>
    %280 = arith.mulf %4, %279 : vector<4x128xf32>
    %281 = arith.addf %277, %280 : vector<4x128xf32>
    %c58 = arith.constant 58 : index
    %282 = memref.load %arg1[%c58] : memref<64xf32, #tpu.memory_space<smem>>
    %283 = vector.broadcast %282 : f32 to vector<4x128xf32>
    %284 = arith.mulf %6, %283 : vector<4x128xf32>
    %285 = arith.addf %281, %284 : vector<4x128xf32>
    %c59 = arith.constant 59 : index
    %286 = memref.load %arg1[%c59] : memref<64xf32, #tpu.memory_space<smem>>
    %287 = vector.broadcast %286 : f32 to vector<4x128xf32>
    %288 = arith.mulf %8, %287 : vector<4x128xf32>
    %289 = arith.addf %285, %288 : vector<4x128xf32>
    %c14_17 = arith.constant 14 : index
    %290 = memref.load %arg2[%c14_17] : memref<16xf32, #tpu.memory_space<smem>>
    %291 = vector.broadcast %290 : f32 to vector<4x128xf32>
    %292 = arith.addf %289, %291 : vector<4x128xf32>
    %293 = math.sin %292 : vector<4x128xf32>
    %c60 = arith.constant 60 : index
    %294 = memref.load %arg1[%c60] : memref<64xf32, #tpu.memory_space<smem>>
    %295 = vector.broadcast %294 : f32 to vector<4x128xf32>
    %296 = arith.mulf %2, %295 : vector<4x128xf32>
    %c61 = arith.constant 61 : index
    %297 = memref.load %arg1[%c61] : memref<64xf32, #tpu.memory_space<smem>>
    %298 = vector.broadcast %297 : f32 to vector<4x128xf32>
    %299 = arith.mulf %4, %298 : vector<4x128xf32>
    %300 = arith.addf %296, %299 : vector<4x128xf32>
    %c62 = arith.constant 62 : index
    %301 = memref.load %arg1[%c62] : memref<64xf32, #tpu.memory_space<smem>>
    %302 = vector.broadcast %301 : f32 to vector<4x128xf32>
    %303 = arith.mulf %6, %302 : vector<4x128xf32>
    %304 = arith.addf %300, %303 : vector<4x128xf32>
    %c63 = arith.constant 63 : index
    %305 = memref.load %arg1[%c63] : memref<64xf32, #tpu.memory_space<smem>>
    %306 = vector.broadcast %305 : f32 to vector<4x128xf32>
    %307 = arith.mulf %8, %306 : vector<4x128xf32>
    %308 = arith.addf %304, %307 : vector<4x128xf32>
    %c15_18 = arith.constant 15 : index
    %309 = memref.load %arg2[%c15_18] : memref<16xf32, #tpu.memory_space<smem>>
    %310 = vector.broadcast %309 : f32 to vector<4x128xf32>
    %311 = arith.addf %308, %310 : vector<4x128xf32>
    %312 = math.sin %311 : vector<4x128xf32>
    %c0_19 = arith.constant 0 : index
    %313 = memref.load %arg3[%c0_19] : memref<16xf32, #tpu.memory_space<smem>>
    %314 = vector.broadcast %313 : f32 to vector<4x128xf32>
    %315 = arith.mulf %27, %314 : vector<4x128xf32>
    %c1_20 = arith.constant 1 : index
    %316 = memref.load %arg3[%c1_20] : memref<16xf32, #tpu.memory_space<smem>>
    %317 = vector.broadcast %316 : f32 to vector<4x128xf32>
    %318 = arith.mulf %46, %317 : vector<4x128xf32>
    %319 = arith.addf %315, %318 : vector<4x128xf32>
    %c2_21 = arith.constant 2 : index
    %320 = memref.load %arg3[%c2_21] : memref<16xf32, #tpu.memory_space<smem>>
    %321 = vector.broadcast %320 : f32 to vector<4x128xf32>
    %322 = arith.mulf %65, %321 : vector<4x128xf32>
    %323 = arith.addf %319, %322 : vector<4x128xf32>
    %c3_22 = arith.constant 3 : index
    %324 = memref.load %arg3[%c3_22] : memref<16xf32, #tpu.memory_space<smem>>
    %325 = vector.broadcast %324 : f32 to vector<4x128xf32>
    %326 = arith.mulf %84, %325 : vector<4x128xf32>
    %327 = arith.addf %323, %326 : vector<4x128xf32>
    %c4_23 = arith.constant 4 : index
    %328 = memref.load %arg3[%c4_23] : memref<16xf32, #tpu.memory_space<smem>>
    %329 = vector.broadcast %328 : f32 to vector<4x128xf32>
    %330 = arith.mulf %103, %329 : vector<4x128xf32>
    %331 = arith.addf %327, %330 : vector<4x128xf32>
    %c5_24 = arith.constant 5 : index
    %332 = memref.load %arg3[%c5_24] : memref<16xf32, #tpu.memory_space<smem>>
    %333 = vector.broadcast %332 : f32 to vector<4x128xf32>
    %334 = arith.mulf %122, %333 : vector<4x128xf32>
    %335 = arith.addf %331, %334 : vector<4x128xf32>
    %c6_25 = arith.constant 6 : index
    %336 = memref.load %arg3[%c6_25] : memref<16xf32, #tpu.memory_space<smem>>
    %337 = vector.broadcast %336 : f32 to vector<4x128xf32>
    %338 = arith.mulf %141, %337 : vector<4x128xf32>
    %339 = arith.addf %335, %338 : vector<4x128xf32>
    %c7_26 = arith.constant 7 : index
    %340 = memref.load %arg3[%c7_26] : memref<16xf32, #tpu.memory_space<smem>>
    %341 = vector.broadcast %340 : f32 to vector<4x128xf32>
    %342 = arith.mulf %160, %341 : vector<4x128xf32>
    %343 = arith.addf %339, %342 : vector<4x128xf32>
    %c8_27 = arith.constant 8 : index
    %344 = memref.load %arg3[%c8_27] : memref<16xf32, #tpu.memory_space<smem>>
    %345 = vector.broadcast %344 : f32 to vector<4x128xf32>
    %346 = arith.mulf %179, %345 : vector<4x128xf32>
    %347 = arith.addf %343, %346 : vector<4x128xf32>
    %c9_28 = arith.constant 9 : index
    %348 = memref.load %arg3[%c9_28] : memref<16xf32, #tpu.memory_space<smem>>
    %349 = vector.broadcast %348 : f32 to vector<4x128xf32>
    %350 = arith.mulf %198, %349 : vector<4x128xf32>
    %351 = arith.addf %347, %350 : vector<4x128xf32>
    %c10_29 = arith.constant 10 : index
    %352 = memref.load %arg3[%c10_29] : memref<16xf32, #tpu.memory_space<smem>>
    %353 = vector.broadcast %352 : f32 to vector<4x128xf32>
    %354 = arith.mulf %217, %353 : vector<4x128xf32>
    %355 = arith.addf %351, %354 : vector<4x128xf32>
    %c11_30 = arith.constant 11 : index
    %356 = memref.load %arg3[%c11_30] : memref<16xf32, #tpu.memory_space<smem>>
    %357 = vector.broadcast %356 : f32 to vector<4x128xf32>
    %358 = arith.mulf %236, %357 : vector<4x128xf32>
    %359 = arith.addf %355, %358 : vector<4x128xf32>
    %c12_31 = arith.constant 12 : index
    %360 = memref.load %arg3[%c12_31] : memref<16xf32, #tpu.memory_space<smem>>
    %361 = vector.broadcast %360 : f32 to vector<4x128xf32>
    %362 = arith.mulf %255, %361 : vector<4x128xf32>
    %363 = arith.addf %359, %362 : vector<4x128xf32>
    %c13_32 = arith.constant 13 : index
    %364 = memref.load %arg3[%c13_32] : memref<16xf32, #tpu.memory_space<smem>>
    %365 = vector.broadcast %364 : f32 to vector<4x128xf32>
    %366 = arith.mulf %274, %365 : vector<4x128xf32>
    %367 = arith.addf %363, %366 : vector<4x128xf32>
    %c14_33 = arith.constant 14 : index
    %368 = memref.load %arg3[%c14_33] : memref<16xf32, #tpu.memory_space<smem>>
    %369 = vector.broadcast %368 : f32 to vector<4x128xf32>
    %370 = arith.mulf %293, %369 : vector<4x128xf32>
    %371 = arith.addf %367, %370 : vector<4x128xf32>
    %c15_34 = arith.constant 15 : index
    %372 = memref.load %arg3[%c15_34] : memref<16xf32, #tpu.memory_space<smem>>
    %373 = vector.broadcast %372 : f32 to vector<4x128xf32>
    %374 = arith.mulf %312, %373 : vector<4x128xf32>
    %375 = arith.addf %371, %374 : vector<4x128xf32>
    %c0_35 = arith.constant 0 : index
    %376 = memref.load %arg4[%c0_35] : memref<1xf32, #tpu.memory_space<smem>>
    %377 = vector.broadcast %376 : f32 to vector<4x128xf32>
    %378 = arith.addf %375, %377 : vector<4x128xf32>
    %c0_36 = arith.constant 0 : index
    %c0_37 = arith.constant 0 : index
    %c0_38 = arith.constant 0 : index
    %379 = vector.load %arg6[%c0_36, %c0_37, %c0_38] : memref<1x4x128xf32, #tpu.memory_space<vmem>>, vector<1x4x128xf32>
    %380 = vector.shape_cast %379 : vector<1x4x128xf32> to vector<4x128xf32>
    %381 = vector.shape_cast %378 : vector<4x128xf32> to vector<1x4x128xf32>
    tpu.vector_store %arg6[%c0_36, %c0_37, %c0_38], %381 {strides = array<i32>} : memref<1x4x128xf32, #tpu.memory_space<vmem>>, vector<1x4x128xf32>,
    return
  }
  func.func @transform_0(%arg0: i32) -> i32 {
    %c0_i32 = arith.constant 0 : i32
    %c0_i32_0 = arith.constant 0 : i32
    return %c0_i32 : i32
  }
  func.func @transform_1(%arg0: i32) -> i32 {
    %c0_i32 = arith.constant 0 : i32
    %c0_i32_0 = arith.constant 0 : i32
    return %c0_i32 : i32
  }
  func.func @transform_2(%arg0: i32) -> i32 {
    %c0_i32 = arith.constant 0 : i32
    %c0_i32_0 = arith.constant 0 : i32
    return %c0_i32 : i32
  }
  func.func @transform_3(%arg0: i32) -> i32 {
    %c0_i32 = arith.constant 0 : i32
    %c0_i32_0 = arith.constant 0 : i32
    return %c0_i32 : i32
  }
  func.func @transform_4(%arg0: i32) -> (i32, i32, i32) {
    %c0_i32 = arith.constant 0 : i32
    %c0_i32_0 = arith.constant 0 : i32
    %c0_i32_1 = arith.constant 0 : i32
    return %c0_i32, %arg0, %c0_i32_0 : i32, i32, i32
  }
  func.func @transform_5(%arg0: i32) -> (i32, i32, i32) {
    %c0_i32 = arith.constant 0 : i32
    %c0_i32_0 = arith.constant 0 : i32
    %c0_i32_1 = arith.constant 0 : i32
    return %c0_i32, %arg0, %c0_i32_0 : i32, i32, i32
  }
}

</mosaic_0001>

<bundles_post_ra>
// kernel: tpu_custom_call.1
= control target key start
LH: loop header
LB: loop body
LE: loop exit
PB: predicated region body
PF: predicated region fallthrough
CT: control target
= control target key end

     0   :  { %11 = vsyncpa [#allocation6], 0  ;;  %s6594_s0 = inlined_call_operand.vmem [shape: f32[64], index: 0, kind: input, shape index: {}]   ;;  %s6595_s1 = inlined_call_operand.vmem [shape: f32[16], index: 1, kind: input, shape index: {}]   ;;  %s6596_s2 = inlined_call_operand.vmem [shape: f32[16], index: 2, kind: input, shape index: {}]   ;;  %s6597_s3 = inlined_call_operand.<no memory space> [shape: f32[1], index: 3, kind: input, shape index: {}]   ;;  %s6598_s4 = inlined_call_operand.hbm [shape: f32[4,4,128], index: 4, kind: input, shape index: {}]   ;;  %s6599_s5 = inlined_call_operand.hbm [shape: f32[1,4,128], index: 5, kind: output, shape index: {}]  }
   0x1   :  { %12 = vsyncpa [#allocation8], 0 }
   0x2   :  { %13 = vsyncpa [#allocation4], 0  ;;  %s29_s20 = sshll.u32 %s6595_s1, 4  ;;  %s30_s20 = int_to_ptr.vmem [resolvable:$true] %s29_s20 }
   0x3   :  { %14 = vsyncpa [#allocation5], 0  ;;  %s20_s23 = sshll.u32 %s6594_s0, 4  ;;  %s3191_s24 = smov [#allocation7]   ;;  %s21_s23 = int_to_ptr.vmem [resolvable:$true] %s20_s23 }
   0x4   :  { %32 = dma.vmem_to_smem %s30_s20, 16, %s3191_s24, [#allocation8]  }
   0x5   :  { %s3192_s25 = smov [#allocation3]   ;;  %s38_s28 = sshll.u32 %s6596_s2, 4  ;;  %s39_s28 = int_to_ptr.vmem [resolvable:$true] %s38_s28 }
   0x6   :  { %23 = dma.vmem_to_smem %s21_s23, 16, %s3192_s25, [#allocation6]  }
   0x7   :  { %s48_s1 = sshll.u32 %s6598_s4, 4  ;;  %s3193_s6 = smov [#allocation9]   ;;  %s49_s1 = int_to_ptr.hbm [resolvable:$true] %s48_s1 }
   0x8   :  { %41 = dma.vmem_to_smem %s39_s28, 16, %s3193_s6, [#allocation8]  }
   0x9   :  { %s3194_s7 = smov [#allocation10]   ;;  %s3195_s0 = smov 64  }
   0xa   :  { %s50_s8 = sshll.u32 %s3194_s7, 4  ;;  %s3196_s9 = smov 4   ;;  %s51_s8 = int_to_ptr.vmem [resolvable:$true] %s50_s8 }
   0xb   :  { %56 = dma.hbm_to_vmem [thread:$0]  %s49_s1, 256, %s51_s8, [#allocation4], %s3195_s0, %s3195_s0, %s3196_s9  }
   0xc   :  { %3183 = dma.done.wait [#allocation6], 16  }
   0xd   :  { %3184 = vsyncadd [#allocation6], 4294967280 }
   0xe   :  { %3185 = dma.done.wait [#allocation8], 32  }
   0xf   :  { %3186 = vsyncadd [#allocation8], 4294967264 }
  0x10   :  { %3187 = dma.done.wait [#allocation4], 256  }
  0x11   :  { %3188 = vsyncadd [#allocation4], 4294967040 }
  0x12   :  { %73 = sfence }
  0x13   :  { %s78_s2 = sld [smem:[#allocation3]]  ;;  %v3247_v0 = vld [vmem:[#allocation10] sm:$0xf]  ;;  %v3249_v1 = vld [vmem:[#allocation10 + $0x4] sm:$0xf] }
  0x14   :  { %s2932_s10 = sld [smem:[#allocation3 + $0x1]]  ;;  %v3251_v2 = vld [vmem:[#allocation10 + $0x8] sm:$0xf]  ;;  %v3253_v4 = vld [vmem:[#allocation10 + $0xc] sm:$0xf] }
  0x15   :  { %s2933_s11 = sld [smem:[#allocation3 + $0x2]]  ;;  %v6605_v47 = vmov 920167782   ;;  %v6603_v49 = vmov 1326507024  }
  0x16   :  { %s2934_s4 = sld [smem:[#allocation3 + $0x3]]  ;;  %v6615_v55 = vmov 2475754826   ;;  %v6608_v57 = vmov 2131351028  }
  0x17   :  { %s93_s12 = sld [smem:[#allocation7]]  ;;  %v6632_v60 = vmov 2102212464  }
  0x18   :  { %s2938_s13 = sld [smem:[#allocation3 + $0x4]] }
  0x19   :  { %v79_v3 = vstv %s78_s2  ;;  %s2939_s14 = sld [smem:[#allocation3 + $0x5]] }
  0x1a   :  { %v80_v5 = vmul.f32 %v79_v3, %v3247_v0  ;;  %v82_v6 = vstv %s2932_s10  ;;  %s2940_s15 = sld [smem:[#allocation3 + $0x6]] }
  0x1b   :  { %v83_v7 = vmul.f32 %v82_v6, %v3249_v1  ;;  %v86_v8 = vstv %s2933_s11  ;;  %s2941_s16 = sld [smem:[#allocation3 + $0x7]] }
  0x1c   :  { %v87_v9 = vmul.f32 %v86_v8, %v3251_v2  ;;  %v90_v10 = vstv %s2934_s4  ;;  %s2942_s17 = sld [smem:[#allocation7 + $0x1]] }
  0x1d   :  { %v84_v11 = vadd.f32 %v83_v7, %v80_v5  ;;  %v91_v12 = vmul.f32 %v90_v10, %v3253_v4  ;;  %v94_v14 = vstv %s93_s12  ;;  %s2946_s18 = sld [smem:[#allocation3 + $0x8]] }
  0x1e   :  { %v252_v19 = vstv %s2938_s13  ;;  %s2947_s19 = sld [smem:[#allocation3 + $0x9]] }
  0x1f   :  { %v88_v13 = vadd.f32 %v87_v9, %v84_v11  ;;  %v255_v20 = vstv %s2939_s14  ;;  %v253_v21 = vmul.f32 %v252_v19, %v3247_v0  ;;  %s2948_s20 = sld [smem:[#allocation3 + $0xa]]  ;;  %v6613_v9 = vmov 683565275  }
  0x20   :  { %v256_v22 = vmul.f32 %v255_v20, %v3249_v1  ;;  %v259_v24 = vstv %s2940_s15  ;;  %s2949_s21 = sld [smem:[#allocation3 + $0xb]] }
  0x21   :  { %v92_v15 = vadd.f32 %v91_v12, %v88_v13  ;;  %v260_v26 = vmul.f32 %v259_v24, %v3251_v2  ;;  %v263_v28 = vstv %s2941_s16  ;;  %s3274_s22 = sld [smem:[#allocation7 + $0x2]] }
  0x22   :  { %v257_v25 = vadd.f32 %v256_v22, %v253_v21  ;;  %v264_v30 = vmul.f32 %v263_v28, %v3253_v4  ;;  %v267_v33 = vstv %s2942_s17  ;;  %s3508_s23 = sld [smem:[#allocation3 + $0xc]] }
  0x23   :  { %v3259_v16 = vadd.f32 %v94_v14, %v92_v15  ;;  %v425_v34 = vstv %s2946_s18  ;;  %s3520_s24 = sld [smem:[#allocation3 + $0xd]] }
  0x24   :  { %v261_v29 = vadd.f32 %v260_v26, %v257_v25  ;;  %v428_v35 = vstv %s2947_s19  ;;  %v426_v38 = vmul.f32 %v425_v34, %v3247_v0  ;;  %s3542_s25 = sld [smem:[#allocation3 + $0xe]] }
  0x25   :  { %v99_v17 = vand.u32 2139095040, %v3259_v16  ;;  %v429_v39 = vmul.f32 %v428_v35, %v3249_v1  ;;  %v432_v40 = vstv %s2948_s20  ;;  %v6601_v46 = vand.u32 2147483647, %v3259_v16  ;;  %s3547_s26 = sld [smem:[#allocation3 + $0xf]] }
  0x26   :  { %v265_v32 = vadd.f32 %v264_v30, %v261_v29  ;;  %v433_v44 = vmul.f32 %v432_v40, %v3251_v2  ;;  %v436_v45 = vstv %s2949_s21  ;;  %s3555_s27 = sld [smem:[#allocation3 + $0x10]] }
  0x27   :  { %v100_v18 = vshrl.u32 %v99_v17, 23  ;;  %v430_v43 = vadd.f32 %v429_v39, %v426_v38  ;;  %v437_v54 = vmul.f32 %v436_v45, %v3253_v4  ;;  %v103_v5 = vand.u32 8388607, %v6601_v46  ;;  %s3559_s28 = sld [smem:[#allocation3 + $0x11]] }
  0x28   :  { %v3266_v37 = vadd.f32 %v267_v33, %v265_v32  ;;  %v440_v8 = vstv %s3274_s22  ;;  %s3574_s29 = sld [smem:[#allocation3 + $0x12]] }
  0x29   :  { %v2935_v23 = vadd.s32 4294967169, %v100_v18  ;;  %v434_v53 = vadd.f32 %v433_v44, %v430_v43  ;;  %v104_v17 = vor.u32 8388608, %v103_v5  ;;  %s3583_s30 = sld [smem:[#allocation7 + $0x3]] }
  0x2a   :  { %6680 = vst [vmem:[#allocation16_spill] sm:$0xff] %v3266_v37  ;;  %v272_v42 = vand.u32 2139095040, %v3266_v37  ;;  %v6600_v40 = vand.u32 2147483647, %v3266_v37  ;;  %s3595_s1 = sld [smem:[#allocation3 + $0x13]] }
  0x2b   :  { %v106_v27 = vadd.s32 1, %v2935_v23  ;;  %v438_v7 = vadd.f32 %v437_v54, %v434_v53  ;;  %v3320_v24 = vshll.u32 %v104_v17, 8  ;;  %s3631_s6 = sld [smem:[#allocation7 + $0x4]] }
  0x2c   :  { %v273_v52 = vshrl.u32 %v272_v42, 23  ;;  %v276_v53 = vand.u32 8388607, %v6600_v40  ;;  %s3836_s7 = sld [smem:[#allocation3 + $0x14]] }
  0x2d   :  { %vm107_vm0 = vcmp.gt.s32.totalorder %v106_v27, 0  ;;  %v3307_v19 = vadd.f32 %v440_v8, %v438_v7  ;;  %v145_v30 = vand.u32 65535, %v3320_v24  ;;  %v146_v43 = vshrl.u32 %v3320_v24, 16  ;;  %s3842_s8 = sld [smem:[#allocation3 + $0x15]] }
  0x2e   :  { %v108_v31 = vsel %vm107_vm0, %v106_v27, 0  ;;  %v2943_v6 = vadd.s32 4294967169, %v273_v52  ;;  %s3875_s0 = sld [smem:[#allocation3 + $0x16]] }
  0x2f   :  { %v110_v36 = vand.u32 31, %v108_v31  ;;  %v3280_v51 = vshrl.u32 %v108_v31, 5  ;;  %6681 = vst [vmem:[#allocation17_spill] sm:$0xff] %v3307_v19  ;;  %v445_v25 = vand.u32 2139095040, %v3307_v19  ;;  %s3906_s9 = sld [smem:[#allocation3 + $0x17]] }
  0x30   :  { %v279_v18 = vadd.s32 1, %v2943_v6  ;;  %s3923_s2 = sld [smem:[#allocation7 + $0x5]] }
  0x31   :  { %v3270_v41 = vsub.s32 32, %v110_v36  ;;  %v125_v48 = vshll.u32 %v6605_v47, %v110_v36  ;;  %v116_v56 = vshll.u32 %v6615_v55, %v110_v36  ;;  %v119_v59 = vshll.u32 %v6608_v57, %v110_v36  ;;  %s3955_s10 = sld [smem:[#allocation3 + $0x18]] }
  0x32   :  { %v122_v62 = vshll.u32 %v6632_v60, %v110_v36  ;;  %vm131_vm1 = vcmp.lt.s32.totalorder %v3280_v51, 4  ;;  %v113_v10 = vshll.u32 %v6613_v9, %v110_v36  ;;  %vm128_vm2 = vcmp.lt.s32.totalorder %v3280_v51, 1  ;;  %s3961_s11 = sld [smem:[#allocation3 + $0x19]] }
  0x33   :  { %v126_v50 = vshrl.u32 %v6603_v49, %v3270_v41  ;;  %v117_v58 = vshrl.u32 %v6608_v57, %v3270_v41  ;;  %v120_v61 = vshrl.u32 %v6632_v60, %v3270_v41  ;;  %v123_v63 = vshrl.u32 %v6605_v47, %v3270_v41  ;;  %s3976_s4 = sld [smem:[#allocation3 + $0x1a]] }
  0x34   :  { %v114_v11 = vshrl.u32 %v6615_v55, %v3270_v41  ;;  %vm130_vm3 = vcmp.lt.s32.totalorder %v3280_v51, 3  ;;  %vm129_vm4 = vcmp.lt.s32.totalorder %v3280_v51, 2  ;;  %vm280_vm5 = vcmp.gt.s32.totalorder %v279_v18, 0  ;;  %s3991_s12 = sld [smem:[#allocation3 + $0x1b]] }
  0x35   :  { %v127_v3 = vor.u32 %v126_v50, %v125_v48  ;;  %v3299_v12 = vor.u32 %v117_v58, %v116_v56  ;;  %v3301_v13 = vor.u32 %v120_v61, %v119_v59  ;;  %v124_v14 = vor.u32 %v123_v63, %v122_v62  ;;  %s4033_s13 = sld [smem:[#allocation7 + $0x6]] }
  0x36   :  { %v3309_v20 = vor.u32 %v114_v11, %v113_v10  ;;  %v281_v29 = vsel %vm280_vm5, %v279_v18, 0  ;;  %v446_v32 = vshrl.u32 %v445_v25, 23  ;;  %v277_v18 = vor.u32 8388608, %v276_v53  ;;  %s4156_s14 = sld [smem:[#allocation3 + $0x1c]] }
  0x37   :  { %v141_v15 = vsel %vm131_vm1, %v127_v3, 1326507024  ;;  %v140_v21 = vsel %vm128_vm2, %v3299_v12, %v3301_v13  ;;  %v137_v23 = vsel %vm131_vm1, %v124_v14, 920167782  ;;  %v283_v34 = vand.u32 31, %v281_v29  ;;  %s4164_s15 = sld [smem:[#allocation3 + $0x1d]] }
  0x38   :  { %v142_v22 = vsel %vm130_vm3, %v124_v14, %v141_v15  ;;  %v136_v27 = vsel %vm128_vm2, %v3309_v20, %v3299_v12  ;;  %v138_v28 = vsel %vm130_vm3, %v3301_v13, %v137_v23  ;;  %v2951_v39 = vadd.s32 4294967169, %v446_v32  ;;  %s4279_s16 = sld [smem:[#allocation3 + $0x1e]] }
  0x39   :  { %v143_v26 = vsel %vm129_vm4, %v140_v21, %v142_v22  ;;  %v139_v33 = vsel %vm129_vm4, %v136_v27, %v138_v28  ;;  %v3338_v42 = vsub.s32 32, %v283_v34  ;;  %v3346_v54 = vshrl.u32 %v281_v29, 5  ;;  %s4286_s17 = sld [smem:[#allocation3 + $0x1f]] }
  0x3a   :  { %v148_v31 = vshrl.u32 %v143_v26, 16  ;;  %v147_v35 = vand.u32 65535, %v143_v26  ;;  %v170_v38 = vshrl.u32 %v139_v33, 16  ;;  %v169_v44 = vand.u32 65535, %v139_v33  ;;  %s4311_s18 = sld [smem:[#allocation7 + $0x7]] }
  0x3b   :  { %v452_v52 = vadd.s32 1, %v2951_v39  ;;  %v286_v56 = vshll.u32 %v6613_v9, %v283_v34  ;;  %v289_v58 = vshll.u32 %v6615_v55, %v283_v34  ;;  %v295_v59 = vshll.u32 %v6632_v60, %v283_v34  ;;  %s4350_s19 = sld [smem:[#allocation3 + $0x20]] }
  0x3c   :  { %v3335_v36 = vmul.u32 %v148_v31, %v145_v30  ;;  %v149_v45 = vmul.u32 %v147_v35, %v145_v30  ;;  %v3342_v50 = vmul.u32 %v170_v38, %v145_v30  ;;  %v296_v61 = vshrl.u32 %v6605_v47, %v3338_v42  ;;  %s4356_s20 = sld [smem:[#allocation3 + $0x21]] }
  0x3d   :  { %v3353_v62 = vmul.u32 %v147_v35, %v146_v43  ;;  %v171_v63 = vmul.u32 %v169_v44, %v145_v30  ;;  %v3355_v3 = vmul.u32 %v169_v44, %v146_v43  ;;  %v292_v5 = vshll.u32 %v6608_v57, %v283_v34  ;;  %s4376_s21 = sld [smem:[#allocation3 + $0x22]] }
  0x3e   :  { %v153_v48 = vshll.u32 %v3335_v36, 16  ;;  %v175_v7 = vshll.u32 %v3342_v50, 16  ;;  %v287_v8 = vshrl.u32 %v6615_v55, %v3338_v42  ;;  %vm453_vm7 = vcmp.gt.s32.totalorder %v452_v52, 0  ;;  %s4401_s22 = sld [smem:[#allocation3 + $0x23]] }
  0x3f   :  { %v290_v10 = vshrl.u32 %v6608_v57, %v3338_v42  ;;  %v293_v11 = vshrl.u32 %v6632_v60, %v3338_v42  ;;  %v298_v14 = vshll.u32 %v6605_v47, %v283_v34  ;;  %v299_v15 = vshrl.u32 %v6603_v49, %v3338_v42 }
  0x40   :  { %vm3358_vm6 = vc.u32 %v149_v45, %v153_v48  ;;  %v152_v17 = vmul.u32 %v148_v31, %v146_v43  ;;  %v297_v21 = vor.u32 %v296_v61, %v295_v59  ;;  %vm301_vm8 = vcmp.lt.s32.totalorder %v3346_v54, 1 }
  0x41   :  { %v155_v22 = vshll.u32 %v3353_v62, 16  ;;  %v159_v23 = vadd.s32 %v153_v48, %v149_v45  ;;  %vm304_vm9 = vcmp.lt.s32.totalorder %v3346_v54, 4  ;;  %v454_v25 = vsel %vm453_vm7, %v452_v52, 0 }
  0x42   :  { %v6611_v26 = vmov 0   ;;  %v177_v28 = vshll.u32 %v3355_v3, 16  ;;  %vm179_vm10 = vc.u32 %v171_v63, %v175_v7  ;;  %v3379_v29 = vadd.s32 %v175_v7, %v171_v63 }
  0x43   :  { %v158_v27 = vsel %vm3358_vm6, 1, %v6611_v26  ;;  %v3381_v30 = vor.u32 %v287_v8, %v286_v56  ;;  %v3383_v31 = vor.u32 %v290_v10, %v289_v58  ;;  %v3385_v32 = vor.u32 %v293_v11, %v292_v5 }
  0x44   :  { %v300_v33 = vor.u32 %v299_v15, %v298_v14  ;;  %v174_v34 = vmul.u32 %v170_v38, %v146_v43  ;;  %vm303_vm11 = vcmp.lt.s32.totalorder %v3346_v54, 3  ;;  %v310_v35 = vsel %vm304_vm9, %v297_v21, 920167782 }
  0x45   :  { %v456_v39 = vand.u32 31, %v454_v25  ;;  %vm161_vm12 = vc.u32 %v159_v23, %v155_v22  ;;  %v180_v44 = vsel %vm179_vm10, 1, %v6611_v26  ;;  %v160_v45 = vadd.s32 %v158_v27, %v152_v17 }
  0x46   :  { %vm183_vm13 = vc.u32 %v3379_v29, %v177_v28  ;;  %v3394_v48 = vshll.u32 %v277_v18, 8  ;;  %vm302_vm14 = vcmp.lt.s32.totalorder %v3346_v54, 2  ;;  %v309_v38 = vsel %vm301_vm8, %v3381_v30, %v3383_v31 }
  0x47   :  { %v311_v43 = vsel %vm303_vm11, %v3385_v32, %v310_v35  ;;  %v314_v52 = vsel %vm304_vm9, %v300_v33, 1326507024  ;;  %v162_v53 = vsel %vm161_vm12, 1, %v6611_v26  ;;  %v182_v56 = vadd.s32 %v180_v44, %v174_v34 }
  0x48   :  { %v3407_v58 = vsub.s32 32, %v456_v39  ;;  %v184_v59 = vsel %vm183_vm13, 1, %v6611_v26  ;;  %v6602_v61 = vand.u32 2147483647, %v3307_v19  ;;  %v112_v63 = vshrl.u32 %v6613_v9, %v3270_v41 }
  0x49   :  { %v3415_v5 = vsel %vm302_vm14, %v309_v38, %v311_v43  ;;  %v313_v6 = vsel %vm301_vm8, %v3383_v31, %v3385_v32  ;;  %v315_v7 = vsel %vm303_vm11, %v297_v21, %v314_v52  ;;  %v154_v8 = vshrl.u32 %v3335_v36, 16 }
  0x4a   :  { %v164_v10 = vadd.s32 %v162_v53, %v160_v45  ;;  %v176_v11 = vshrl.u32 %v3342_v50, 16  ;;  %v318_v14 = vand.u32 65535, %v3394_v48  ;;  %v186_v41 = vadd.s32 %v184_v59, %v182_v56 }
  0x4b   :  { %v3427_v15 = vshrl.u32 %v3394_v48, 16  ;;  %v468_v17 = vshll.u32 %v6632_v60, %v456_v39  ;;  %v469_v18 = vshrl.u32 %v6605_v47, %v3407_v58  ;;  %v3434_v22 = vsel %vm302_vm14, %v313_v6, %v315_v7 }
  0x4c   :  { %v342_v36 = vand.u32 65535, %v3415_v5  ;;  %v343_v21 = vshrl.u32 %v3415_v5, 16  ;;  %v3438_v50 = vshrl.u32 %v454_v25, 5  ;;  %v459_v23 = vshll.u32 %v6613_v9, %v456_v39 }
  0x4d   :  { %v462_v27 = vshll.u32 %v6615_v55, %v456_v39  ;;  %v471_v33 = vshll.u32 %v6605_v47, %v456_v39  ;;  %v472_v34 = vshrl.u32 %v6603_v49, %v3407_v58  ;;  %v460_v35 = vshrl.u32 %v6615_v55, %v3407_v58 }
  0x4e   :  { %v463_v44 = vshrl.u32 %v6608_v57, %v3407_v58  ;;  %v465_v45 = vshll.u32 %v6608_v57, %v456_v39  ;;  %v466_v25 = vshrl.u32 %v6632_v60, %v3407_v58  ;;  %v133_v38 = vsel %vm131_vm1, %v3301_v13, 2102212464 }
  0x4f   :  { %v156_v43 = vshrl.u32 %v3353_v62, 16  ;;  %v321_v52 = vshrl.u32 %v3434_v22, 16  ;;  %v470_v53 = vor.u32 %v469_v18, %v468_v17  ;;  %v178_v56 = vshrl.u32 %v3355_v3, 16 }
  0x50   :  { %v3458_v59 = vmul.u32 %v343_v21, %v318_v14  ;;  %v449_v5 = vand.u32 8388607, %v6602_v61  ;;  %vm477_vm15 = vcmp.lt.s32.totalorder %v3438_v50, 4  ;;  %v165_v39 = vadd.s32 %v164_v10, %v154_v8 }
  0x51   :  { %v187_v6 = vadd.s32 %v186_v41, %v176_v11  ;;  %v320_v7 = vand.u32 65535, %v3434_v22  ;;  %v473_v40 = vor.u32 %v472_v34, %v471_v33  ;;  %v3465_v13 = vmul.u32 %v342_v36, %v3427_v15 }
  0x52   :  { %v3467_v62 = vor.u32 %v460_v35, %v459_v23  ;;  %v3469_v17 = vor.u32 %v463_v44, %v462_v27  ;;  %v3471_v18 = vor.u32 %v466_v25, %v465_v45  ;;  %v3473_v46 = vmul.u32 %v321_v52, %v318_v14 }
  0x53   :  { %vm474_vm0 = vcmp.lt.s32.totalorder %v3438_v50, 1  ;;  %vm476_vm1 = vcmp.lt.s32.totalorder %v3438_v50, 3  ;;  %v483_v8 = vsel %vm477_vm15, %v470_v53, 920167782  ;;  %v132_v10 = vsel %vm128_vm2, %v112_v63, %v3309_v20 }
  0x54   :  { %v344_v11 = vmul.u32 %v342_v36, %v318_v14  ;;  %v348_v41 = vshll.u32 %v3458_v59, 16  ;;  %v450_v22 = vor.u32 8388608, %v449_v5  ;;  %v134_v23 = vsel %vm130_vm3, %v3299_v12, %v133_v38 }
  0x55   :  { %v3486_v27 = vadd.s32 %v165_v39, %v156_v43  ;;  %v3491_v33 = vadd.s32 %v3379_v29, %v177_v28  ;;  %v487_v34 = vsel %vm477_vm15, %v473_v40, 1326507024  ;;  %v188_v35 = vadd.s32 %v187_v6, %v178_v56 }
  0x56   :  { %vm475_vm2 = vcmp.lt.s32.totalorder %v3438_v50, 2  ;;  %v482_v20 = vsel %vm474_vm0, %v3467_v62, %v3469_v17  ;;  %v484_v12 = vsel %vm476_vm1, %v3471_v18, %v483_v8  ;;  %v322_v63 = vmul.u32 %v320_v7, %v318_v14 }
  0x57   :  { %v3504_v3 = vmul.u32 %v320_v7, %v3427_v15  ;;  %v326_v28 = vshll.u32 %v3473_v46, 16  ;;  %v350_v40 = vshll.u32 %v3465_v13, 16  ;;  %v3510_v29 = vadd.s32 %v348_v41, %v344_v11 }
  0x58   :  { %v486_v36 = vsel %vm474_vm0, %v3469_v17, %v3471_v18  ;;  %v488_v44 = vsel %vm476_vm1, %v470_v53, %v487_v34  ;;  %v3518_v14 = vshll.u32 %v450_v22, 8  ;;  %vm352_vm3 = vc.u32 %v344_v11, %v348_v41 }
  0x59   :  { %v3524_v45 = vsel %vm475_vm2, %v482_v20, %v484_v12  ;;  %v135_v25 = vsel %vm129_vm4, %v132_v10, %v134_v23  ;;  %vm191_vm5 = vc.u32 %v3486_v27, %v3491_v33  ;;  %v192_v38 = vadd.s32 1, %v188_v35 }
  0x5a   :  { %v347_v43 = vmul.u32 %v343_v21, %v3427_v15  ;;  %v328_v53 = vshll.u32 %v3504_v3, 16  ;;  %vm330_vm6 = vc.u32 %v322_v63, %v326_v28  ;;  %v332_v56 = vadd.s32 %v326_v28, %v322_v63 }
  0x5b   :  { %v3534_v5 = vsel %vm475_vm2, %v486_v36, %v488_v44  ;;  %v353_v39 = vsel %vm352_vm3, 1, %v6611_v26  ;;  %vm356_vm4 = vc.u32 %v3510_v29, %v350_v40  ;;  %v491_v51 = vand.u32 65535, %v3518_v14 }
  0x5c   :  { %v516_v6 = vshrl.u32 %v3524_v45, 16  ;;  %v285_v21 = vshrl.u32 %v6613_v9, %v3338_v42  ;;  %v325_v7 = vmul.u32 %v321_v52, %v3427_v15  ;;  %v189_v8 = vmul.u32 %v3320_v24, %v135_v25 }
  0x5d   :  { %v193_v10 = vsel %vm191_vm5, %v192_v38, %v188_v35  ;;  %v331_v11 = vsel %vm330_vm6, 1, %v6611_v26  ;;  %v494_v41 = vshrl.u32 %v3534_v5, 16  ;;  %vm334_vm7 = vc.u32 %v332_v56, %v328_v53 }
  0x5e   :  { %v355_v22 = vadd.s32 %v353_v39, %v347_v43  ;;  %v357_v42 = vsel %vm356_vm4, 1, %v6611_v26  ;;  %v598_v23 = vstv %s3508_s23  ;;  %v492_v15 = vshrl.u32 %v3518_v14, 16  ;;  %s4440_s23 = sld [smem:[#allocation7 + $0x8]] }
  0x5f   :  { %v515_v24 = vand.u32 65535, %v3524_v45  ;;  %v3565_v52 = vmul.u32 %v516_v6, %v491_v51  ;;  %v601_v34 = vstv %s3520_s24  ;;  %v3571_v35 = vsel %vm301_vm8, %v285_v21, %v3381_v30  ;;  %s4692_s24 = sld [smem:[#allocation3 + $0x24]] }
  0x60   :  { %v333_v20 = vadd.s32 %v331_v11, %v325_v7  ;;  %v493_v12 = vand.u32 65535, %v3534_v5  ;;  %v306_v63 = vsel %vm304_vm9, %v3385_v32, 2102212464  ;;  %v335_v28 = vsel %vm334_vm7, 1, %v6611_v26 }
  0x61   :  { %v3580_v36 = vmul.u32 %v494_v41, %v491_v51  ;;  %v599_v44 = vmul.f32 %v598_v23, %v3247_v0  ;;  %v3585_v30 = vadd.s32 %v193_v10, %v189_v8  ;;  %v349_v25 = vshrl.u32 %v3458_v59, 16 }
  0x62   :  { %v359_v38 = vadd.s32 %v357_v42, %v355_v22  ;;  %v602_v43 = vmul.f32 %v601_v34, %v3249_v1  ;;  %v517_v53 = vmul.u32 %v515_v24, %v491_v51  ;;  %v3589_v32 = vmul.u32 %v515_v24, %v492_v15 }
  0x63   :  { %v521_v56 = vshll.u32 %v3565_v52, 16  ;;  %v605_v5 = vstv %s3542_s25  ;;  %v327_v39 = vshrl.u32 %v3473_v46, 16  ;;  %v337_v21 = vadd.s32 %v335_v28, %v333_v20  ;;  %s4699_s25 = sld [smem:[#allocation3 + $0x25]] }
  0x64   :  { %v351_v7 = vshrl.u32 %v3465_v13, 16  ;;  %v495_v8 = vmul.u32 %v493_v12, %v491_v51  ;;  %v3597_v59 = vmul.u32 %v493_v12, %v492_v15  ;;  %v499_v10 = vshll.u32 %v3580_v36, 16 }
  0x65   :  { %v603_v11 = vadd.f32 %v602_v43, %v599_v44  ;;  %v606_v22 = vmul.f32 %v605_v5, %v3251_v2  ;;  %v360_v42 = vadd.s32 %v359_v38, %v349_v25  ;;  %v609_v23 = vstv %s3547_s26  ;;  %s4738_s26 = sld [smem:[#allocation3 + $0x26]] }
  0x66   :  { %v771_v24 = vstv %s3555_s27  ;;  %v774_v34 = vstv %s3559_s28  ;;  %v523_v46 = vshll.u32 %v3589_v32, 16  ;;  %vm3605_vm8 = vc.u32 %v517_v53, %v521_v56  ;;  %s4777_s27 = sld [smem:[#allocation3 + $0x27]] }
  0x67   :  { %v3609_v51 = vadd.s32 %v521_v56, %v517_v53  ;;  %v607_v12 = vadd.f32 %v606_v22, %v603_v11  ;;  %v610_v28 = vmul.f32 %v609_v23, %v3253_v4  ;;  %v772_v44 = vmul.f32 %v771_v24, %v3247_v0  ;;  %s4799_s28 = sld [smem:[#allocation7 + $0x9]] }
  0x68   :  { %v775_v43 = vmul.f32 %v774_v34, %v3249_v1  ;;  %v778_v5 = vstv %s3574_s29  ;;  %v501_v25 = vshll.u32 %v3597_v59, 16  ;;  %vm503_vm9 = vc.u32 %v495_v8, %v499_v10  ;;  %s4837_s29 = sld [smem:[#allocation3 + $0x28]] }
  0x69   :  { %v505_v38 = vadd.s32 %v499_v10, %v495_v8  ;;  %v613_v61 = vstv %s3583_s30  ;;  %v329_v49 = vshrl.u32 %v3504_v3, 16  ;;  %v338_v47 = vadd.s32 %v337_v21, %v327_v39  ;;  %s4846_s30 = sld [smem:[#allocation3 + $0x29]] }
  0x6a   :  { %v520_v53 = vmul.u32 %v516_v6, %v492_v15  ;;  %v611_v56 = vadd.f32 %v610_v28, %v607_v12  ;;  %v498_v11 = vmul.u32 %v494_v41, %v492_v15  ;;  %v526_v0 = vsel %vm3605_vm8, 1, %v6611_v26 }
  0x6b   :  { %v776_v1 = vadd.f32 %v775_v43, %v772_v44  ;;  %v779_v22 = vmul.f32 %v778_v5, %v3251_v2  ;;  %v504_v23 = vsel %vm503_vm9, 1, %v6611_v26  ;;  %vm529_vm10 = vc.u32 %v3609_v51, %v523_v46 }
  0x6c   :  { %v3628_v3 = vadd.f32 %v613_v61, %v611_v56  ;;  %v782_v39 = vstv %s3595_s1  ;;  %v195_v45 = vadd.s32 536870912, %v3585_v30  ;;  %v307_v6 = vsel %vm303_vm11, %v3383_v31, %v306_v63  ;;  %s4863_s1 = sld [smem:[#allocation3 + $0x2a]] }
  0x6d   :  { %v361_v41 = vadd.s32 %v360_v42, %v351_v7  ;;  %vm507_vm12 = vc.u32 %v505_v38, %v501_v25  ;;  %v3637_v2 = vadd.s32 %v338_v47, %v329_v49  ;;  %v3642_v15 = vadd.s32 %v3510_v29, %v350_v40 }
  0x6e   :  { %6686 = vst [vmem:[#allocation18_spill] sm:$0xff] %v3628_v3  ;;  %v528_v61 = vadd.s32 %v526_v0, %v520_v53  ;;  %v618_v21 = vand.u32 2139095040, %v3628_v3  ;;  %v506_v8 = vadd.s32 %v504_v23, %v498_v11  ;;  %v530_v10 = vsel %vm529_vm10, 1, %v6611_v26 }
  0x6f   :  { %v780_v24 = vadd.f32 %v779_v22, %v776_v1  ;;  %v783_v34 = vmul.f32 %v782_v39, %v3253_v4  ;;  %v508_v31 = vsel %vm507_vm12, 1, %v6611_v26  ;;  %v3648_v47 = vshrl.u32 %v195_v45, 30 }
  0x70   :  { %v619_v63 = vshrl.u32 %v618_v21, 23  ;;  %v308_v49 = vsel %vm302_vm14, %v3571_v35, %v307_v6  ;;  %v365_v13 = vadd.s32 1, %v361_v41  ;;  %vm364_vm11 = vc.u32 %v3637_v2, %v3642_v15 }
  0x71   :  { %v522_v40 = vshrl.u32 %v3565_v52, 16  ;;  %v532_v29 = vadd.s32 %v530_v10, %v528_v61  ;;  %v500_v42 = vshrl.u32 %v3580_v36, 16  ;;  %v510_v4 = vadd.s32 %v508_v31, %v506_v8 }
  0x72   :  { %v2959_v7 = vadd.s32 4294967169, %v619_v63  ;;  %v784_v20 = vadd.f32 %v783_v34, %v780_v24  ;;  %v362_v12 = vmul.u32 %v3394_v48, %v308_v49  ;;  %v786_v44 = vstv %s3631_s6  ;;  %s4889_s6 = sld [smem:[#allocation3 + $0x2b]] }
  0x73   :  { %v197_v43 = vshll.u32 %v3648_v47, 30  ;;  %v366_v54 = vsel %vm364_vm11, %v365_v13, %v361_v41  ;;  %v458_v35 = vshrl.u32 %v6613_v9, %v3407_v58  ;;  %v479_v52 = vsel %vm477_vm15, %v3471_v18, 2102212464 }
  0x74   :  { %v625_v28 = vadd.s32 1, %v2959_v7  ;;  %v524_v5 = vshrl.u32 %v3589_v32, 16  ;;  %v533_v25 = vadd.s32 %v532_v29, %v522_v40  ;;  %v6607_v36 = vand.u32 2147483647, %v3628_v3 }
  0x75   :  { %v502_v48 = vshrl.u32 %v3597_v59, 16  ;;  %v511_v38 = vadd.s32 %v510_v4, %v500_v42  ;;  %v3668_v56 = vadd.f32 %v786_v44, %v784_v20  ;;  %v3671_v0 = vsub.s32 %v3585_v30, %v197_v43 }
  0x76   :  { %vm626_vm13 = vcmp.gt.s32.totalorder %v625_v28, 0  ;;  %v3673_v58 = vadd.s32 %v366_v54, %v362_v12  ;;  %v478_v18 = vsel %vm474_vm0, %v458_v35, %v3467_v62  ;;  %v480_v1 = vsel %vm476_vm1, %v3469_v17, %v479_v52 }
  0x77   :  { %v627_v53 = vsel %vm626_vm13, %v625_v28, 0  ;;  %6687 = vst [vmem:[#allocation19_spill] sm:$0xff] %v3668_v56  ;;  %v3684_v59 = vadd.s32 %v3609_v51, %v523_v46  ;;  %v534_v22 = vadd.s32 %v533_v25, %v524_v5  ;;  %v622_v30 = vand.u32 8388607, %v6607_v36 }
  0x78   :  { %v629_v11 = vand.u32 31, %v627_v53  ;;  %v3690_v39 = vadd.s32 %v511_v38, %v502_v48  ;;  %v791_v6 = vand.u32 2139095040, %v3668_v56  ;;  %v3695_v17 = vshrl.u32 %v627_v53, 5 }
  0x79   :  { %v200_v41 = vsub.s32 0, %v3671_v0  ;;  %v6688_v8 = vmov 920167782   ;;  %vm199_vm14 = vcmp.lt.s32.totalorder %v3671_v0, 0  ;;  %v481_v24 = vsel %vm475_vm2, %v478_v18, %v480_v1 }
  0x7a   :  { %v3688_v23 = vsub.s32 32, %v629_v11  ;;  %v632_v45 = vshll.u32 %v6613_v9, %v629_v11  ;;  %v635_v62 = vshll.u32 %v6615_v55, %v629_v11  ;;  %v641_v51 = vshll.u32 %v6632_v60, %v629_v11 }
  0x7b   :  { %v638_v61 = vshll.u32 %v6608_v57, %v629_v11  ;;  %v538_v34 = vadd.s32 1, %v534_v22  ;;  %v623_v31 = vor.u32 8388608, %v622_v30  ;;  %v368_v63 = vadd.s32 536870912, %v3673_v58 }
  0x7c   :  { %v633_v32 = vshrl.u32 %v6615_v55, %v3688_v23  ;;  %v636_v46 = vshrl.u32 %v6608_v57, %v3688_v23  ;;  %v639_v21 = vshrl.u32 %v6632_v60, %v3688_v23  ;;  %v642_v10 = vshrl.u32 %v6688_v8, %v3688_v23 }
  0x7d   :  { %vm537_vm15 = vc.u32 %v3690_v39, %v3684_v59  ;;  %v644_v29 = vshll.u32 %v6688_v8, %v629_v11  ;;  %vm647_vm0 = vcmp.lt.s32.totalorder %v3695_v17, 1  ;;  %v792_v7 = vshrl.u32 %v791_v6, 23 }
  0x7e   :  { %v3714_v49 = vor.u32 %v633_v32, %v632_v45  ;;  %v3716_v13 = vor.u32 %v636_v46, %v635_v62  ;;  %v643_v40 = vor.u32 %v642_v10, %v641_v51  ;;  %v201_v50 = vsel %vm199_vm14, %v200_v41, %v3671_v0 }
  0x7f   :  { %v535_v42 = vmul.u32 %v3518_v14, %v481_v24  ;;  %v3722_v4 = vor.u32 %v639_v21, %v638_v61  ;;  %v6689_v20 = vmov 1326507024   ;;  %v539_v28 = vsel %vm537_vm15, %v538_v34, %v534_v22 }
  0x80   :  { %v645_v12 = vshrl.u32 %v6689_v20, %v3688_v23  ;;  %vm649_vm1 = vcmp.lt.s32.totalorder %v3695_v17, 3  ;;  %vm650_vm2 = vcmp.lt.s32.totalorder %v3695_v17, 4  ;;  %v3728_v44 = vshll.u32 %v623_v31, 8 }
  0x81   :  { %vm648_vm3 = vcmp.lt.s32.totalorder %v3695_v17, 2  ;;  %v655_v43 = vsel %vm647_vm0, %v3714_v49, %v3716_v13  ;;  %v3735_v14 = vshrl.u32 %v368_v63, 30  ;;  %v656_v35 = vsel %vm650_vm2, %v643_v40, 920167782 }
  0x82   :  { %v646_v54 = vor.u32 %v645_v12, %v644_v29  ;;  %v2967_v52 = vadd.s32 4294967169, %v792_v7  ;;  %v202_v5 = vclz %v201_v50  ;;  %v540_v25 = vadd.s32 %v539_v28, %v535_v42 }
  0x83   :  { %v657_v48 = vsel %vm649_vm1, %v3722_v4, %v656_v35  ;;  %v659_v38 = vsel %vm647_vm0, %v3716_v13, %v3722_v4  ;;  %v664_v18 = vand.u32 65535, %v3728_v44  ;;  %v665_v1 = vshrl.u32 %v3728_v44, 16 }
  0x84   :  { %v658_v53 = vsel %vm648_vm3, %v655_v43, %v657_v48  ;;  %v660_v11 = vsel %vm650_vm2, %v646_v54, 1326507024  ;;  %v370_v62 = vshll.u32 %v3735_v14, 30  ;;  %v798_v32 = vadd.s32 1, %v2967_v52 }
  0x85   :  { %v661_v22 = vsel %vm649_vm1, %v643_v40, %v660_v11  ;;  %v688_v30 = vand.u32 65535, %v658_v53  ;;  %v689_v45 = vshrl.u32 %v658_v53, 16  ;;  %v2936_v46 = vadd.s32 4294967294, %v202_v5 }
  0x86   :  { %v662_v6 = vsel %vm648_vm3, %v659_v38, %v661_v22  ;;  %v541_v61 = vadd.s32 536870912, %v540_v25  ;;  %v3764_v40 = vsub.s32 %v3673_v58, %v370_v62  ;;  %vm799_vm5 = vcmp.gt.s32.totalorder %v798_v32, 0 }
  0x87   :  { %v666_v51 = vand.u32 65535, %v662_v6  ;;  %v667_v41 = vshrl.u32 %v662_v6, 16  ;;  %v690_v21 = vmul.u32 %v688_v30, %v664_v18  ;;  %v691_v10 = vmul.u32 %v689_v45, %v664_v18 }
  0x88   :  { %v3757_v24 = vmul.u32 %v688_v30, %v665_v1  ;;  %vm2937_vm6 = vcmp.lt.s32.totalorder %v2936_v46, 0  ;;  %v3767_v50 = vshrl.u32 %v541_v61, 30  ;;  %v800_v43 = vsel %vm799_vm5, %v798_v32, 0 }
  0x89   :  { %v668_v34 = vmul.u32 %v666_v51, %v664_v18  ;;  %v3759_v31 = vmul.u32 %v667_v41, %v664_v18  ;;  %v3761_v63 = vmul.u32 %v666_v51, %v665_v1  ;;  %v694_v29 = vshll.u32 %v691_v10, 16 }
  0x8a   :  { %v696_v42 = vshll.u32 %v3757_v24, 16  ;;  %v3771_v54 = vsel %vm2937_vm6, 0, %v2936_v46  ;;  %v373_v58 = vsub.s32 0, %v3764_v40  ;;  %v693_v35 = vmul.u32 %v689_v45, %v665_v1 }
  0x8b   :  { %v672_v7 = vshll.u32 %v3759_v31, 16  ;;  %vm698_vm4 = vc.u32 %v690_v21, %v694_v29  ;;  %v674_v12 = vshll.u32 %v3761_v63, 16  ;;  %v3774_v52 = vadd.s32 %v694_v29, %v690_v21 }
  0x8c   :  { %vm372_vm8 = vcmp.lt.s32.totalorder %v3764_v40, 0  ;;  %v671_v5 = vmul.u32 %v667_v41, %v665_v1  ;;  %v699_v48 = vsel %vm698_vm4, 1, %v6611_v26  ;;  %v802_v53 = vand.u32 31, %v800_v43 }
  0x8d   :  { %vm676_vm7 = vc.u32 %v668_v34, %v672_v7  ;;  %v678_v28 = vadd.s32 %v672_v7, %v668_v34  ;;  %vm702_vm9 = vc.u32 %v3774_v52, %v696_v42  ;;  %v210_v11 = vsub.s32 4294967266, %v3771_v54 }
  0x8e   :  { %v677_v38 = vsel %vm676_vm7, 1, %v6611_v26  ;;  %v543_v18 = vshll.u32 %v3767_v50, 30  ;;  %v374_v22 = vsel %vm372_vm8, %v373_v58, %v3764_v40  ;;  %v701_v30 = vadd.s32 %v699_v48, %v693_v35 }
  0x8f   :  { %vm680_vm10 = vc.u32 %v678_v28, %v674_v12  ;;  %v190_v1 = vadd.s32 %v3491_v33, %v3486_v27  ;;  %v679_v45 = vadd.s32 %v677_v38, %v671_v5  ;;  %v703_v62 = vsel %vm702_vm9, 1, %v6611_v26 }
  0x90   :  { %v206_v6 = vsub.s32 32, %v3771_v54  ;;  %v207_v32 = vshll.u32 %v3671_v0, %v3771_v54  ;;  %v681_v46 = vsel %vm680_vm10, 1, %v6611_v26  ;;  %v3792_v51 = vsub.s32 32, %v802_v53 }
  0x91   :  { %v211_v41 = vadd.s32 127, %v210_v11  ;;  %v375_v61 = vclz %v374_v22  ;;  %v3794_v21 = vsub.s32 %v540_v25, %v543_v18  ;;  %v6610_v34 = vand.u32 2147483647, %v3668_v56 }
  0x92   :  { %v631_v27 = vshrl.u32 %v6613_v9, %v3688_v23  ;;  %v695_v33 = vshrl.u32 %v691_v10, 16  ;;  %v705_v29 = vadd.s32 %v703_v62, %v701_v30  ;;  %v814_v7 = vshll.u32 %v6632_v60, %v802_v53 }
  0x93   :  { %v673_v12 = vshrl.u32 %v3759_v31, 16  ;;  %v683_v28 = vadd.s32 %v681_v46, %v679_v45  ;;  %v3801_v58 = vshrl.u32 %v800_v43, 5  ;;  %v805_v35 = vshll.u32 %v6613_v9, %v802_v53 }
  0x94   :  { %v808_v5 = vshll.u32 %v6615_v55, %v802_v53  ;;  %v811_v25 = vshll.u32 %v6608_v57, %v802_v53  ;;  %v815_v48 = vshrl.u32 %v6688_v8, %v3792_v51  ;;  %v817_v23 = vshll.u32 %v6688_v8, %v802_v53 }
  0x95   :  { %v806_v10 = vshrl.u32 %v6615_v55, %v3792_v51  ;;  %v809_v31 = vshrl.u32 %v6608_v57, %v3792_v51  ;;  %v812_v43 = vshrl.u32 %v6632_v60, %v3792_v51  ;;  %v818_v38 = vshrl.u32 %v6689_v20, %v3792_v51 }
  0x96   :  { %v2944_v11 = vadd.s32 4294967294, %v375_v61  ;;  %v697_v18 = vshrl.u32 %v3757_v24, 16  ;;  %v706_v22 = vadd.s32 %v705_v29, %v695_v33  ;;  %v816_v30 = vor.u32 %v815_v48, %v814_v7 }
  0x97   :  { %vm545_vm12 = vcmp.lt.s32.totalorder %v3794_v21, 0  ;;  %v675_v53 = vshrl.u32 %v3761_v63, 16  ;;  %v684_v45 = vadd.s32 %v683_v28, %v673_v12  ;;  %v795_v62 = vand.u32 8388607, %v6610_v34 }
  0x98   :  { %v546_v46 = vsub.s32 0, %v3794_v21  ;;  %v652_v36 = vsel %vm650_vm2, %v3722_v4, 2102212464  ;;  %v819_v57 = vor.u32 %v818_v38, %v817_v23  ;;  %vm823_vm11 = vcmp.lt.s32.totalorder %v3801_v58, 4 }
  0x99   :  { %v651_v61 = vsel %vm647_vm0, %v631_v27, %v3714_v49  ;;  %v3830_v33 = vor.u32 %v806_v10, %v805_v35  ;;  %v3832_v63 = vor.u32 %v809_v31, %v808_v5  ;;  %v3834_v29 = vor.u32 %v812_v43, %v811_v25 }
  0x9a   :  { %v707_v7 = vadd.s32 %v706_v22, %v697_v18  ;;  %vm820_vm13 = vcmp.lt.s32.totalorder %v3801_v58, 1  ;;  %vm822_vm14 = vcmp.lt.s32.totalorder %v3801_v58, 3  ;;  %v829_v4 = vsel %vm823_vm11, %v816_v30, 920167782 }
  0x9b   :  { %v653_v49 = vsel %vm649_vm1, %v3716_v13, %v652_v36  ;;  %v3847_v27 = vadd.s32 %v684_v45, %v675_v53  ;;  %v3852_v12 = vadd.s32 %v3774_v52, %v696_v42  ;;  %v796_v28 = vor.u32 8388608, %v795_v62 }
  0x9c   :  { %v208_v35 = vshrl.u32 %v190_v1, %v206_v6  ;;  %v212_v5 = vshll.u32 %v211_v41, 23  ;;  %vm2945_vm15 = vcmp.lt.s32.totalorder %v2944_v11, 0  ;;  %v833_v25 = vsel %vm823_vm11, %v819_v57, 1326507024 }
  0x9d   :  { %v547_v48 = vsel %vm545_vm12, %v546_v46, %v3794_v21  ;;  %vm821_vm0 = vcmp.lt.s32.totalorder %v3801_v58, 2  ;;  %v828_v36 = vsel %vm820_vm13, %v3830_v33, %v3832_v63  ;;  %v830_v13 = vsel %vm822_vm14, %v3834_v29, %v829_v4 }
  0x9e   :  { %v654_v24 = vsel %vm648_vm3, %v651_v61, %v653_v49  ;;  %v711_v57 = vadd.s32 1, %v707_v7  ;;  %v832_v42 = vsel %vm820_vm13, %v3832_v63, %v3834_v29  ;;  %v834_v52 = vsel %vm822_vm14, %v816_v30, %v833_v25  ;;  %v3903_v61 = vld [vmem:[#allocation10 + $0x4] sm:$0xf] }
  0x9f   :  { %vm710_vm1 = vc.u32 %v3847_v27, %v3852_v12  ;;  %v3879_v1 = vshll.u32 %v796_v28, 8  ;;  %v209_v17 = vor.u32 %v208_v35, %v207_v32  ;;  %v213_v6 = vor.u32 4788187, %v212_v5 }
  0xa0   :  { %v378_v41 = vsel %vm2945_vm15, 0, %v2944_v11  ;;  %v3886_v23 = vsel %vm821_vm0, %v828_v36, %v830_v13  ;;  %v548_v10 = vclz %v547_v48  ;;  %v708_v31 = vmul.u32 %v3728_v44, %v654_v24  ;;  %v3900_v44 = vld [vmem:[#allocation10] sm:$0xf] }
  0xa1   :  { %v3891_v43 = vsel %vm821_vm0, %v832_v42, %v834_v52  ;;  %v712_v38 = vsel %vm710_vm1, %v711_v57, %v707_v7  ;;  %v944_v18 = vstv %s3836_s7  ;;  %v947_v22 = vstv %s3842_s8  ;;  %v3919_v52 = vld [vmem:[#allocation10 + $0x8] sm:$0xf]  ;;  %s4913_s7 = sld [smem:[#allocation7 + $0xa]] }
  0xa2   :  { %v383_v30 = vsub.s32 4294967266, %v378_v41  ;;  %v837_v0 = vand.u32 65535, %v3879_v1  ;;  %v862_v54 = vshrl.u32 %v3886_v23, 16  ;;  %v214_v32 = vand.u32 2147483647, %v213_v6  ;;  %s5133_s8 = sld [smem:[#allocation3 + $0x2c]] }
  0xa3   :  { %v216_v11 = vcvt.s32.f32 %v209_v17  ;;  %v840_v53 = vshrl.u32 %v3891_v43, 16  ;;  %v2952_v45 = vadd.s32 4294967294, %v548_v10  ;;  %v3898_v62 = vadd.s32 %v712_v38, %v708_v31 }
  0xa4   :  { %v945_v46 = vmul.f32 %v3900_v44, %v944_v18  ;;  %v948_v7 = vmul.f32 %v3903_v61, %v947_v22  ;;  %v363_v4 = vadd.s32 %v3642_v15, %v3637_v2  ;;  %v379_v49 = vsub.s32 32, %v378_v41 }
  0xa5   :  { %v951_v28 = vstv %s3875_s0  ;;  %v384_v35 = vadd.s32 127, %v383_v30  ;;  %v838_v5 = vshrl.u32 %v3879_v1, 16  ;;  %v861_v25 = vand.u32 65535, %v3886_v23  ;;  %s5148_s0 = sld [smem:[#allocation3 + $0x2d]] }
  0xa6   :  { %v3913_v48 = vmul.u32 %v862_v54, %v837_v0  ;;  %v217_v36 = vmul.f32 %v216_v11, %v214_v32  ;;  %v839_v13 = vand.u32 65535, %v3891_v43  ;;  %v3916_v24 = vmul.u32 %v840_v53, %v837_v0 }
  0xa7   :  { %vm2953_vm2 = vcmp.lt.s32.totalorder %v2952_v45, 0  ;;  %v714_v57 = vadd.s32 536870912, %v3898_v62  ;;  %v949_v42 = vadd.f32 %v948_v7, %v945_v46  ;;  %v952_v2 = vmul.f32 %v3919_v52, %v951_v28 }
  0xa8   :  { %v380_v15 = vshll.u32 %v3764_v40, %v378_v41  ;;  %v381_v17 = vshrl.u32 %v363_v4, %v379_v49  ;;  %v385_v6 = vshll.u32 %v384_v35, 23  ;;  %v863_v23 = vmul.u32 %v861_v25, %v837_v0 }
  0xa9   :  { %v3925_v10 = vmul.u32 %v861_v25, %v838_v5  ;;  %v867_v31 = vshll.u32 %v3913_v48, 16  ;;  %v551_v43 = vsel %vm2953_vm2, 0, %v2952_v45  ;;  %v841_v38 = vmul.u32 %v839_v13, %v837_v0  ;;  %v3941_v45 = vld [vmem:[#allocation10 + $0xc] sm:$0xf] }
  0xaa   :  { %v3928_v18 = vmul.u32 %v839_v13, %v838_v5  ;;  %v845_v22 = vshll.u32 %v3916_v24, 16  ;;  %v218_v30 = vxor.u32 2147483648, %v217_v36  ;;  %v3931_v32 = vshrl.u32 %v714_v57, 30 }
  0xab   :  { %v953_v11 = vadd.f32 %v952_v2, %v949_v42  ;;  %v955_v40 = vstv %s3906_s9  ;;  %v6691_v41 = vand.u32 2147483647, %v3259_v16  ;;  %vm98_vm5 = vcmp.lt.s32.totalorder %v3259_v16, 0  ;;  %s5167_s9 = sld [smem:[#allocation3 + $0x2e]] }
  0xac   :  { %6690 = vst [vmem:[#allocation20_spill] sm:$0xff] %v3931_v32  ;;  %v382_v7 = vor.u32 %v381_v17, %v380_v15  ;;  %v956_v0 = vmul.f32 %v3941_v45, %v955_v40  ;;  %v556_v4 = vsub.s32 4294967266, %v551_v43  ;;  %v869_v49 = vshll.u32 %v3925_v10, 16 }
  0xad   :  { %vm3936_vm3 = vcmp.le.f32.partialorder %v6691_v41, 0.7853982  ;;  %vm871_vm6 = vc.u32 %v863_v23, %v867_v31  ;;  %v3945_v28 = vadd.s32 %v867_v31, %v863_v23  ;;  %v386_v35 = vor.u32 4788187, %v385_v6 }
  0xae   :  { %v847_v25 = vshll.u32 %v3928_v18, 16  ;;  %vm849_vm4 = vc.u32 %v841_v38, %v845_v22  ;;  %v851_v13 = vadd.s32 %v845_v22, %v841_v38  ;;  %v219_v57 = vsel %vm98_vm5, %v218_v30, %v217_v36 }
  0xaf   :  { %v716_v42 = vshll.u32 %v3931_v32, 30  ;;  %v866_v2 = vmul.u32 %v862_v54, %v838_v5  ;;  %v957_v15 = vadd.f32 %v956_v0, %v953_v11  ;;  %v536_v17 = vadd.s32 %v3684_v59, %v3690_v39 }
  0xb0   :  { %v844_v40 = vmul.u32 %v840_v53, %v838_v5  ;;  %v872_v41 = vsel %vm871_vm6, 1, %v6611_v26  ;;  %v959_v23 = vstv %s3923_s2  ;;  %v552_v6 = vsub.s32 32, %v551_v43  ;;  %s5216_s2 = sld [smem:[#allocation3 + $0x2f]] }
  0xb1   :  { %v557_v31 = vadd.s32 127, %v556_v4  ;;  %v850_v38 = vsel %vm849_vm4, 1, %v6611_v26  ;;  %vm875_vm7 = vc.u32 %v3945_v28, %v869_v49  ;;  %v387_v54 = vand.u32 2147483647, %v386_v35 }
  0xb2   :  { %v389_v36 = vcvt.s32.f32 %v382_v7  ;;  %vm853_vm8 = vc.u32 %v851_v13, %v847_v25  ;;  %v3966_v59 = vsel %vm3936_vm3, %v3259_v16, %v219_v57  ;;  %v3969_v39 = vsub.s32 %v3898_v62, %v716_v42 }
  0xb3   :  { %v874_v53 = vadd.s32 %v872_v41, %v866_v2  ;;  %v3971_v5 = vadd.f32 %v959_v23, %v957_v15  ;;  %v852_v22 = vadd.s32 %v850_v38, %v844_v40  ;;  %v876_v30 = vsel %vm875_vm7, 1, %v6611_v26 }
  0xb4   :  { %v553_v11 = vshll.u32 %v3794_v21, %v551_v43  ;;  %v554_v0 = vshrl.u32 %v536_v17, %v552_v6  ;;  %v558_v4 = vshll.u32 %v557_v31, 23  ;;  %v854_v7 = vsel %vm853_vm8, 1, %v6611_v26 }
  0xb5   :  { %6694 = vst [vmem:[#allocation21_spill] sm:$0xff] %v3971_v5  ;;  %v3980_v62 = vmul.f32 %v3966_v59, %v3966_v59  ;;  %vm271_vm9 = vcmp.lt.s32.totalorder %v3266_v37, 0  ;;  %v390_v35 = vmul.f32 %v389_v36, %v387_v54  ;;  %v719_v25 = vsub.s32 0, %v3969_v39 }
  0xb6   :  { %v868_v13 = vshrl.u32 %v3913_v48, 16  ;;  %v878_v21 = vadd.s32 %v876_v30, %v874_v53  ;;  %v964_v43 = vand.u32 2139095040, %v3971_v5  ;;  %vm718_vm10 = vcmp.lt.s32.totalorder %v3969_v39, 0 }
  0xb7   :  { %v225_v57 = vmul.f32 -0.001358992, %v3980_v62  ;;  %v846_v42 = vshrl.u32 %v3916_v24, 16  ;;  %v856_v2 = vadd.s32 %v854_v7, %v852_v22  ;;  %v555_v15 = vor.u32 %v554_v0, %v553_v11 }
  0xb8   :  { %v559_v17 = vor.u32 4788187, %v558_v4  ;;  %v1117_v40 = vstv %s3955_s10  ;;  %v1120_v41 = vstv %s3961_s11  ;;  %v232_v23 = vmul.f32 -0.00019511016, %v3980_v62  ;;  %s5231_s10 = sld [smem:[#allocation7 + $0xb]] }
  0xb9   :  { %v391_v48 = vxor.u32 2147483648, %v390_v35  ;;  %v804_v6 = vshrl.u32 %v6613_v9, %v3792_v51  ;;  %v825_v31 = vsel %vm823_vm11, %v3834_v29, 2102212464  ;;  %v720_v24 = vsel %vm718_vm10, %v719_v25, %v3969_v39  ;;  %s5242_s11 = sld [smem:[#allocation3 + $0x30]] }
  0xba   :  { %v870_v38 = vshrl.u32 %v3925_v10, 16  ;;  %v879_v54 = vadd.s32 %v878_v21, %v868_v13  ;;  %v965_v36 = vshrl.u32 %v964_v43, 23  ;;  %v848_v53 = vshrl.u32 %v3928_v18, 16 }
  0xbb   :  { %v857_v22 = vadd.s32 %v856_v2, %v846_v42  ;;  %v1118_v30 = vmul.f32 %v3900_v44, %v1117_v40  ;;  %v1121_v11 = vmul.f32 %v3903_v61, %v1120_v41  ;;  %v6695_v0 = vand.u32 2147483647, %v3266_v37 }
  0xbc   :  { %v560_v29 = vand.u32 2147483647, %v559_v17  ;;  %v562_v4 = vcvt.s32.f32 %v555_v15  ;;  %v1124_v7 = vstv %s3976_s4  ;;  %v226_v25 = vadd.f32 0.041655596, %v225_v57  ;;  %s5260_s4 = sld [smem:[#allocation3 + $0x31]] }
  0xbd   :  { %vm4006_vm12 = vcmp.le.f32.partialorder %v6695_v0, 0.7853982  ;;  %v233_v13 = vadd.f32 0.008332121, %v232_v23  ;;  %v392_v18 = vsel %vm271_vm9, %v391_v48, %v390_v35  ;;  %v824_v21 = vsel %vm820_vm13, %v804_v6, %v3830_v33 }
  0xbe   :  { %v721_v43 = vclz %v720_v24  ;;  %v826_v42 = vsel %vm822_vm14, %v3832_v63, %v825_v31  ;;  %v880_v2 = vadd.s32 %v879_v54, %v870_v38  ;;  %v2975_v40 = vadd.s32 4294967169, %v965_v36 }
  0xbf   :  { %v4019_v17 = vadd.s32 %v857_v22, %v848_v53  ;;  %v4024_v57 = vadd.s32 %v3945_v28, %v869_v49  ;;  %v1122_v15 = vadd.f32 %v1121_v11, %v1118_v30  ;;  %v1125_v35 = vmul.f32 %v3919_v52, %v1124_v7 }
  0xc0   :  { %v4030_v33 = vsel %vm4006_vm12, %v3266_v37, %v392_v18  ;;  %v563_v41 = vmul.f32 %v562_v4, %v560_v29  ;;  %v1128_v23 = vstv %s3991_s12  ;;  %v220_v63 = vsub.s32 4, %v3648_v47  ;;  %s5289_s12 = sld [smem:[#allocation3 + $0x32]] }
  0xc1   :  { %v227_v48 = vmul.f32 %v226_v25, %v3980_v62  ;;  %v234_v10 = vmul.f32 %v233_v13, %v3980_v62  ;;  %v393_v49 = vsub.s32 4, %v3735_v14  ;;  %v2960_v28 = vadd.s32 4294967294, %v721_v43 }
  0xc2   :  { %v827_v6 = vsel %vm821_vm0, %v824_v21, %v826_v42  ;;  %v884_v31 = vadd.s32 1, %v880_v2  ;;  %v971_v24 = vadd.s32 1, %v2975_v40  ;;  %v4043_v38 = vmul.f32 %v4030_v33, %v4030_v33 }
  0xc3   :  { %vm883_vm11 = vc.u32 %v4019_v17, %v4024_v57  ;;  %v1126_v54 = vadd.f32 %v1125_v35, %v1122_v15  ;;  %v1129_v36 = vmul.f32 %v3941_v45, %v1128_v23  ;;  %v564_v53 = vxor.u32 2147483648, %v563_v41 }
  0xc4   :  { %v228_v22 = vadd.f32 -0.4999988, %v227_v48  ;;  %vm444_vm13 = vcmp.lt.s32.totalorder %v3307_v19, 0  ;;  %v881_v58 = vmul.u32 %v3879_v1, %v827_v6  ;;  %v235_v30 = vadd.f32 -0.16666654, %v234_v10 }
  0xc5   :  { %vm2961_vm14 = vcmp.lt.s32.totalorder %v2960_v28, 0  ;;  %v885_v11 = vsel %vm883_vm11, %v884_v31, %v880_v2  ;;  %vm972_vm15 = vcmp.gt.s32.totalorder %v971_v24, 0  ;;  %v221_v0 = vsel %vm98_vm5, %v220_v63, %v3648_v47 }
  0xc6   :  { %v394_v29 = vsel %vm271_vm9, %v393_v49, %v3735_v14  ;;  %v405_v4 = vmul.f32 -0.00019511016, %v4043_v38  ;;  %v1130_v7 = vadd.f32 %v1129_v36, %v1126_v54  ;;  %v6698_v25 = vand.u32 2147483647, %v3307_v19 }
  0xc7   :  { %v565_v1 = vsel %vm444_vm13, %v564_v53, %v563_v41  ;;  %v1132_v18 = vstv %s4033_s13  ;;  %v724_v21 = vsel %vm2961_vm14, 0, %v2960_v28  ;;  %v886_v43 = vadd.s32 %v885_v11, %v881_v58  ;;  %s5318_s13 = sld [smem:[#allocation3 + $0x33]] }
  0xc8   :  { %vm4059_vm0 = vcmp.le.f32.partialorder %v6698_v25, 0.7853982  ;;  %v973_v47 = vsel %vm972_vm15, %v971_v24, 0  ;;  %v223_v42 = vsel %vm3936_vm3, 0, %v221_v0  ;;  %v229_v14 = vmul.f32 %v228_v22, %v3980_v62 }
  0xc9   :  { %v236_v2 = vmul.f32 %v235_v30, %v3980_v62  ;;  %v396_v40 = vsel %vm4006_vm12, 0, %v394_v29  ;;  %v398_v15 = vmul.f32 -0.001358992, %v4043_v38  ;;  %v406_v35 = vadd.f32 0.008332121, %v405_v4 }
  0xca   :  { %v4076_v41 = vsel %vm4059_vm0, %v3307_v19, %v565_v1  ;;  %v4078_v23 = vadd.f32 %v1132_v18, %v1130_v7  ;;  %v709_v46 = vadd.s32 %v3852_v12, %v3847_v27  ;;  %v725_v63 = vsub.s32 32, %v724_v21 }
  0xcb   :  { %v729_v48 = vsub.s32 4294967266, %v724_v21  ;;  %v975_v10 = vand.u32 31, %v973_v47  ;;  %v240_v62 = vadd.s32 3, %v223_v42  ;;  %v887_v49 = vadd.s32 536870912, %v886_v43 }
  0xcc   :  { %6701 = vst [vmem:[#allocation22_spill] sm:$0xff] %v4078_v23  ;;  %v4082_v51 = vadd.f32 1.0, %v229_v14  ;;  %v237_v28 = vadd.f32 1.0, %v236_v2  ;;  %v413_v6 = vadd.s32 3, %v396_v40  ;;  %v399_v31 = vadd.f32 0.041655596, %v398_v15 }
  0xcd   :  { %v407_v24 = vmul.f32 %v406_v35, %v4043_v38  ;;  %v4087_v54 = vmul.f32 %v4076_v41, %v4076_v41  ;;  %v1137_v36 = vand.u32 2139095040, %v4078_v23  ;;  %v726_v27 = vshll.u32 %v3969_v39, %v724_v21 }
  0xce   :  { %v727_v12 = vshrl.u32 %v709_v46, %v725_v63  ;;  %v730_v53 = vadd.s32 127, %v729_v48  ;;  %v4091_v22 = vsub.s32 32, %v975_v10  ;;  %v4093_v58 = vand.u32 3, %v240_v62 }
  0xcf   :  { %v4095_v30 = vshrl.u32 %v887_v49, 30  ;;  %v238_v11 = vmul.f32 %v237_v28, %v3966_v59  ;;  %v247_v0 = vxor.u32 2147483648, %v4082_v51  ;;  %v4099_v29 = vand.u32 3, %v413_v6 }
  0xd0   :  { %v400_v4 = vmul.f32 %v399_v31, %v4043_v38  ;;  %v408_v7 = vadd.f32 -0.16666654, %v407_v24  ;;  %v578_v25 = vmul.f32 -0.00019511016, %v4087_v54  ;;  %v1138_v39 = vshrl.u32 %v1137_v36, 23 }
  0xd1   :  { %6702 = vst [vmem:[#allocation23_spill] sm:$0xff] %v4095_v30  ;;  %v728_v1 = vor.u32 %v727_v12, %v726_v27  ;;  %v731_v18 = vshll.u32 %v730_v53, 23  ;;  %v987_v21 = vshll.u32 %v6632_v60, %v975_v10  ;;  %v988_v42 = vshrl.u32 %v6688_v8, %v4091_v22 }
  0xd2   :  { %vm243_vm1 = vcmp.eq.s32.totalorder %v4093_v58, 0  ;;  %vm246_vm2 = vcmp.eq.s32.totalorder %v4093_v58, 2  ;;  %v889_v59 = vshll.u32 %v4095_v30, 30  ;;  %v6617_v14 = vand.u32 2147483647, %v3971_v5 }
  0xd3   :  { %v4110_v2 = vshrl.u32 %v973_v47, 5  ;;  %v978_v40 = vshll.u32 %v6613_v9, %v975_v10  ;;  %v981_v15 = vshll.u32 %v6615_v55, %v975_v10  ;;  %v6703_v35 = vmov 2131351028  }
  0xd4   :  { %v984_v46 = vshll.u32 %v6703_v35, %v975_v10  ;;  %v990_v63 = vshll.u32 %v6688_v8, %v975_v10  ;;  %v991_v48 = vshrl.u32 %v6689_v20, %v4091_v22  ;;  %v979_v62 = vshrl.u32 %v6615_v55, %v4091_v22 }
  0xd5   :  { %v982_v49 = vshrl.u32 %v6703_v35, %v4091_v22  ;;  %v985_v47 = vshrl.u32 %v6632_v60, %v4091_v22  ;;  %v2983_v28 = vadd.s32 4294967169, %v1138_v39  ;;  %vm242_vm3 = vcmp.lt.s32.totalorder %v4093_v58, 2 }
  0xd6   :  { %v244_v6 = vxor.u32 2147483648, %v238_v11  ;;  %v401_v31 = vadd.f32 -0.4999988, %v400_v4  ;;  %v732_v24 = vor.u32 4788187, %v731_v18  ;;  %v989_v36 = vor.u32 %v988_v42, %v987_v21 }
  0xd7   :  { %v409_v10 = vmul.f32 %v408_v7, %v4043_v38  ;;  %v4126_v27 = vsub.s32 %v886_v43, %v889_v59  ;;  %v968_v12 = vand.u32 8388607, %v6617_v14  ;;  %vm996_vm5 = vcmp.lt.s32.totalorder %v4110_v2, 4 }
  0xd8   :  { %v571_v53 = vmul.f32 -0.001358992, %v4087_v54  ;;  %v579_v34 = vadd.f32 0.008332121, %v578_v25  ;;  %v735_v26 = vcvt.s32.f32 %v728_v1  ;;  %v992_v39 = vor.u32 %v991_v48, %v990_v63 }
  0xd9   :  { %v4132_v9 = vor.u32 %v979_v62, %v978_v40  ;;  %v4134_v55 = vor.u32 %v982_v49, %v981_v15  ;;  %v4136_v4 = vor.u32 %v985_v47, %v984_v46  ;;  %v1144_v18 = vadd.s32 1, %v2983_v28 }
  0xda   :  { %v733_v7 = vand.u32 2147483647, %v732_v24  ;;  %vm993_vm6 = vcmp.lt.s32.totalorder %v4110_v2, 1  ;;  %vm995_vm4 = vcmp.lt.s32.totalorder %v4110_v2, 3  ;;  %v1002_v43 = vsel %vm996_vm5, %v989_v36, 920167782 }
  0xdb   :  { %v402_v21 = vmul.f32 %v401_v31, %v4043_v38  ;;  %v410_v25 = vadd.f32 1.0, %v409_v10  ;;  %v892_v1 = vsub.s32 0, %v4126_v27  ;;  %v969_v42 = vor.u32 8388608, %v968_v12 }
  0xdc   :  { %v572_v59 = vadd.f32 0.041655596, %v571_v53  ;;  %v580_v40 = vmul.f32 %v579_v34, %v4087_v54  ;;  %vm891_vm7 = vcmp.lt.s32.totalorder %v4126_v27, 0  ;;  %v1006_v15 = vsel %vm996_vm5, %v992_v39, 1326507024 }
  0xdd   :  { %vm994_vm8 = vcmp.lt.s32.totalorder %v4110_v2, 2  ;;  %v1001_v46 = vsel %vm993_vm6, %v4132_v9, %v4134_v55  ;;  %v1003_v38 = vsel %vm995_vm4, %v4136_v4, %v1002_v43  ;;  %vm1145_vm9 = vcmp.gt.s32.totalorder %v1144_v18, 0 }
  0xde   :  { %v245_v34 = vsel %vm243_vm1, %v4082_v51, %v244_v6  ;;  %v248_v63 = vsel %vm246_vm2, %v247_v0, %v238_v11  ;;  %v566_v48 = vsub.s32 4, %v3767_v50  ;;  %v736_v62 = vmul.f32 %v735_v26, %v733_v7 }
  0xdf   :  { %v893_v49 = vsel %vm891_vm7, %v892_v1, %v4126_v27  ;;  %v1005_v47 = vsel %vm993_vm6, %v4134_v55, %v4136_v4  ;;  %v1007_v28 = vsel %vm995_vm4, %v989_v36, %v1006_v15  ;;  %v4173_v31 = vshll.u32 %v969_v42, 8 }
  0xe0   :  { %v4175_v51 = vadd.f32 1.0, %v402_v21  ;;  %v573_v11 = vmul.f32 %v572_v59, %v4087_v54  ;;  %v4180_v26 = vsel %vm994_vm8, %v1001_v46, %v1003_v38  ;;  %v1146_v0 = vsel %vm1145_vm9, %v1144_v18, 0 }
  0xe1   :  { %vm239_vm10 = vweird.f32 %v3259_v16  ;;  %v249_v6 = vsel %vm242_vm3, %v245_v34, %v248_v63  ;;  %v4186_v24 = vmul.f32 %v410_v25, %v4030_v33  ;;  %v581_v36 = vadd.f32 -0.16666654, %v580_v40 }
  0xe2   :  { %vm419_vm12 = vcmp.eq.s32.totalorder %v4099_v29, 2  ;;  %v567_v10 = vsel %vm444_vm13, %v566_v48, %v3767_v50  ;;  %v894_v12 = vclz %v893_v49  ;;  %v4194_v53 = vsel %vm994_vm8, %v1005_v47, %v1007_v28 }
  0xe3   :  { %v737_v16 = vxor.u32 2147483648, %v736_v62  ;;  %v1010_v58 = vand.u32 65535, %v4173_v31  ;;  %v1035_v33 = vshrl.u32 %v4180_v26, 16  ;;  %v1148_v39 = vand.u32 31, %v1146_v0 }
  0xe4   :  { %v4198_v18 = vsel %vm239_vm10, nan, %v249_v6  ;;  %v420_v7 = vxor.u32 2147483648, %v4175_v51  ;;  %v574_v43 = vadd.f32 -0.4999988, %v573_v11  ;;  %vm617_vm11 = vcmp.lt.s32.totalorder %v3628_v3, 0 }
  0xe5   :  { %6704 = vst [vmem:[#allocation24_spill] sm:$0xff] %v4198_v18  ;;  %v569_v21 = vsel %vm4059_vm0, 0, %v567_v10  ;;  %v582_v25 = vmul.f32 %v581_v36, %v4087_v54  ;;  %v1013_v1 = vshrl.u32 %v4194_v53, 16  ;;  %v6705_v42 = vand.u32 2147483647, %v3628_v3 }
  0xe6   :  { %v6706_v59 = vmov 0  ;;  %v4213_v40 = vadd.s32 4294967294, %v894_v12  ;;  %v1290_v15 = vstv %s4156_s14  ;;  %v1293_v46 = vstv %s4164_s15  ;;  %s5354_s14 = sld [smem:[#allocation7 + $0xc]] }
  0xe7   :  { %vm4209_vm13 = vcmp.le.f32.partialorder %v6705_v42, 0.7853982  ;;  %v738_v38 = vsel %vm617_vm11, %v737_v16, %v736_v62  ;;  %v1034_v13 = vand.u32 65535, %v4180_v26  ;;  %v4220_v34 = vmul.u32 %v1035_v33, %v1010_v58  ;;  %s5482_s15 = sld [smem:[#allocation3 + $0x34]] }
  0xe8   :  { %v6707_v59 = vsel %vm4209_vm13, 4294967295, %v6706_v59  ;;  %v4222_v63 = vsub.s32 32, %v1148_v39  ;;  %v4227_v48 = vsel %vm419_vm12, %v420_v7, %v4186_v24  ;;  %v4230_v49 = vmul.f32 %v574_v43, %v4087_v54 }
  0xe9   :  { %6708 = vst [vmem:[#allocation25_spill] sm:$0xff] %v6707_v59  ;;  %v4232_v47 = vadd.s32 3, %v569_v21  ;;  %v1011_v28 = vshrl.u32 %v4173_v31, 16  ;;  %v4235_v11 = vadd.f32 1.0, %v582_v25  ;;  %v1012_v62 = vand.u32 65535, %v4194_v53 }
  0xea   :  { %6709 = vst [vmem:[#allocation26_spill] sm:$0xff] %v4227_v48  ;;  %v4238_v26 = vmul.u32 %v1013_v1, %v1010_v58  ;;  %v6625_v6 = vand.u32 2147483647, %v4078_v23  ;;  %v4244_v36 = vsel %vm4209_vm13, %v3628_v3, %v738_v38  ;;  %vm2969_vm14 = vcmp.lt.s32.totalorder %v4213_v40, 0 }
  0xeb   :  { %6710 = vst [vmem:[#allocation27_spill] sm:$0xff] %v4244_v36  ;;  %v1291_v54 = vmul.f32 %v3900_v44, %v1290_v15  ;;  %v1294_v10 = vmul.f32 %v3903_v61, %v1293_v46  ;;  %v1036_v12 = vmul.u32 %v1034_v13, %v1010_v58  ;;  %v1040_v16 = vshll.u32 %v4220_v34, 16 }
  0xec   :  { %v1163_v53 = vshll.u32 %v6688_v8, %v1148_v39  ;;  %v1164_v7 = vshrl.u32 %v6689_v20, %v4222_v63  ;;  %v4253_v43 = vmul.u32 %v1034_v13, %v1011_v28  ;;  %v4255_v21 = vshrl.u32 %v1146_v0, 5 }
  0xed   :  { %v1160_v25 = vshll.u32 %v6632_v60, %v1148_v39  ;;  %v1161_v42 = vshrl.u32 %v6688_v8, %v4222_v63  ;;  %v1014_v15 = vmul.u32 %v1012_v62, %v1010_v58  ;;  %v4260_v38 = vmul.u32 %v1012_v62, %v1011_v28 }
  0xee   :  { %v1018_v46 = vshll.u32 %v4238_v26, 16  ;;  %v1141_v14 = vand.u32 8388607, %v6625_v6  ;;  %v6711_v50 = vmov 2475754826   ;;  %v1155_v13 = vshrl.u32 %v6703_v35, %v4222_v63 }
  0xef   :  { %v1154_v18 = vshll.u32 %v6711_v50, %v1148_v39  ;;  %v1157_v0 = vshll.u32 %v6703_v35, %v1148_v39  ;;  %v1158_v5 = vshrl.u32 %v6632_v60, %v4222_v63  ;;  %vm1044_vm15 = vc.u32 %v1036_v12, %v1040_v16 }
  0xf0   :  { %v6712_v30 = vmov 683565275   ;;  %v1152_v62 = vshrl.u32 %v6711_v50, %v4222_v63  ;;  %v1165_v59 = vor.u32 %v1164_v7, %v1163_v53  ;;  %v6638_v23 = vshll.u32 %v4253_v43, 16 }
  0xf1   :  { %v1151_v58 = vshll.u32 %v6712_v30, %v1148_v39  ;;  %v4275_v6 = vadd.s32 %v1040_v16, %v1036_v12  ;;  %v1162_v19 = vor.u32 %v1161_v42, %v1160_v25  ;;  %vm1169_vm0 = vcmp.lt.s32.totalorder %v4255_v21, 4 }
  0xf2   :  { %v1020_v48 = vshll.u32 %v4260_v38, 16  ;;  %vm1022_vm1 = vc.u32 %v1014_v15, %v1018_v46  ;;  %v1024_v3 = vadd.s32 %v1018_v46, %v1014_v15  ;;  %v1039_v56 = vmul.u32 %v1035_v33, %v1011_v28 }
  0xf3   :  { %v1017_v60 = vmul.u32 %v1013_v1, %v1011_v28  ;;  %v6713_v39 = vmov 0   ;;  %v4282_v32 = vor.u32 %v1155_v13, %v1154_v18  ;;  %v4284_v53 = vor.u32 %v1158_v5, %v1157_v0 }
  0xf4   :  { %v1045_v37 = vsel %vm1044_vm15, 1, %v6713_v39  ;;  %v4288_v12 = vor.u32 %v1152_v62, %v1151_v58  ;;  %vm1166_vm2 = vcmp.lt.s32.totalorder %v4255_v21, 1  ;;  %vm1168_vm3 = vcmp.lt.s32.totalorder %v4255_v21, 3 }
  0xf5   :  { %v1179_v33 = vsel %vm1169_vm0, %v1165_v59, 1326507024  ;;  %v1023_v16 = vsel %vm1022_vm1, 1, %v6713_v39  ;;  %vm1048_vm7 = vc.u32 %v4275_v6, %v6638_v23  ;;  %v1142_v18 = vor.u32 8388608, %v1141_v14 }
  0xf6   :  { %v1175_v5 = vsel %vm1169_vm0, %v1162_v19, 920167782  ;;  %v4302_v1 = vmul.f32 %v4244_v36, %v4244_v36  ;;  %v882_v28 = vadd.s32 %v4024_v57, %v4019_v17  ;;  %v4309_v59 = vsel %vm2969_vm14, 0, %v4213_v40 }
  0xf7   :  { %vm1026_vm9 = vc.u32 %v1024_v3, %v1020_v48  ;;  %v1047_v14 = vadd.s32 %v1045_v37, %v1039_v56  ;;  %vm1167_vm10 = vcmp.lt.s32.totalorder %v4255_v21, 2  ;;  %v1178_v7 = vsel %vm1166_vm2, %v4282_v32, %v4284_v53 }
  0xf8   :  { %v1180_v17 = vsel %vm1168_vm3, %v1162_v19, %v1179_v33  ;;  %v1025_v57 = vadd.s32 %v1023_v16, %v1017_v60  ;;  %v1049_v40 = vsel %vm1048_vm7, 1, %v6713_v39  ;;  %v1174_v3 = vsel %vm1166_vm2, %v4288_v12, %v4282_v32 }
  0xf9   :  { %v1176_v37 = vsel %vm1168_vm3, %v4284_v53, %v1175_v5  ;;  %v4329_v56 = vmul.f32 -0.001358992, %v4302_v1  ;;  %v1027_v48 = vsel %vm1026_vm9, 1, %v6713_v39  ;;  %v4332_v25 = vshll.u32 %v1142_v18, 8 }
  0xfa   :  { %v1295_v19 = vadd.f32 %v1294_v10, %v1291_v54  ;;  %v902_v60 = vsub.s32 4294967266, %v4309_v59  ;;  %v1041_v42 = vshrl.u32 %v4220_v34, 16  ;;  %v4338_v15 = vsel %vm1167_vm10, %v1178_v7, %v1180_v17 }
  0xfb   :  { %v1297_v46 = vstv %s4279_s16  ;;  %v1051_v13 = vadd.s32 %v1049_v40, %v1047_v14  ;;  %v4343_v0 = vsel %vm1167_vm10, %v1174_v3, %v1176_v37  ;;  %v1301_v62 = vstv %s4286_s17  ;;  %s5491_s16 = sld [smem:[#allocation3 + $0x35]] }
  0xfc   :  { %v1298_v58 = vmul.f32 %v3919_v52, %v1297_v46  ;;  %v751_v54 = vmul.f32 -0.00019511016, %v4302_v1  ;;  %v1019_v10 = vshrl.u32 %v4238_v26, 16  ;;  %v1029_v33 = vadd.s32 %v1027_v48, %v1025_v57  ;;  %s5564_s17 = sld [smem:[#allocation3 + $0x36]] }
  0xfd   :  { %v1302_v34 = vmul.f32 %v3941_v45, %v1301_v62  ;;  %v977_v16 = vshrl.u32 %v6712_v30, %v4091_v22  ;;  %v1183_v18 = vand.u32 65535, %v4332_v25  ;;  %v1186_v5 = vshrl.u32 %v4338_v15, 16 }
  0xfe   :  { %v1299_v14 = vadd.f32 %v1298_v58, %v1295_v19  ;;  %v898_v7 = vsub.s32 32, %v4309_v59  ;;  %v903_v17 = vadd.s32 127, %v902_v60  ;;  %v1208_v26 = vshrl.u32 %v4343_v0, 16 }
  0xff   :  { %v1305_v57 = vstv %s4311_s18  ;;  %v998_v40 = vsel %vm996_vm5, %v4136_v4, 2102212464  ;;  %v1043_v3 = vshrl.u32 %v4253_v43, 16  ;;  %v1052_v22 = vadd.s32 %v1051_v13, %v1041_v42  ;;  %s5615_s18 = sld [smem:[#allocation3 + $0x37]] }
 0x100   :  { %v1303_v37 = vadd.f32 %v1302_v34, %v1299_v14  ;;  %v1021_v48 = vshrl.u32 %v4260_v38, 16  ;;  %v1030_v46 = vadd.s32 %v1029_v33, %v1019_v10  ;;  %v1184_v19 = vshrl.u32 %v4332_v25, 16 }
 0x101   :  { %v1185_v58 = vand.u32 65535, %v4338_v15  ;;  %v4368_v62 = vadd.f32 0.008332121, %v751_v54  ;;  %v899_v60 = vshll.u32 %v4126_v27, %v4309_v59  ;;  %v4372_v23 = vmul.u32 %v1186_v5, %v1183_v18 }
 0x102   :  { %v4374_v36 = vadd.f32 %v1305_v57, %v1303_v37  ;;  %v900_v4 = vshrl.u32 %v882_v28, %v898_v7  ;;  %v997_v38 = vsel %vm993_vm6, %v977_v16, %v4132_v9  ;;  %v1207_v42 = vand.u32 65535, %v4343_v0 }
 0x103   :  { %v4382_v15 = vmul.u32 %v1208_v26, %v1183_v18  ;;  %v904_v13 = vshll.u32 %v903_v17, 23  ;;  %v999_v27 = vsel %vm995_vm4, %v4134_v55, %v998_v40  ;;  %v1053_v59 = vadd.s32 %v1052_v22, %v1043_v3 }
 0x104   :  { %6714 = vst [vmem:[#allocation28_spill] sm:$0xff] %v4374_v36  ;;  %v1310_v54 = vand.u32 2139095040, %v4374_v36  ;;  %vm416_vm5 = vcmp.eq.s32.totalorder %v4099_v29, 0  ;;  %v4389_v28 = vadd.s32 %v1030_v46, %v1021_v48  ;;  %v6715_v10 = vshll.u32 %v4253_v43, 16 }
 0x105   :  { %v1187_v0 = vmul.u32 %v1185_v58, %v1183_v18  ;;  %v4396_v33 = vmul.u32 %v1185_v58, %v1184_v19  ;;  %v1191_v34 = vshll.u32 %v4372_v23, 16  ;;  %v1463_v14 = vstv %s4350_s19  ;;  %s5686_s19 = sld [smem:[#allocation7 + $0xd]] }
 0x106   :  { %v4394_v9 = vadd.s32 %v4275_v6, %v6715_v10  ;;  %v1311_v16 = vshrl.u32 %v1310_v54, 23  ;;  %v1466_v55 = vstv %s4356_s20  ;;  %v901_v7 = vor.u32 %v900_v4, %v899_v60  ;;  %s5809_s20 = sld [smem:[#allocation3 + $0x38]] }
 0x107   :  { %v1209_v17 = vmul.u32 %v1207_v42, %v1183_v18  ;;  %v4403_v57 = vmul.u32 %v1207_v42, %v1184_v19  ;;  %v1213_v43 = vshll.u32 %v4382_v15, 16  ;;  %v905_v40 = vor.u32 4788187, %v904_v13 }
 0x108   :  { %v1000_v6 = vsel %vm994_vm8, %v997_v38, %v999_v27  ;;  %v1057_v3 = vadd.s32 1, %v1053_v59  ;;  %v2991_v22 = vadd.s32 4294967169, %v1311_v16  ;;  %vm1056_vm6 = vc.u32 %v4389_v28, %v4394_v9 }
 0x109   :  { %v1193_v37 = vshll.u32 %v4396_v33, 16  ;;  %v1464_v48 = vmul.f32 %v3900_v44, %v1463_v14  ;;  %v1467_v46 = vmul.f32 %v3903_v61, %v1466_v55  ;;  %vm1195_vm4 = vc.u32 %v1187_v0, %v1191_v34 }
 0x10a   :  { %v1197_v18 = vadd.s32 %v1191_v34, %v1187_v0  ;;  %v1317_v58 = vadd.s32 1, %v2991_v22  ;;  %v1470_v60 = vstv %s4376_s21  ;;  %v1054_v4 = vmul.u32 %v4173_v31, %v1000_v6  ;;  %s5824_s21 = sld [smem:[#allocation3 + $0x39]] }
 0x10b   :  { %v1215_v2 = vshll.u32 %v4403_v57, 16  ;;  %vm1217_vm8 = vc.u32 %v1209_v17, %v1213_v43  ;;  %v4416_v38 = vadd.s32 %v1213_v43, %v1209_v17  ;;  %v1058_v42 = vsel %vm1056_vm6, %v1057_v3, %v1053_v59 }
 0x10c   :  { %v1190_v13 = vmul.u32 %v1186_v5, %v1184_v19  ;;  %v1212_v27 = vmul.u32 %v1208_v26, %v1184_v19  ;;  %vm1318_vm12 = vcmp.gt.s32.totalorder %v1317_v58, 0  ;;  %v1196_v44 = vsel %vm1195_vm4, 1, %v6713_v39 }
 0x10d   :  { %v1319_v54 = vsel %vm1318_vm12, %v1317_v58, 0  ;;  %v1468_v61 = vadd.f32 %v1467_v46, %v1464_v48  ;;  %v1471_v10 = vmul.f32 %v3919_v52, %v1470_v60  ;;  %vm1199_vm14 = vc.u32 %v1197_v18, %v1193_v37 }
 0x10e   :  { %v1218_v0 = vsel %vm1217_vm8, 1, %v6713_v39  ;;  %v1321_v34 = vand.u32 31, %v1319_v54  ;;  %v1474_v31 = vstv %s4401_s22  ;;  %v906_v16 = vand.u32 2147483647, %v905_v40  ;;  %s5859_s22 = sld [smem:[#allocation3 + $0x3a]] }
 0x10f   :  { %v908_v14 = vcvt.s32.f32 %v901_v7  ;;  %v4422_v55 = vadd.s32 %v1058_v42, %v1054_v4  ;;  %vm1221_vm15 = vc.u32 %v4416_v38, %v1215_v2  ;;  %v6716_v5 = vxor.u32 2147483648, %v4186_v24 }
 0x110   :  { %v4435_v52 = vadd.f32 1.0, %v4230_v49  ;;  %v4438_v19 = vand.u32 3, %v4232_v47  ;;  %v1198_v59 = vadd.s32 %v1196_v44, %v1190_v13  ;;  %v1200_v7 = vsel %vm1199_vm14, 1, %v6713_v39 }
 0x111   :  { %v4432_v26 = vsel %vm416_vm5, %v4175_v51, %v6716_v5  ;;  %v1220_v17 = vadd.s32 %v1218_v0, %v1212_v27  ;;  %v1472_v43 = vadd.f32 %v1471_v10, %v1468_v61  ;;  %v1475_v24 = vmul.f32 %v3941_v45, %v1474_v31 }
 0x112   :  { %v4446_v40 = vmul.f32 %v4235_v11, %v4076_v41  ;;  %v4449_v51 = vadd.f32 0.041655596, %v4329_v56  ;;  %v1222_v49 = vsel %vm1221_vm15, 1, %v6713_v39  ;;  %v4452_v47 = vsub.s32 32, %v1321_v34 }
 0x113   :  { %v4456_v6 = vmul.f32 %v4368_v62, %v4302_v1  ;;  %v4458_v3 = vmul.f32 %v908_v14, %v906_v16  ;;  %v1060_v22 = vadd.s32 536870912, %v4422_v55  ;;  %v1150_v45 = vshrl.u32 %v6712_v30, %v4222_v63 }
 0x114   :  { %v1192_v41 = vshrl.u32 %v4372_v23, 16  ;;  %v1202_v11 = vadd.s32 %v1200_v7, %v1198_v59  ;;  %v1214_v56 = vshrl.u32 %v4382_v15, 16  ;;  %v6640_v37 = vand.u32 2147483647, %v4374_v36 }
 0x115   :  { %v1224_v48 = vadd.s32 %v1222_v49, %v1220_v17  ;;  %v1324_v46 = vshll.u32 %v6712_v30, %v1321_v34  ;;  %v1327_v62 = vshll.u32 %v6711_v50, %v1321_v34  ;;  %v1476_v18 = vadd.f32 %v1475_v24, %v1472_v43 }
 0x116   :  { %v1325_v58 = vshrl.u32 %v6711_v50, %v4452_v47  ;;  %v1328_v63 = vshrl.u32 %v6703_v35, %v4452_v47  ;;  %v6717_v60 = vmov 2102212464   ;;  %v1334_v15 = vshrl.u32 %v6688_v8, %v4452_v47 }
 0x117   :  { %v1333_v23 = vshll.u32 %v6717_v60, %v1321_v34  ;;  %v4475_v4 = vshrl.u32 %v1319_v54, 5  ;;  %v1330_v42 = vshll.u32 %v6703_v35, %v1321_v34  ;;  %v1331_v13 = vshrl.u32 %v6717_v60, %v4452_v47 }
 0x118   :  { %v1336_v27 = vshll.u32 %v6688_v8, %v1321_v34  ;;  %v4481_v44 = vshrl.u32 %v1060_v22, 30  ;;  %v1314_v61 = vand.u32 8388607, %v6640_v37  ;;  %v1337_v10 = vshrl.u32 %v6689_v20, %v4452_v47 }
 0x119   :  { %v1478_v0 = vstv %s4440_s23  ;;  %v1171_v54 = vsel %vm1169_vm0, %v4284_v53, 2102212464  ;;  %v1194_v31 = vshrl.u32 %v4396_v33, 16  ;;  %v1216_v16 = vshrl.u32 %v4403_v57, 16  ;;  %s5882_s23 = sld [smem:[#allocation3 + $0x3b]] }
 0x11a   :  { %v1225_v14 = vadd.s32 %v1224_v48, %v1214_v56  ;;  %vm592_vm1 = vcmp.eq.s32.totalorder %v4438_v19, 2  ;;  %v1203_v34 = vadd.s32 %v1202_v11, %v1192_v41  ;;  %v4494_v5 = vor.u32 %v1325_v58, %v1324_v46  ;;  %v6719_v58 = vld [vmem:[#allocation20_spill] sm:$0xff] }
 0x11b   :  { %v4496_v59 = vor.u32 %v1328_v63, %v1327_v62  ;;  %v1335_v7 = vor.u32 %v1334_v15, %v1333_v23  ;;  %v4498_v17 = vor.u32 %v1331_v13, %v1330_v42  ;;  %v1338_v43 = vor.u32 %v1337_v10, %v1336_v27  ;;  %v6720_v10 = vld [vmem:[#allocation16_spill] sm:$0xff] }
 0x11c   :  { %vm1339_vm7 = vcmp.lt.s32.totalorder %v4475_v4, 1  ;;  %v4501_v24 = vadd.f32 %v1478_v0, %v1476_v18  ;;  %v1170_v53 = vsel %vm1166_vm2, %v1150_v45, %v4288_v12  ;;  %v1315_v33 = vor.u32 8388608, %v1314_v61 }
 0x11d   :  { %vm1341_vm0 = vcmp.lt.s32.totalorder %v4475_v4, 3  ;;  %vm1342_vm9 = vcmp.lt.s32.totalorder %v4475_v4, 4  ;;  %v1062_v49 = vshll.u32 %v4481_v44, 30  ;;  %v1172_v22 = vsel %vm1168_vm3, %v4282_v32, %v1171_v54 }
 0x11e   :  { %6718 = vst [vmem:[#allocation29_spill] sm:$0xff] %v4501_v24  ;;  %v4515_v41 = vadd.s32 %v4416_v38, %v1215_v2  ;;  %v1226_v11 = vadd.s32 %v1225_v14, %v1216_v16  ;;  %vm415_vm5 = vcmp.lt.s32.totalorder %v4099_v29, 2  ;;  %v4518_v12 = vadd.s32 %v1203_v34, %v1194_v31 }
 0x11f   :  { %vm1340_vm2 = vcmp.lt.s32.totalorder %v4475_v4, 2  ;;  %v1347_v45 = vsel %vm1339_vm7, %v4494_v5, %v4496_v59  ;;  %v1348_v32 = vsel %vm1342_vm9, %v1335_v7, 920167782  ;;  %vm588_vm3 = vcmp.lt.s32.totalorder %v4438_v19, 2 }
 0x120   :  { %v1349_v57 = vsel %vm1341_vm0, %v4498_v17, %v1348_v32  ;;  %v1351_v2 = vsel %vm1339_vm7, %v4496_v59, %v4498_v17  ;;  %v1352_v38 = vsel %vm1342_vm9, %v1338_v43, 1326507024  ;;  %v1483_v56 = vand.u32 2139095040, %v4501_v24 }
 0x121   :  { %v590_v48 = vxor.u32 2147483648, %v4446_v40  ;;  %v593_v46 = vxor.u32 2147483648, %v4435_v52  ;;  %v1353_v62 = vsel %vm1341_vm0, %v1335_v7, %v1352_v38  ;;  %v4542_v18 = vshll.u32 %v1315_v33, 8  ;;  %v6726_v38 = vld [vmem:[#allocation26_spill] sm:$0xff] }
 0x122   :  { %v739_v63 = vsub.s32 4, %v6719_v58  ;;  %v1173_v23 = vsel %vm1167_vm10, %v1170_v53, %v1172_v22  ;;  %v1230_v15 = vadd.s32 1, %v1226_v11  ;;  %v4549_v42 = vsel %vm1340_vm2, %v1347_v45, %v1349_v57 }
 0x123   :  { %v746_v13 = vmul.f32 %v4449_v51, %v4302_v1  ;;  %v754_v27 = vadd.f32 -0.16666654, %v4456_v6  ;;  %vm1229_vm6 = vc.u32 %v4518_v12, %v4515_v41  ;;  %v4558_v61 = vsel %vm1340_vm2, %v1351_v2, %v1353_v62  ;;  %v6721_v51 = vld [vmem:[#allocation19_spill] sm:$0xff] }
 0x124   :  { %vm412_vm4 = vweird.f32 %v6720_v10  ;;  %vm589_vm10 = vcmp.eq.s32.totalorder %v4438_v19, 0  ;;  %v910_v21 = vxor.u32 2147483648, %v4458_v3  ;;  %v4564_v0 = vsub.s32 %v4422_v55, %v1062_v49 }
 0x125   :  { %v1484_v54 = vshrl.u32 %v1483_v56, 23  ;;  %vm790_vm8 = vcmp.lt.s32.totalorder %v6721_v51, 0  ;;  %v1227_v6 = vmul.u32 %v4332_v25, %v1173_v23  ;;  %v1356_v31 = vand.u32 65535, %v4542_v18  ;;  %v6725_v25 = vld [vmem:[#allocation18_spill] sm:$0xff] }
 0x126   :  { %v1381_v16 = vshrl.u32 %v4549_v42, 16  ;;  %v594_v14 = vsel %vm592_vm1, %v593_v46, %v4446_v40  ;;  %v6722_v34 = vand.u32 2147483647, %v6721_v51  ;;  %v1231_v55 = vsel %vm1229_vm6, %v1230_v15, %v1226_v11  ;;  %v6729_v15 = vld [vmem:[#allocation23_spill] sm:$0xff] }
 0x127   :  { %v1359_v43 = vshrl.u32 %v4558_v61, 16  ;;  %v591_v53 = vsel %vm589_vm10, %v4435_v52, %v590_v48  ;;  %v740_v33 = vsel %vm617_vm11, %v739_v63, %v6719_v58  ;;  %v747_v49 = vadd.f32 -0.4999988, %v746_v13  ;;  %v6727_v48 = vld [vmem:[#allocation17_spill] sm:$0xff] }
 0x128   :  { %vm4575_vm12 = vcmp.le.f32.partialorder %v6722_v34, 0.7853982  ;;  %v755_v22 = vmul.f32 %v754_v27, %v4302_v1  ;;  %v911_v40 = vsel %vm790_vm8, %v910_v21, %v4458_v3  ;;  %vm1064_vm14 = vcmp.lt.s32.totalorder %v4564_v0, 0 }
 0x129   :  { %v1065_v45 = vsub.s32 0, %v4564_v0  ;;  %v2999_v11 = vadd.s32 4294967169, %v1484_v54  ;;  %v4590_v32 = vadd.s32 %v1231_v55, %v1227_v6  ;;  %v1357_v52 = vshrl.u32 %v4542_v18, 16 }
 0x12a   :  { %v1380_v57 = vand.u32 65535, %v4549_v42  ;;  %v4594_v2 = vmul.u32 %v1381_v16, %v1356_v31  ;;  %v422_v56 = vsel %vm415_vm5, %v4432_v26, %v6726_v38  ;;  %vm585_vm11 = vweird.f32 %v6727_v48 }
 0x12b   :  { %v1358_v3 = vand.u32 65535, %v4558_v61  ;;  %v4602_v46 = vmul.u32 %v1359_v43, %v1356_v31  ;;  %v595_v62 = vsel %vm588_vm3, %v591_v53, %v594_v14  ;;  %v742_v63 = vsel %vm4209_vm13, 0, %v740_v33 }
 0x12c   :  { %v748_v23 = vmul.f32 %v747_v49, %v4302_v1  ;;  %v912_v42 = vsub.s32 4, %v6729_v15  ;;  %v756_v13 = vadd.f32 1.0, %v755_v22  ;;  %v4613_v29 = vsel %vm4575_vm12, %v6721_v51, %v911_v40 }
 0x12d   :  { %v1066_v26 = vsel %vm1064_vm14, %v1065_v45, %v4564_v0  ;;  %v1490_v27 = vadd.s32 1, %v2999_v11  ;;  %v1233_v19 = vadd.s32 536870912, %v4590_v32  ;;  %v1382_v61 = vmul.u32 %v1380_v57, %v1356_v31  ;;  %v6732_v45 = vld [vmem:[#allocation27_spill] sm:$0xff] }
 0x12e   :  { %v4619_v21 = vmul.u32 %v1380_v57, %v1357_v52  ;;  %v1386_v1 = vshll.u32 %v4594_v2, 16  ;;  %v1360_v54 = vmul.u32 %v1358_v3, %v1356_v31  ;;  %v4622_v6 = vmul.u32 %v1358_v3, %v1357_v52 }
 0x12f   :  { %v1364_v14 = vshll.u32 %v4602_v46, 16  ;;  %vm1491_vm13 = vcmp.gt.s32.totalorder %v1490_v27, 0  ;;  %v4627_v34 = vsel %vm412_vm4, nan, %v422_v56  ;;  %v759_v55 = vadd.s32 3, %v742_v63 }
 0x130   :  { %6730 = vst [vmem:[#allocation20_spill] sm:$0xff] %v4627_v34  ;;  %v1067_v53 = vclz %v1066_v26  ;;  %v1492_v33 = vsel %vm1491_vm13, %v1490_v27, 0  ;;  %v4631_v49 = vsel %vm585_vm11, nan, %v595_v62  ;;  %v4633_v22 = vadd.f32 1.0, %v748_v23 }
 0x131   :  { %6731 = vst [vmem:[#allocation16_spill] sm:$0xff] %v4631_v49  ;;  %v4638_v31 = vsel %vm790_vm8, %v912_v42, %v6729_v15  ;;  %v1494_v40 = vand.u32 31, %v1492_v33  ;;  %v4641_v11 = vmul.f32 %v756_v13, %v6732_v45  ;;  %v4645_v10 = vmul.f32 %v4613_v29, %v4613_v29 }
 0x132   :  { %v4647_v57 = vshrl.u32 %v1233_v19, 30  ;;  %vm1390_vm15 = vc.u32 %v1382_v61, %v1386_v1  ;;  %v1366_v38 = vshll.u32 %v4622_v6, 16  ;;  %v1370_v56 = vadd.s32 %v1364_v14, %v1360_v54 }
 0x133   :  { %v6641_v48 = vshll.u32 %v4619_v21, 16  ;;  %v4651_v3 = vadd.s32 %v1386_v1, %v1382_v61  ;;  %v4653_v62 = vand.u32 3, %v759_v55  ;;  %v2976_v58 = vadd.s32 4294967294, %v1067_v53 }
 0x134   :  { %vm1368_vm1 = vc.u32 %v1360_v54, %v1364_v14  ;;  %v1385_v63 = vmul.u32 %v1381_v16, %v1357_v52  ;;  %v1391_v42 = vsel %vm1390_vm15, 1, %v6713_v39  ;;  %v4660_v13 = vsub.s32 32, %v1494_v40 }
 0x135   :  { %v917_v27 = vmul.f32 -0.001358992, %v4645_v10  ;;  %v1235_v19 = vshll.u32 %v4647_v57, 30  ;;  %v1363_v61 = vmul.u32 %v1359_v43, %v1357_v52  ;;  %v4666_v1 = vmul.f32 -0.00019511016, %v4645_v10 }
 0x136   :  { %v1369_v16 = vsel %vm1368_vm1, 1, %v6713_v39  ;;  %vm1372_vm5 = vc.u32 %v1370_v56, %v1366_v38  ;;  %vm1394_vm3 = vc.u32 %v4651_v3, %v6641_v48  ;;  %vm2977_vm6 = vcmp.lt.s32.totalorder %v2976_v58, 0 }
 0x137   :  { %v1393_v54 = vadd.s32 %v1391_v42, %v1385_v63  ;;  %v6644_v14 = vand.u32 2147483647, %v4501_v24  ;;  %v4673_v55 = vshrl.u32 %v1492_v33, 5  ;;  %v1506_v53 = vshll.u32 %v6717_v60, %v1494_v40 }
 0x138   :  { %v1507_v43 = vshrl.u32 %v6688_v8, %v4660_v13  ;;  %v1509_v52 = vshll.u32 %v6688_v8, %v1494_v40  ;;  %v1510_v45 = vshrl.u32 %v6689_v20, %v4660_v13  ;;  %v4682_v38 = vsub.s32 %v4590_v32, %v1235_v19 }
 0x139   :  { %v1371_v56 = vadd.s32 %v1369_v16, %v1363_v61  ;;  %v1373_v63 = vsel %vm1372_vm5, 1, %v6713_v39  ;;  %v1395_v42 = vsel %vm1394_vm3, 1, %v6713_v39  ;;  %v1500_v33 = vshll.u32 %v6711_v50, %v1494_v40 }
 0x13a   :  { %v1501_v37 = vshrl.u32 %v6703_v35, %v4660_v13  ;;  %v1503_v15 = vshll.u32 %v6703_v35, %v1494_v40  ;;  %v1504_v26 = vshrl.u32 %v6717_v60, %v4660_v13  ;;  %v1487_v32 = vand.u32 8388607, %v6644_v14 }
 0x13b   :  { %v1497_v19 = vshll.u32 %v6712_v30, %v1494_v40  ;;  %v1498_v61 = vshrl.u32 %v6711_v50, %v4660_v13  ;;  %v1511_v16 = vor.u32 %v1510_v45, %v1509_v52  ;;  %v1387_v23 = vshrl.u32 %v4594_v2, 16 }
 0x13c   :  { %v1397_v48 = vadd.s32 %v1395_v42, %v1393_v54  ;;  %v1508_v49 = vor.u32 %v1507_v43, %v1506_v53  ;;  %vm1515_vm4 = vcmp.lt.s32.totalorder %v4673_v55, 4  ;;  %v918_v34 = vadd.f32 0.041655596, %v917_v27 }
 0x13d   :  { %v4704_v36 = vsel %vm2977_vm6, 0, %v2976_v58  ;;  %v1365_v14 = vshrl.u32 %v4602_v46, 16  ;;  %v1375_v24 = vadd.s32 %v1373_v63, %v1371_v56  ;;  %vm765_vm10 = vcmp.eq.s32.totalorder %v4653_v62, 2 }
 0x13e   :  { %v1238_v40 = vsub.s32 0, %v4682_v38  ;;  %v1323_v52 = vshrl.u32 %v6712_v30, %v4452_v47  ;;  %v4711_v45 = vor.u32 %v1501_v37, %v1500_v33  ;;  %v4713_v2 = vor.u32 %v1504_v26, %v1503_v15 }
 0x13f   :  { %v4715_v54 = vor.u32 %v1498_v61, %v1497_v19  ;;  %vm1512_vm8 = vcmp.lt.s32.totalorder %v4673_v55, 1  ;;  %vm1514_vm14 = vcmp.lt.s32.totalorder %v4673_v55, 3  ;;  %v1525_v46 = vsel %vm1515_vm4, %v1511_v16, 1326507024 }
 0x140   :  { %v1389_v58 = vshrl.u32 %v4619_v21, 16  ;;  %v1398_v27 = vadd.s32 %v1397_v48, %v1387_v23  ;;  %v1488_v53 = vor.u32 8388608, %v1487_v32  ;;  %v1521_v47 = vsel %vm1515_vm4, %v1508_v49, 920167782 }
 0x141   :  { %v1075_v37 = vsub.s32 4294967266, %v4704_v36  ;;  %vm1237_vm11 = vcmp.lt.s32.totalorder %v4682_v38, 0  ;;  %v1367_v15 = vshrl.u32 %v4622_v6, 16  ;;  %v1376_v26 = vadd.s32 %v1375_v24, %v1365_v14 }
 0x142   :  { %vm762_vm13 = vcmp.eq.s32.totalorder %v4653_v62, 0  ;;  %v1344_v43 = vsel %vm1342_vm9, %v4498_v17, 2102212464  ;;  %vm1513_vm15 = vcmp.lt.s32.totalorder %v4673_v55, 2  ;;  %v1524_v48 = vsel %vm1512_vm8, %v4711_v45, %v4713_v2 }
 0x143   :  { %v1526_v23 = vsel %vm1514_vm14, %v1508_v49, %v1525_v46  ;;  %v1520_v24 = vsel %vm1512_vm8, %v4715_v54, %v4711_v45  ;;  %v1522_v17 = vsel %vm1514_vm14, %v4713_v2, %v1521_v47  ;;  %v1636_v6 = vstv %s4692_s24  ;;  %v4780_v46 = vld [vmem:[#allocation10] sm:$0xf]  ;;  %s5916_s24 = sld [smem:[#allocation7 + $0xe]] }
 0x144   :  { %v1639_v14 = vstv %s4699_s25  ;;  %v1239_v56 = vsel %vm1237_vm11, %v1238_v40, %v4682_v38  ;;  %v1343_v63 = vsel %vm1339_vm7, %v1323_v52, %v4494_v5  ;;  %v1399_v49 = vadd.s32 %v1398_v27, %v1389_v58  ;;  %v4783_v58 = vld [vmem:[#allocation10 + $0x4] sm:$0xf]  ;;  %s6032_s25 = sld [smem:[#allocation3 + $0x3c]] }
 0x145   :  { %v4753_v42 = vshll.u32 %v1488_v53, 8  ;;  %v1345_v33 = vsel %vm1341_vm0, %v4496_v59, %v1344_v43  ;;  %v4758_v32 = vadd.s32 %v1376_v26, %v1367_v15  ;;  %v6733_v19 = vshll.u32 %v4619_v21, 16 }
 0x146   :  { %v4767_v16 = vsel %vm1513_vm15, %v1524_v48, %v1526_v23  ;;  %v925_v5 = vadd.f32 0.008332121, %v4666_v1  ;;  %v1055_v40 = vadd.s32 %v4394_v9, %v4389_v28  ;;  %v1071_v52 = vsub.s32 32, %v4704_v36 }
 0x147   :  { %v4763_v61 = vadd.s32 %v4651_v3, %v6733_v19  ;;  %v4775_v59 = vsel %vm1513_vm15, %v1520_v24, %v1522_v17  ;;  %vm761_vm7 = vcmp.lt.s32.totalorder %v4653_v62, 2  ;;  %v1076_v21 = vadd.s32 127, %v1075_v37 }
 0x148   :  { %v1240_v3 = vclz %v1239_v56  ;;  %v1637_v1 = vmul.f32 %v4780_v46, %v1636_v6  ;;  %v1640_v28 = vmul.f32 %v4783_v58, %v1639_v14  ;;  %v1346_v9 = vsel %vm1340_vm2, %v1343_v63, %v1345_v33 }
 0x149   :  { %v1403_v27 = vadd.s32 1, %v1399_v49  ;;  %v1529_v53 = vand.u32 65535, %v4753_v42  ;;  %v1532_v47 = vshrl.u32 %v4767_v16, 16  ;;  %v6734_v37 = vxor.u32 2147483648, %v4633_v22 }
 0x14a   :  { %v919_v26 = vmul.f32 %v918_v34, %v4645_v10  ;;  %vm1402_vm0 = vc.u32 %v4758_v32, %v4763_v61  ;;  %v1554_v43 = vshrl.u32 %v4775_v59, 16  ;;  %v926_v4 = vmul.f32 %v925_v5, %v4645_v10 }
 0x14b   :  { %v767_v15 = vsel %vm765_vm10, %v6734_v37, %v4641_v11  ;;  %v1072_v48 = vshll.u32 %v4564_v0, %v4704_v36  ;;  %v1073_v23 = vshrl.u32 %v1055_v40, %v1071_v52  ;;  %v1643_v24 = vstv %s4738_s26  ;;  %v4821_v40 = vld [vmem:[#allocation10 + $0x8] sm:$0xf]  ;;  %v4830_v37 = vld [vmem:[#allocation10 + $0xc] sm:$0xf]  ;;  %s6039_s26 = sld [smem:[#allocation3 + $0x3d]] }
 0x14c   :  { %v1077_v17 = vshll.u32 %v1076_v21, 23  ;;  %v2984_v6 = vadd.s32 4294967294, %v1240_v3  ;;  %v1400_v14 = vmul.u32 %v4542_v18, %v1346_v9  ;;  %v1641_v34 = vadd.f32 %v1640_v28, %v1637_v1  ;;  %6736 = vst [vmem:[#allocation19_spill] sm:$0xff] %v4830_v37 }
 0x14d   :  { %vm758_vm9 = vweird.f32 %v6725_v25  ;;  %v1404_v56 = vsel %vm1402_vm0, %v1403_v27, %v1399_v49  ;;  %v1530_v63 = vshrl.u32 %v4753_v42, 16  ;;  %v1531_v33 = vand.u32 65535, %v4767_v16 }
 0x14e   :  { %v4809_v19 = vmul.u32 %v1532_v47, %v1529_v53  ;;  %v6735_v5 = vxor.u32 2147483648, %v4641_v11  ;;  %v1553_v0 = vand.u32 65535, %v4775_v59  ;;  %v4819_v18 = vmul.u32 %v1554_v43, %v1529_v53 }
 0x14f   :  { %v1644_v49 = vmul.f32 %v4821_v40, %v1643_v24  ;;  %v920_v52 = vadd.f32 -0.4999988, %v919_v26  ;;  %v927_v16 = vadd.f32 -0.16666654, %v926_v4  ;;  %v1074_v21 = vor.u32 %v1073_v23, %v1072_v48 }
 0x150   :  { %v764_v36 = vsel %vm762_vm13, %v4633_v22, %v6735_v5  ;;  %v1647_v3 = vstv %s4777_s27  ;;  %v1078_v11 = vor.u32 4788187, %v1077_v17  ;;  %vm2985_vm2 = vcmp.lt.s32.totalorder %v2984_v6, 0  ;;  %s6059_s27 = sld [smem:[#allocation3 + $0x3e]] }
 0x151   :  { %v4825_v1 = vadd.s32 %v1404_v56, %v1400_v14  ;;  %v1645_v22 = vadd.f32 %v1644_v49, %v1641_v34  ;;  %v1533_v28 = vmul.u32 %v1531_v33, %v1529_v53  ;;  %v4827_v9 = vmul.u32 %v1531_v33, %v1530_v63 }
 0x152   :  { %v1537_v27 = vshll.u32 %v4809_v19, 16  ;;  %v1648_v5 = vmul.f32 %v4830_v37, %v1647_v3  ;;  %v1555_v24 = vmul.u32 %v1553_v0, %v1529_v53  ;;  %v4833_v26 = vmul.u32 %v1553_v0, %v1530_v63 }
 0x153   :  { %v1559_v4 = vshll.u32 %v4819_v18, 16  ;;  %v1651_v48 = vstv %s4799_s28  ;;  %v768_v23 = vsel %vm761_vm7, %v764_v36, %v767_v15  ;;  %v921_v17 = vmul.f32 %v920_v52, %v4645_v10  ;;  %s6085_s28 = sld [smem:[#allocation3 + $0x3f]] }
 0x154   :  { %v6737_v14 = vsel %vm4575_vm12, 0, %v4638_v31  ;;  %v1649_v56 = vadd.f32 %v1648_v5, %v1645_v22  ;;  %v928_v53 = vmul.f32 %v927_v16, %v4645_v10  ;;  %v1079_v33 = vand.u32 2147483647, %v1078_v11  ;;  %v6739_v10 = vld [vmem:[#allocation21_spill] sm:$0xff] }
 0x155   :  { %v932_v34 = vadd.s32 3, %v6737_v14  ;;  %v1081_v0 = vcvt.s32.f32 %v1074_v21  ;;  %v4850_v49 = vsel %vm2985_vm2, 0, %v2984_v6  ;;  %v1539_v62 = vshll.u32 %v4827_v9, 16 }
 0x156   :  { %vm1541_vm1 = vc.u32 %v1533_v28, %v1537_v27  ;;  %v1543_v15 = vadd.s32 %v1537_v27, %v1533_v28  ;;  %v4853_v36 = vadd.f32 %v1651_v48, %v1649_v56  ;;  %v1406_v7 = vadd.s32 536870912, %v4825_v1 }
 0x157   :  { %v1561_v31 = vshll.u32 %v4833_v26, 16  ;;  %vm1563_vm12 = vc.u32 %v1555_v24, %v1559_v4  ;;  %v4857_v52 = vadd.s32 %v1559_v4, %v1555_v24  ;;  %v4859_v3 = vand.u32 3, %v932_v34 }
 0x158   :  { %6738 = vst [vmem:[#allocation18_spill] sm:$0xff] %v4853_v36  ;;  %vm963_vm5 = vcmp.lt.s32.totalorder %v6739_v10, 0  ;;  %v1536_v16 = vmul.u32 %v1532_v47, %v1530_v63  ;;  %v1656_v6 = vand.u32 2139095040, %v4853_v36  ;;  %v4867_v21 = vsel %vm758_vm9, nan, %v768_v23 }
 0x159   :  { %6740 = vst [vmem:[#allocation26_spill] sm:$0xff] %v4867_v21  ;;  %v1082_v11 = vmul.f32 %v1081_v0, %v1079_v33  ;;  %v1542_v22 = vsel %vm1541_vm1, 1, %v6713_v39  ;;  %v1558_v28 = vmul.u32 %v1554_v43, %v1530_v63  ;;  %v1248_v27 = vsub.s32 4294967266, %v4850_v49 }
 0x15a   :  { %vm1545_vm3 = vc.u32 %v1543_v15, %v1539_v62  ;;  %v1564_v47 = vsel %vm1563_vm12, 1, %v6713_v39  ;;  %v1657_v5 = vshrl.u32 %v1656_v6, 23  ;;  %v4874_v24 = vadd.f32 1.0, %v921_v17 }
 0x15b   :  { %v929_v4 = vadd.f32 1.0, %v928_v53  ;;  %v6741_v25 = vand.u32 2147483647, %v6739_v10  ;;  %v4882_v23 = vshrl.u32 %v1406_v7, 30  ;;  %vm1567_vm10 = vc.u32 %v4857_v52, %v1561_v31 }
 0x15c   :  { %v1544_v59 = vadd.s32 %v1542_v22, %v1536_v16  ;;  %v3007_v43 = vadd.s32 4294967169, %v1657_v5  ;;  %v1809_v63 = vstv %s4837_s29  ;;  %v1812_v14 = vstv %s4846_s30  ;;  %s6123_s29 = sld [smem:[#allocation7 + $0xf]] }
 0x15d   :  { %vm4878_vm6 = vcmp.le.f32.partialorder %v6741_v25, 0.7853982  ;;  %v1083_v17 = vxor.u32 2147483648, %v1082_v11  ;;  %v1228_v34 = vadd.s32 %v4515_v41, %v4518_v12  ;;  %v1546_v56 = vsel %vm1545_vm3, 1, %v6713_v39  ;;  %s6340_s30 = sld [smem:[#allocation9]] }
 0x15e   :  { %v1566_v53 = vadd.s32 %v1564_v47, %v1558_v28  ;;  %v1244_v33 = vsub.s32 32, %v4850_v49  ;;  %v1249_v0 = vadd.s32 127, %v1248_v27  ;;  %v1568_v62 = vsel %vm1567_vm10, 1, %v6713_v39 }
 0x15f   :  { %v1663_v15 = vadd.s32 1, %v3007_v43  ;;  %v4897_v7 = vmul.f32 %v929_v4, %v4613_v29  ;;  %v1408_v16 = vshll.u32 %v4882_v23, 30  ;;  %v1810_v6 = vmul.f32 %v4780_v46, %v1809_v63 }
 0x160   :  { %v1813_v22 = vmul.f32 %v4783_v58, %v1812_v14  ;;  %v1538_v41 = vshrl.u32 %v4809_v19, 16  ;;  %v1548_v12 = vadd.s32 %v1546_v56, %v1544_v59  ;;  %v1816_v28 = vstv %s4863_s1  ;;  %s6348_s1 = sld [smem:[#allocation9 + $0x1]] }
 0x161   :  { %vm1664_vm11 = vcmp.gt.s32.totalorder %v1663_v15, 0  ;;  %v1084_v27 = vsel %vm963_vm5, %v1083_v17, %v1082_v11  ;;  %v1560_v47 = vshrl.u32 %v4819_v18, 16  ;;  %v1570_v5 = vadd.s32 %v1568_v62, %v1566_v53 }
 0x162   :  { %v1665_v29 = vsel %vm1664_vm11, %v1663_v15, 0  ;;  %v1245_v4 = vshll.u32 %v4682_v38, %v4850_v49  ;;  %v1246_v25 = vshrl.u32 %v1228_v34, %v1244_v33  ;;  %v1250_v43 = vshll.u32 %v1249_v0, 23 }
 0x163   :  { %v1496_v63 = vshrl.u32 %v6712_v30, %v4660_v13  ;;  %v6647_v19 = vand.u32 2147483647, %v4853_v36  ;;  %v1667_v59 = vand.u32 31, %v1665_v29  ;;  %v1814_v14 = vadd.f32 %v1813_v22, %v1810_v6 }
 0x164   :  { %v1817_v56 = vmul.f32 %v4821_v40, %v1816_v28  ;;  %v4916_v18 = vsub.s32 %v4825_v1, %v1408_v16  ;;  %v1540_v11 = vshrl.u32 %v4827_v9, 16  ;;  %v1549_v17 = vadd.s32 %v1548_v12, %v1538_v41 }
 0x165   :  { %v1820_v38 = vstv %s4889_s6  ;;  %v1517_v13 = vsel %vm1515_vm4, %v4713_v2, 2102212464  ;;  %v1562_v34 = vshrl.u32 %v4833_v26, 16  ;;  %v1571_v53 = vadd.s32 %v1570_v5, %v1560_v47  ;;  %s6359_s6 = sld [smem:[#allocation9 + $0x2]] }
 0x166   :  { %v4928_v33 = vsel %vm4878_vm6, %v6739_v10, %v1084_v27  ;;  %v1247_v1 = vor.u32 %v1246_v25, %v1245_v4  ;;  %v1251_v0 = vor.u32 4788187, %v1250_v43  ;;  %v4930_v62 = vsub.s32 32, %v1667_v59 }
 0x167   :  { %v1516_v9 = vsel %vm1512_vm8, %v1496_v63, %v4715_v54  ;;  %v1660_v15 = vand.u32 8388607, %v6647_v19  ;;  %v1818_v2 = vadd.f32 %v1817_v56, %v1814_v14  ;;  %v1821_v16 = vmul.f32 %v4830_v37, %v1820_v38 }
 0x168   :  { %vm1410_vm4 = vcmp.lt.s32.totalorder %v4916_v18, 0  ;;  %v1411_v6 = vsub.s32 0, %v4916_v18  ;;  %v1518_v22 = vsel %vm1514_vm14, %v4711_v45, %v1517_v13  ;;  %v4943_v41 = vadd.s32 %v1549_v17, %v1540_v11  ;;  %v6746_v13 = vld [vmem:[#allocation22_spill] sm:$0xff] }
 0x169   :  { %v4948_v54 = vadd.s32 %v4857_v52, %v1561_v31  ;;  %v1572_v12 = vadd.s32 %v1571_v53, %v1562_v34  ;;  %v1670_v28 = vshll.u32 %v6712_v30, %v1667_v59  ;;  %v1673_v27 = vshll.u32 %v6711_v50, %v1667_v59 }
 0x16a   :  { %6744 = vst [vmem:[#allocation17_spill] sm:$0xff] %v4943_v41  ;;  %v1671_v47 = vshrl.u32 %v6711_v50, %v4930_v62  ;;  %v1674_v5 = vshrl.u32 %v6703_v35, %v4930_v62  ;;  %v1679_v45 = vshll.u32 %v6717_v60, %v1667_v59  ;;  %v1680_v4 = vshrl.u32 %v6688_v8, %v4930_v62 }
 0x16b   :  { %6745 = vst [vmem:[#allocation25_spill] sm:$0xff] %v4948_v54  ;;  %v1661_v26 = vor.u32 8388608, %v1660_v15  ;;  %v4959_v25 = vshrl.u32 %v1665_v29, 5  ;;  %v1822_v31 = vadd.f32 %v1821_v16, %v1818_v2  ;;  %v1824_v52 = vstv %s4913_s7  ;;  %s6386_s7 = sld [smem:[#allocation9 + $0x3]] }
 0x16c   :  { %v1676_v43 = vshll.u32 %v6703_v35, %v1667_v59  ;;  %v1677_v63 = vshrl.u32 %v6717_v60, %v4930_v62  ;;  %v1682_v14 = vshll.u32 %v6688_v8, %v1667_v59  ;;  %v1683_v56 = vshrl.u32 %v6689_v20, %v4930_v62 }
 0x16d   :  { %v4971_v17 = vmul.f32 %v4928_v33, %v4928_v33  ;;  %v1252_v29 = vand.u32 2147483647, %v1251_v0  ;;  %v1254_v38 = vcvt.s32.f32 %v1247_v1  ;;  %vm1136_vm8 = vcmp.lt.s32.totalorder %v6746_v13, 0 }
 0x16e   :  { %v1412_v34 = vsel %vm1410_vm4, %v1411_v6, %v4916_v18  ;;  %v4977_v53 = vor.u32 %v1671_v47, %v1670_v28  ;;  %v4979_v59 = vor.u32 %v1674_v5, %v1673_v27  ;;  %v1681_v15 = vor.u32 %v1680_v4, %v1679_v45 }
 0x16f   :  { %v1519_v2 = vsel %vm1513_vm15, %v1516_v9, %v1518_v22  ;;  %v1576_v16 = vadd.s32 1, %v1572_v12  ;;  %vm1685_vm14 = vcmp.lt.s32.totalorder %v4959_v25, 1  ;;  %v4984_v19 = vadd.f32 %v1824_v52, %v1822_v31 }
 0x170   :  { %vm1575_vm13 = vc.u32 %v4943_v41, %v4948_v54  ;;  %v4988_v1 = vor.u32 %v1677_v63, %v1676_v43  ;;  %v1684_v0 = vor.u32 %v1683_v56, %v1682_v14  ;;  %v4990_v6 = vshll.u32 %v1661_v26, 8 }
 0x171   :  { %6747 = vst [vmem:[#allocation23_spill] sm:$0xff] %v4984_v19  ;;  %v1255_v28 = vmul.f32 %v1254_v38, %v1252_v29  ;;  %v1413_v27 = vclz %v1412_v34  ;;  %vm1687_vm7 = vcmp.lt.s32.totalorder %v4959_v25, 3  ;;  %vm1688_vm0 = vcmp.lt.s32.totalorder %v4959_v25, 4 }
 0x172   :  { %v1573_v55 = vmul.u32 %v4753_v42, %v1519_v2  ;;  %vm1686_vm15 = vcmp.lt.s32.totalorder %v4959_v25, 2  ;;  %v1693_v9 = vsel %vm1685_vm14, %v4977_v53, %v4979_v59  ;;  %v1694_v22 = vsel %vm1688_vm0, %v1681_v15, 920167782 }
 0x173   :  { %v1090_v47 = vmul.f32 -0.001358992, %v4971_v17  ;;  %v1097_v5 = vmul.f32 -0.00019511016, %v4971_v17  ;;  %v1577_v45 = vsel %vm1575_vm13, %v1576_v16, %v1572_v12  ;;  %v1829_v4 = vand.u32 2139095040, %v4984_v19 }
 0x174   :  { %v1695_v42 = vsel %vm1687_vm7, %v4988_v1, %v1694_v22  ;;  %v1697_v26 = vsel %vm1685_vm14, %v4979_v59, %v4988_v1  ;;  %v1698_v31 = vsel %vm1688_vm0, %v1684_v0, 1326507024  ;;  %v1702_v52 = vand.u32 65535, %v4990_v6 }
 0x175   :  { %v1256_v43 = vxor.u32 2147483648, %v1255_v28  ;;  %v2992_v63 = vadd.s32 4294967294, %v1413_v27  ;;  %v1696_v12 = vsel %vm1686_vm15, %v1693_v9, %v1695_v42  ;;  %v1703_v14 = vshrl.u32 %v4990_v6, 16 }
 0x176   :  { %v5018_v56 = vadd.s32 %v1577_v45, %v1573_v55  ;;  %v1699_v29 = vsel %vm1687_vm7, %v1681_v15, %v1698_v31  ;;  %v1726_v38 = vand.u32 65535, %v1696_v12  ;;  %v1727_v34 = vshrl.u32 %v1696_v12, 16 }
 0x177   :  { %vm935_vm9 = vcmp.eq.s32.totalorder %v4859_v3, 0  ;;  %vm938_vm2 = vcmp.eq.s32.totalorder %v4859_v3, 2  ;;  %v1091_v2 = vadd.f32 0.041655596, %v1090_v47  ;;  %v6748_v16 = vand.u32 2147483647, %v6746_v13 }
 0x178   :  { %v1700_v27 = vsel %vm1686_vm15, %v1697_v26, %v1699_v29  ;;  %v1830_v55 = vshrl.u32 %v1829_v4, 23  ;;  %v1098_v9 = vadd.f32 0.008332121, %v1097_v5  ;;  %v5032_v45 = vmul.u32 %v1727_v34, %v1702_v52 }
 0x179   :  { %vm5026_vm1 = vcmp.le.f32.partialorder %v6748_v16, 0.7853982  ;;  %v1704_v22 = vand.u32 65535, %v1700_v27  ;;  %v1705_v15 = vshrl.u32 %v1700_v27, 16  ;;  %v1257_v42 = vsel %vm1136_vm8, %v1256_v43, %v1255_v28 }
 0x17a   :  { %vm2993_vm12 = vcmp.lt.s32.totalorder %v2992_v63, 0  ;;  %v1728_v47 = vmul.u32 %v1726_v38, %v1702_v52  ;;  %v5036_v31 = vmul.u32 %v1726_v38, %v1703_v14  ;;  %v1579_v12 = vadd.s32 536870912, %v5018_v56 }
 0x17b   :  { %v1706_v16 = vmul.u32 %v1704_v22, %v1702_v52  ;;  %v5039_v49 = vmul.u32 %v1705_v15, %v1702_v52  ;;  %v5041_v11 = vmul.u32 %v1704_v22, %v1703_v14  ;;  %v1085_v5 = vsub.s32 4, %v4481_v44 }
 0x17c   :  { %v1092_v4 = vmul.f32 %v1091_v2, %v4971_v17  ;;  %v1732_v26 = vshll.u32 %v5032_v45, 16  ;;  %v3015_v29 = vadd.s32 4294967169, %v1830_v55  ;;  %vm934_vm3 = vcmp.lt.s32.totalorder %v4859_v3, 2 }
 0x17d   :  { %v1099_v28 = vmul.f32 %v1098_v9, %v4971_v17  ;;  %v5051_v43 = vsel %vm5026_vm1, %v6746_v13, %v1257_v42  ;;  %v1710_v52 = vshll.u32 %v5039_v49, 16  ;;  %v1416_v27 = vsel %vm2993_vm12, 0, %v2992_v63 }
 0x17e   :  { %v1712_v2 = vshll.u32 %v5041_v11, 16  ;;  %vm1736_vm10 = vc.u32 %v1728_v47, %v1732_v26  ;;  %v5057_v22 = vadd.s32 %v1732_v26, %v1728_v47  ;;  %v5059_v55 = vshrl.u32 %v1579_v12, 30 }
 0x17f   :  { %vm1714_vm11 = vc.u32 %v1706_v16, %v1710_v52  ;;  %v1716_v9 = vadd.s32 %v1710_v52, %v1706_v16  ;;  %v1731_v21 = vmul.u32 %v1727_v34, %v1703_v14  ;;  %v1086_v42 = vsel %vm963_vm5, %v1085_v5, %v4481_v44 }
 0x180   :  { %v1709_v36 = vmul.u32 %v1705_v15, %v1703_v14  ;;  %v1737_v37 = vsel %vm1736_vm10, 1, %v6713_v39  ;;  %v1836_v38 = vadd.s32 1, %v3015_v29  ;;  %v1258_v63 = vsub.s32 4, %v4647_v57 }
 0x181   :  { %v1421_v54 = vsub.s32 4294967266, %v1416_v27  ;;  %v1715_v41 = vsel %vm1714_vm11, 1, %v6713_v39  ;;  %v6751_v47 = vshll.u32 %v5036_v31, 16  ;;  %v1093_v12 = vadd.f32 -0.4999988, %v1092_v4 }
 0x182   :  { %v1100_v16 = vadd.f32 -0.16666654, %v1099_v28  ;;  %v5072_v34 = vmul.f32 %v5051_v43, %v5051_v43  ;;  %vm1718_vm5 = vc.u32 %v1716_v9, %v1712_v2  ;;  %v6752_v44 = vxor.u32 2147483648, %v4897_v7 }
 0x183   :  { %vm1740_vm4 = vc.u32 %v5057_v22, %v6751_v47  ;;  %v6753_v15 = vxor.u32 2147483648, %v4874_v24  ;;  %v1581_v4 = vshll.u32 %v5059_v55, 30  ;;  %v1739_v26 = vadd.s32 %v1737_v37, %v1731_v21 }
 0x184   :  { %v937_v14 = vsel %vm935_vm9, %v4874_v24, %v6752_v44  ;;  %v1088_v29 = vsel %vm4878_vm6, 0, %v1086_v42  ;;  %v1717_v28 = vadd.s32 %v1715_v41, %v1709_v36  ;;  %v1741_v52 = vsel %vm1740_vm4, 1, %v6713_v39 }
 0x185   :  { %v940_v5 = vsel %vm938_vm2, %v6753_v15, %v4897_v7  ;;  %vm1837_vm13 = vcmp.gt.s32.totalorder %v1836_v38, 0  ;;  %v1401_v2 = vadd.s32 %v4763_v61, %v4758_v32  ;;  %v1417_v9 = vsub.s32 32, %v1416_v27 }
 0x186   :  { %v1422_v47 = vadd.s32 127, %v1421_v54  ;;  %v1719_v24 = vsel %vm1718_vm5, 1, %v6713_v39  ;;  %v1094_v44 = vmul.f32 %v1093_v12, %v4971_v17  ;;  %v1101_v7 = vmul.f32 %v1100_v16, %v4971_v17 }
 0x187   :  { %v1259_v37 = vsel %vm1136_vm8, %v1258_v63, %v4647_v57  ;;  %v1270_v36 = vmul.f32 -0.00019511016, %v5072_v34  ;;  %v5098_v21 = vsub.s32 %v5018_v56, %v1581_v4  ;;  %v1733_v48 = vshrl.u32 %v5032_v45, 16 }
 0x188   :  { %v1743_v32 = vadd.s32 %v1741_v52, %v1739_v26  ;;  %v1838_v61 = vsel %vm1837_vm13, %v1836_v38, 0  ;;  %v5103_v41 = vsel %vm934_vm3, %v937_v14, %v940_v5  ;;  %v1105_v54 = vadd.s32 3, %v1088_v29 }
 0x189   :  { %v1711_v17 = vshrl.u32 %v5039_v49, 16  ;;  %v1721_v42 = vadd.s32 %v1719_v24, %v1717_v28  ;;  %v1263_v12 = vmul.f32 -0.001358992, %v5072_v34  ;;  %v1418_v57 = vshll.u32 %v4916_v18, %v1416_v27 }
 0x18a   :  { %v1419_v63 = vshrl.u32 %v1401_v2, %v1417_v9  ;;  %v1423_v16 = vshll.u32 %v1422_v47, 23  ;;  %v5108_v56 = vadd.f32 1.0, %v1094_v44  ;;  %v1102_v15 = vadd.f32 1.0, %v1101_v7 }
 0x18b   :  { %v1261_v45 = vsel %vm5026_vm1, 0, %v1259_v37  ;;  %v1840_v38 = vand.u32 31, %v1838_v61  ;;  %v1271_v3 = vadd.f32 0.008332121, %v1270_v36  ;;  %v1584_v14 = vsub.s32 0, %v5098_v21 }
 0x18c   :  { %v1735_v5 = vshrl.u32 %v5036_v31, 16  ;;  %v1744_v49 = vadd.s32 %v1743_v32, %v1733_v48  ;;  %vm1583_vm6 = vcmp.lt.s32.totalorder %v5098_v21, 0  ;;  %v1669_v18 = vshrl.u32 %v6712_v30, %v4930_v62 }
 0x18d   :  { %v1713_v27 = vshrl.u32 %v5041_v11, 16  ;;  %v1722_v4 = vadd.s32 %v1721_v42, %v1711_v17  ;;  %v1264_v26 = vadd.f32 0.041655596, %v1263_v12  ;;  %v1420_v29 = vor.u32 %v1419_v63, %v1418_v57 }
 0x18e   :  { %v1424_v28 = vor.u32 4788187, %v1423_v16  ;;  %v1690_v0 = vsel %vm1688_vm0, %v4988_v1, 2102212464  ;;  %v5122_v52 = vmul.f32 %v1102_v15, %v4928_v33  ;;  %v5124_v2 = vand.u32 3, %v1105_v54 }
 0x18f   :  { %v1112_v9 = vxor.u32 2147483648, %v5108_v56  ;;  %v5127_v47 = vsub.s32 32, %v1840_v38  ;;  %v1272_v62 = vmul.f32 %v1271_v3, %v5072_v34  ;;  %v5130_v11 = vadd.s32 3, %v1261_v45 }
 0x190   :  { %v1585_v24 = vsel %vm1583_vm6, %v1584_v14, %v5098_v21  ;;  %v1745_v44 = vadd.s32 %v1744_v49, %v1735_v5  ;;  %v1689_v33 = vsel %vm1685_vm14, %v1669_v18, %v4977_v53  ;;  %v1691_v1 = vsel %vm1687_vm7, %v4979_v59, %v1690_v0 }
 0x191   :  { %v5141_v7 = vadd.s32 %v1722_v4, %v1713_v27  ;;  %v6754_v37 = vshll.u32 %v5036_v31, 16  ;;  %v1265_v48 = vmul.f32 %v1264_v26, %v5072_v34  ;;  %v1425_v32 = vand.u32 2147483647, %v1424_v28 }
 0x192   :  { %v1427_v54 = vcvt.s32.f32 %v1420_v29  ;;  %v6654_v17 = vand.u32 2147483647, %v4984_v19  ;;  %v1852_v53 = vshll.u32 %v6717_v60, %v1840_v38  ;;  %v1853_v59 = vshrl.u32 %v6688_v8, %v5127_v47 }
 0x193   :  { %v5146_v36 = vadd.s32 %v5057_v22, %v6754_v37  ;;  %v1855_v42 = vshll.u32 %v6688_v8, %v1840_v38  ;;  %v1856_v31 = vshrl.u32 %v6689_v20, %v5127_v47  ;;  %v1586_v22 = vclz %v1585_v24 }
 0x194   :  { %v1692_v12 = vsel %vm1686_vm15, %v1689_v33, %v1691_v1  ;;  %v1749_v57 = vadd.s32 1, %v1745_v44  ;;  %v5160_v63 = vshrl.u32 %v1838_v61, 5  ;;  %vm931_vm8 = vweird.f32 %v6721_v51 }
 0x195   :  { %v1273_v16 = vadd.f32 -0.16666654, %v1272_v62  ;;  %vm1748_vm14 = vc.u32 %v5141_v7, %v5146_v36  ;;  %v1843_v15 = vshll.u32 %v6712_v30, %v1840_v38  ;;  %v1846_v45 = vshll.u32 %v6711_v50, %v1840_v38 }
 0x196   :  { %v1844_v25 = vshrl.u32 %v6711_v50, %v5127_v47  ;;  %v1847_v61 = vshrl.u32 %v6703_v35, %v5127_v47  ;;  %v1849_v3 = vshll.u32 %v6703_v35, %v1840_v38  ;;  %v1850_v14 = vshrl.u32 %v6717_v60, %v5127_v47 }
 0x197   :  { %vm1111_vm7 = vcmp.eq.s32.totalorder %v5124_v2, 2  ;;  %v1428_v5 = vmul.f32 %v1427_v54, %v1425_v32  ;;  %v1746_v49 = vmul.u32 %v4990_v6, %v1692_v12  ;;  %v1854_v18 = vor.u32 %v1853_v59, %v1852_v53 }
 0x198   :  { %v1857_v27 = vor.u32 %v1856_v31, %v1855_v42  ;;  %v3000_v4 = vadd.s32 4294967294, %v1586_v22  ;;  %v1750_v26 = vsel %vm1748_vm14, %v1749_v57, %v1745_v44  ;;  %v1833_v29 = vand.u32 8388607, %v6654_v17 }
 0x199   :  { %vm1861_vm0 = vcmp.lt.s32.totalorder %v5160_v63, 4  ;;  %v1109_v28 = vxor.u32 2147483648, %v5122_v52  ;;  %v1266_v38 = vadd.f32 -0.4999988, %v1265_v48  ;;  %v1982_v0 = vstv %s5133_s8  ;;  %s6410_s8 = sld [smem:[#allocation9 + $0x4]] }
 0x19a   :  { %v1985_v62 = vstv %s5148_s0  ;;  %v5184_v24 = vor.u32 %v1844_v25, %v1843_v15  ;;  %v5186_v33 = vor.u32 %v1847_v61, %v1846_v45  ;;  %v5188_v6 = vor.u32 %v1850_v14, %v1849_v3  ;;  %v6755_v15 = vld [vmem:[#allocation28_spill] sm:$0xff]  ;;  %s6436_s0 = sld [smem:[#allocation9 + $0x5]] }
 0x19b   :  { %vm1858_vm15 = vcmp.lt.s32.totalorder %v5160_v63, 1  ;;  %v5191_v44 = vadd.s32 %v1750_v26, %v1746_v49  ;;  %vm1860_vm9 = vcmp.lt.s32.totalorder %v5160_v63, 3  ;;  %v1867_v1 = vsel %vm1861_vm0, %v1854_v18, 920167782 }
 0x19c   :  { %v1871_v37 = vsel %vm1861_vm0, %v1857_v27, 1326507024  ;;  %v1274_v48 = vmul.f32 %v1273_v16, %v5072_v34  ;;  %v1429_v32 = vxor.u32 2147483648, %v1428_v5  ;;  %vm3001_vm2 = vcmp.lt.s32.totalorder %v3000_v4, 0 }
 0x19d   :  { %v1834_v54 = vor.u32 8388608, %v1833_v29  ;;  %vm1859_vm1 = vcmp.lt.s32.totalorder %v5160_v63, 2  ;;  %v1983_v53 = vmul.f32 %v4780_v46, %v1982_v0  ;;  %v1986_v59 = vmul.f32 %v4783_v58, %v1985_v62 }
 0x19e   :  { %v1989_v42 = vstv %s5167_s9  ;;  %v1866_v31 = vsel %vm1858_vm15, %v5184_v24, %v5186_v33  ;;  %v1868_v22 = vsel %vm1860_vm9, %v5188_v6, %v1867_v1  ;;  %v1870_v12 = vsel %vm1858_vm15, %v5186_v33, %v5188_v6  ;;  %s6463_s9 = sld [smem:[#allocation9 + $0x6]] }
 0x19f   :  { %v1872_v57 = vsel %vm1860_vm9, %v1854_v18, %v1871_v37  ;;  %v1267_v16 = vmul.f32 %v1266_v38, %v5072_v34  ;;  %vm1309_vm12 = vcmp.lt.s32.totalorder %v6755_v15, 0  ;;  %v5220_v45 = vsel %vm3001_vm2, 0, %v3000_v4 }
 0x1a0   :  { %v1752_v25 = vadd.s32 536870912, %v5191_v44  ;;  %v5226_v61 = vsel %vm931_vm8, nan, %v5103_v41  ;;  %vm1108_vm3 = vcmp.eq.s32.totalorder %v5124_v2, 0  ;;  %v1275_v3 = vadd.f32 1.0, %v1274_v48 }
 0x1a1   :  { %6756 = vst [vmem:[#allocation27_spill] sm:$0xff] %v5226_v61  ;;  %v5229_v14 = vshll.u32 %v1834_v54, 8  ;;  %v5235_v34 = vsel %vm1859_vm1, %v1866_v31, %v1868_v22  ;;  %v5239_v49 = vsel %vm1859_vm1, %v1870_v12, %v1872_v57  ;;  %v1987_v18 = vadd.f32 %v1986_v59, %v1983_v53  ;;  %v6762_v57 = vld [vmem:[#allocation19_spill] sm:$0xff] }
 0x1a2   :  { %v1990_v51 = vmul.f32 %v4821_v40, %v1989_v42  ;;  %v5249_v41 = vsel %vm1111_vm7, %v1112_v9, %v5122_v52  ;;  %v6757_v27 = vand.u32 2147483647, %v6755_v15  ;;  %v1430_v26 = vsel %vm1309_vm12, %v1429_v32, %v1428_v5 }
 0x1a3   :  { %v1594_v29 = vsub.s32 4294967266, %v5220_v45  ;;  %v5263_v38 = vsel %vm1108_vm3, %v5108_v56, %v1109_v28  ;;  %v5265_v0 = vadd.f32 1.0, %v1267_v16  ;;  %v5268_v52 = vand.u32 3, %v5130_v11  ;;  %v6760_v11 = vld [vmem:[#allocation17_spill] sm:$0xff] }
 0x1a4   :  { %vm5253_vm10 = vcmp.le.f32.partialorder %v6757_v27, 0.7853982  ;;  %v5270_v9 = vshrl.u32 %v1752_v25, 30  ;;  %v5273_v62 = vmul.f32 %v1275_v3, %v5051_v43  ;;  %v1875_v5 = vand.u32 65535, %v5229_v14  ;;  %v6761_v28 = vld [vmem:[#allocation25_spill] sm:$0xff] }
 0x1a5   :  { %v6656_v1 = vshrl.u32 %v5239_v49, 16  ;;  %v6655_v37 = vshrl.u32 %v5235_v34, 16  ;;  %v1431_v48 = vsub.s32 4, %v4882_v23  ;;  %v5282_v56 = vsel %vm5253_vm10, %v6755_v15, %v1430_v26 }
 0x1a6   :  { %v1574_v32 = vadd.s32 %v6761_v28, %v6760_v11  ;;  %v1991_v54 = vadd.f32 %v1990_v51, %v1987_v18  ;;  %v1590_v43 = vsub.s32 32, %v5220_v45  ;;  %v1595_v53 = vadd.s32 127, %v1594_v29 }
 0x1a7   :  { %v1876_v59 = vshrl.u32 %v5229_v14, 16  ;;  %v1993_v42 = vstv %s5216_s2  ;;  %v1754_v31 = vshll.u32 %v5270_v9, 30  ;;  %v1877_v22 = vand.u32 65535, %v5239_v49  ;;  %s6481_s2 = sld [smem:[#allocation9 + $0x7]] }
 0x1a8   :  { %v1899_v12 = vand.u32 65535, %v5235_v34  ;;  %v1994_v16 = vmul.f32 %v6762_v57, %v1993_v42  ;;  %v5298_v3 = vmul.u32 %v6656_v1, %v1875_v5  ;;  %v5302_v18 = vmul.u32 %v6655_v37, %v1875_v5 }
 0x1a9   :  { %v1997_v51 = vstv %s5231_s10  ;;  %v5308_v27 = vsel %vm1309_vm12, %v1431_v48, %v4882_v23  ;;  %v5312_v26 = vmul.f32 %v5282_v56, %v5282_v56  ;;  %v1591_v29 = vshll.u32 %v5098_v21, %v5220_v45  ;;  %s6495_s10 = sld [smem:[#allocation9 + $0x8]] }
 0x1aa   :  { %v1995_v11 = vadd.f32 %v1994_v16, %v1991_v54  ;;  %v1592_v28 = vshrl.u32 %v1574_v32, %v1590_v43  ;;  %v1596_v42 = vshll.u32 %v1595_v53, 23  ;;  %v2155_v17 = vstv %s5242_s11  ;;  %s6509_s11 = sld [smem:[#allocation9 + $0x9]] }
 0x1ab   :  { %v2158_v25 = vstv %s5260_s4  ;;  %vm1107_vm11 = vcmp.lt.s32.totalorder %v5124_v2, 2  ;;  %v5322_v37 = vsub.s32 %v5191_v44, %v1754_v31  ;;  %v5324_v23 = vmul.u32 %v1877_v22, %v1876_v59  ;;  %s6525_s4 = sld [smem:[#allocation9 + $0xa]] }
 0x1ac   :  { %v1901_v48 = vmul.u32 %v1899_v12, %v1875_v5  ;;  %v5326_v1 = vadd.f32 %v1997_v51, %v1995_v11  ;;  %vm1284_vm4 = vcmp.eq.s32.totalorder %v5268_v52, 2  ;;  %v1879_v21 = vmul.u32 %v1877_v22, %v1875_v5 }
 0x1ad   :  { %v1883_v45 = vshll.u32 %v5298_v3, 16  ;;  %v5330_v32 = vmul.u32 %v1899_v12, %v1876_v59  ;;  %v1905_v54 = vshll.u32 %v5302_v18, 16  ;;  %v1436_v43 = vmul.f32 -0.001358992, %v5312_v26 }
 0x1ae   :  { %6763 = vst [vmem:[#allocation21_spill] sm:$0xff] %v5326_v1  ;;  %v2002_v44 = vand.u32 2139095040, %v5326_v1  ;;  %v2156_v53 = vmul.f32 %v4780_v46, %v2155_v17  ;;  %v2159_v31 = vmul.f32 %v4783_v58, %v2158_v25  ;;  %v1443_v16 = vmul.f32 -0.00019511016, %v5312_v26 }
 0x1af   :  { %v1593_v51 = vor.u32 %v1592_v28, %v1591_v29  ;;  %v1597_v11 = vor.u32 4788187, %v1596_v42  ;;  %v2162_v61 = vstv %s5289_s12  ;;  %vm1756_vm5 = vcmp.lt.s32.totalorder %v5322_v37, 0  ;;  %s6538_s12 = sld [smem:[#allocation9 + $0xb]] }
 0x1b0   :  { %v1757_v5 = vsub.s32 0, %v5322_v37  ;;  %v1885_v22 = vshll.u32 %v5324_v23, 16  ;;  %v2003_v12 = vshrl.u32 %v2002_v44, 23  ;;  %vm5342_vm13 = vc.u32 %v1879_v21, %v1883_v45 }
 0x1b1   :  { %v1889_v46 = vadd.s32 %v1883_v45, %v1879_v21  ;;  %vm5347_vm6 = vc.u32 %v1901_v48, %v1905_v54  ;;  %v5351_v25 = vadd.s32 %v1905_v54, %v1901_v48  ;;  %v2160_v28 = vadd.f32 %v2159_v31, %v2156_v53 }
 0x1b2   :  { %v3023_v29 = vadd.s32 4294967169, %v2003_v12  ;;  %v2163_v42 = vmul.f32 %v4821_v40, %v2162_v61  ;;  %v1434_v44 = vsel %vm5253_vm10, 0, %v5308_v27  ;;  %v1437_v19 = vadd.f32 0.041655596, %v1436_v43 }
 0x1b3   :  { %v1444_v21 = vadd.f32 0.008332121, %v1443_v16  ;;  %v2166_v45 = vstv %s5318_s13  ;;  %v1758_v58 = vsel %vm1756_vm5, %v1757_v5, %v5322_v37  ;;  %v6768_v48 = vshrl.u32 %v5239_v49, 16  ;;  %s6555_s13 = sld [smem:[#allocation9 + $0xc]] }
 0x1b4   :  { %v6769_v53 = vshrl.u32 %v5235_v34, 16  ;;  %v2009_v40 = vadd.s32 1, %v3023_v29  ;;  %v1598_v61 = vand.u32 2147483647, %v1597_v11  ;;  %v1600_v12 = vcvt.s32.f32 %v1593_v51 }
 0x1b5   :  { %v1882_v54 = vmul.u32 %v6768_v48, %v1876_v59  ;;  %v1888_v4 = vsel %vm5342_vm13, 1, %v6713_v39  ;;  %v1910_v27 = vsel %vm5347_vm6, 1, %v6713_v39  ;;  %vm1891_vm8 = vc.u32 %v1889_v46, %v1885_v22  ;;  %v6773_v48 = vld [vmem:[#allocation29_spill] sm:$0xff] }
 0x1b6   :  { %v1904_v31 = vmul.u32 %v6769_v53, %v1876_v59  ;;  %v6770_v43 = vshll.u32 %v5330_v32, 16  ;;  %v2164_v49 = vadd.f32 %v2163_v42, %v2160_v28  ;;  %v2167_v34 = vmul.f32 %v6762_v57, %v2166_v45 }
 0x1b7   :  { %v5381_v59 = vsel %vm1107_vm11, %v5263_v38, %v5249_v41  ;;  %vm1281_vm7 = vcmp.eq.s32.totalorder %v5268_v52, 0  ;;  %v1759_v15 = vclz %v1758_v58  ;;  %vm2010_vm2 = vcmp.gt.s32.totalorder %v2009_v40, 0 }
 0x1b8   :  { %vm1913_vm14 = vc.u32 %v5351_v25, %v6770_v43  ;;  %6771 = vst [vmem:[#allocation22_spill] sm:$0xff] %v5381_v59  ;;  %v1282_v16 = vxor.u32 2147483648, %v5273_v62  ;;  %v6772_v51 = vxor.u32 2147483648, %v5265_v0  ;;  %v1890_v57 = vadd.s32 %v1888_v4, %v1882_v54 }
 0x1b9   :  { %v1912_v5 = vadd.s32 %v1910_v27, %v1904_v31  ;;  %v1451_v22 = vadd.s32 3, %v1434_v44  ;;  %v1892_v2 = vsel %vm1891_vm8, 1, %v6713_v39  ;;  %v1914_v41 = vsel %vm1913_vm14, 1, %v6713_v39 }
 0x1ba   :  { %v5390_v11 = vsel %vm1284_vm4, %v6772_v51, %v5273_v62  ;;  %v2011_v38 = vsel %vm2010_vm2, %v2009_v40, 0  ;;  %v1438_v46 = vmul.f32 %v1437_v19, %v5312_v26  ;;  %v1445_v58 = vmul.f32 %v1444_v21, %v5312_v26 }
 0x1bb   :  { %v1601_v17 = vmul.f32 %v1600_v12, %v1598_v61  ;;  %v2168_v29 = vadd.f32 %v2167_v34, %v2164_v49  ;;  %v3008_v28 = vadd.s32 4294967294, %v1759_v15  ;;  %v6660_v42 = vand.u32 2147483647, %v5326_v1 }
 0x1bc   :  { %v2013_v45 = vand.u32 31, %v2011_v38  ;;  %v2170_v62 = vstv %s5354_s14  ;;  %vm1482_vm12 = vcmp.lt.s32.totalorder %v6773_v48, 0  ;;  %v1884_v44 = vshrl.u32 %v5298_v3, 16  ;;  %s6572_s14 = sld [smem:[#allocation9 + $0xd]] }
 0x1bd   :  { %v1894_v54 = vadd.s32 %v1892_v2, %v1890_v57  ;;  %v1906_v53 = vshrl.u32 %v5302_v18, 16  ;;  %v1916_v31 = vadd.s32 %v1914_v41, %v1912_v5  ;;  %v5404_v19 = vsel %vm1281_vm7, %v5265_v0, %v1282_v16 }
 0x1be   :  { %v5406_v21 = vand.u32 3, %v1451_v22  ;;  %v1604_v40 = vsub.s32 4, %v5059_v55  ;;  %v5409_v61 = vsub.s32 32, %v2013_v45  ;;  %v5411_v12 = vadd.f32 -0.4999988, %v1438_v46 }
 0x1bf   :  { %v5413_v4 = vadd.f32 -0.16666654, %v1445_v58  ;;  %v1602_v3 = vxor.u32 2147483648, %v1601_v17  ;;  %v5415_v27 = vadd.f32 %v2170_v62, %v2168_v29  ;;  %vm3009_vm3 = vcmp.lt.s32.totalorder %v3008_v28, 0 }
 0x1c0   :  { %v1842_v18 = vshrl.u32 %v6712_v30, %v5127_v47  ;;  %v1863_v0 = vsel %vm1861_vm0, %v5188_v6, 2102212464  ;;  %v2006_v43 = vand.u32 8388607, %v6660_v42  ;;  %v6775_v49 = vand.u32 2147483647, %v6773_v48 }
 0x1c1   :  { %6774 = vst [vmem:[#allocation17_spill] sm:$0xff] %v5415_v27  ;;  %v1886_v15 = vshrl.u32 %v5324_v23, 16  ;;  %v1895_v16 = vadd.s32 %v1894_v54, %v1884_v44  ;;  %v1908_v51 = vshrl.u32 %v5330_v32, 16  ;;  %v1917_v57 = vadd.s32 %v1916_v31, %v1906_v53 }
 0x1c2   :  { %vm5426_vm10 = vcmp.le.f32.partialorder %v6775_v49, 0.7853982  ;;  %v2016_v47 = vshll.u32 %v6712_v30, %v2013_v45  ;;  %v2017_v6 = vshrl.u32 %v6711_v50, %v5409_v61  ;;  %v2019_v5 = vshll.u32 %v6711_v50, %v2013_v45 }
 0x1c3   :  { %v2020_v22 = vshrl.u32 %v6703_v35, %v5409_v61  ;;  %v5438_v2 = vshrl.u32 %v2011_v38, 5  ;;  %v2022_v41 = vshll.u32 %v6703_v35, %v2013_v45  ;;  %v2023_v23 = vshrl.u32 %v6717_v60, %v5409_v61 }
 0x1c4   :  { %v2175_v46 = vand.u32 2139095040, %v5415_v27  ;;  %v5445_v58 = vsel %vm3009_vm3, 0, %v3008_v28  ;;  %v1862_v29 = vsel %vm1858_vm15, %v1842_v18, %v5184_v24  ;;  %v1864_v62 = vsel %vm1860_vm9, %v5186_v33, %v1863_v0 }
 0x1c5   :  { %v2007_v38 = vor.u32 8388608, %v2006_v43  ;;  %v5453_v44 = vadd.s32 %v1895_v16, %v1886_v15  ;;  %v6778_v54 = vshll.u32 %v5330_v32, 16  ;;  %v1918_v31 = vadd.s32 %v1917_v57, %v1908_v51 }
 0x1c6   :  { %v2025_v28 = vshll.u32 %v6717_v60, %v2013_v45  ;;  %v5461_v49 = vor.u32 %v2017_v6, %v2016_v47  ;;  %v5463_v42 = vor.u32 %v2020_v22, %v2019_v5  ;;  %v2026_v24 = vshrl.u32 %v6688_v8, %v5409_v61 }
 0x1c7   :  { %v5458_v53 = vadd.s32 %v5351_v25, %v6778_v54  ;;  %v2028_v33 = vshll.u32 %v6688_v8, %v2013_v45  ;;  %v5468_v18 = vor.u32 %v2023_v23, %v2022_v41  ;;  %v2029_v32 = vshrl.u32 %v6689_v20, %v5409_v61 }
 0x1c8   :  { %vm2031_vm0 = vcmp.lt.s32.totalorder %v5438_v2, 1  ;;  %v2176_v25 = vshrl.u32 %v2175_v46, 23  ;;  %v1603_v0 = vsel %vm1482_vm12, %v1602_v3, %v1601_v17  ;;  %v1767_v43 = vsub.s32 4294967266, %v5445_v58 }
 0x1c9   :  { %v1865_v15 = vsel %vm1859_vm1, %v1862_v29, %v1864_v62  ;;  %v5478_v16 = vshll.u32 %v2007_v38, 8  ;;  %v2027_v51 = vor.u32 %v2026_v24, %v2025_v28  ;;  %v2030_v45 = vor.u32 %v2029_v32, %v2028_v33 }
 0x1ca   :  { %vm2033_vm15 = vcmp.lt.s32.totalorder %v5438_v2, 3  ;;  %vm2034_vm9 = vcmp.lt.s32.totalorder %v5438_v2, 4  ;;  %vm1921_vm11 = vc.u32 %v5453_v44, %v5458_v53  ;;  %v1922_v57 = vadd.s32 1, %v1918_v31 }
 0x1cb   :  { %vm2032_vm4 = vcmp.lt.s32.totalorder %v5438_v2, 2  ;;  %v2039_v63 = vsel %vm2031_vm0, %v5461_v49, %v5463_v42  ;;  %v2040_v17 = vsel %vm2034_vm9, %v2027_v51, 920167782  ;;  %v2043_v3 = vsel %vm2031_vm0, %v5463_v42, %v5468_v18 }
 0x1cc   :  { %v2044_v47 = vsel %vm2034_vm9, %v2030_v45, 1326507024  ;;  %v3031_v6 = vadd.s32 4294967169, %v2176_v25  ;;  %v5504_v5 = vsel %vm5426_vm10, %v6773_v48, %v1603_v0  ;;  %v2041_v22 = vsel %vm2033_vm15, %v5468_v18, %v2040_v17 }
 0x1cd   :  { %v2045_v41 = vsel %vm2033_vm15, %v2027_v51, %v2044_v47  ;;  %v2048_v23 = vand.u32 65535, %v5478_v16  ;;  %v1747_v46 = vadd.s32 %v5146_v36, %v5141_v7  ;;  %v1763_v29 = vsub.s32 32, %v5445_v58 }
 0x1ce   :  { %v2042_v62 = vsel %vm2032_vm4, %v2039_v63, %v2041_v22  ;;  %v2046_v38 = vsel %vm2032_vm4, %v2043_v3, %v2045_v41  ;;  %v1768_v54 = vadd.s32 127, %v1767_v43  ;;  %v1919_v28 = vmul.u32 %v5229_v14, %v1865_v15 }
 0x1cf   :  { %v1923_v24 = vsel %vm1921_vm11, %v1922_v57, %v1918_v31  ;;  %v2051_v33 = vshrl.u32 %v2046_v38, 16  ;;  %v2049_v32 = vshrl.u32 %v5478_v16, 16  ;;  %v2050_v7 = vand.u32 65535, %v2046_v38 }
 0x1d0   :  { %v2073_v36 = vshrl.u32 %v2042_v62, 16  ;;  %v2182_v25 = vadd.s32 1, %v3031_v6  ;;  %v5529_v0 = vsel %vm1482_vm12, %v1604_v40, %v5059_v55  ;;  %v5533_v14 = vmul.f32 %v5504_v5, %v5504_v5 }
 0x1d1   :  { %v5535_v31 = vmul.u32 %v2051_v33, %v2048_v23  ;;  %v2072_v43 = vand.u32 65535, %v2042_v62  ;;  %v1440_v15 = vmul.f32 %v5411_v12, %v5312_v26  ;;  %v1764_v51 = vshll.u32 %v5322_v37, %v5445_v58 }
 0x1d2   :  { %v1765_v45 = vshrl.u32 %v1747_v46, %v1763_v29  ;;  %v5541_v57 = vmul.u32 %v2073_v36, %v2048_v23  ;;  %v1609_v63 = vmul.f32 -0.001358992, %v5533_v14  ;;  %v1769_v55 = vshll.u32 %v1768_v54, 23 }
 0x1d3   :  { %v5544_v40 = vadd.s32 %v1923_v24, %v1919_v28  ;;  %v2328_v17 = vstv %s5482_s15  ;;  %v2052_v3 = vmul.u32 %v2050_v7, %v2048_v23  ;;  %v5547_v47 = vmul.u32 %v2050_v7, %v2049_v32  ;;  %s6577_s15 = sld [smem:[#allocation9 + $0xe]] }
 0x1d4   :  { %vm2183_vm1 = vcmp.gt.s32.totalorder %v2182_v25, 0  ;;  %v2331_v6 = vstv %s5491_s16  ;;  %v2056_v22 = vshll.u32 %v5535_v31, 16  ;;  %v2074_v12 = vmul.u32 %v2072_v43, %v2048_v23  ;;  %s3072_s16 = sld [smem:[#allocation9 + $0xf]] }
 0x1d5   :  { %v5551_v41 = vmul.u32 %v2072_v43, %v2049_v32  ;;  %v2078_v37 = vshll.u32 %v5541_v57, 16  ;;  %v5556_v58 = vmul.f32 %v5413_v4, %v5312_v26  ;;  %v1616_v29 = vmul.f32 -0.00019511016, %v5533_v14  ;;  %v5574_v4 = vld [vmem:[#allocation10] sm:$0xf] }
 0x1d6   :  { %v5562_v62 = vor.u32 %v1765_v45, %v1764_v51  ;;  %v5566_v38 = vor.u32 4788187, %v1769_v55  ;;  %v1925_v23 = vadd.s32 536870912, %v5544_v40  ;;  %v2184_v28 = vsel %vm2183_vm1, %v2182_v25, 0  ;;  %6779 = vst [vmem:[#allocation25_spill] sm:$0xff] %v5574_v4 }
 0x1d7   :  { %v5570_v24 = vadd.f32 1.0, %v1440_v15  ;;  %v5572_v26 = vadd.f32 0.041655596, %v1609_v63  ;;  %v2329_v7 = vmul.f32 %v5574_v4, %v2328_v17  ;;  %v5577_v43 = vld [vmem:[#allocation10 + $0x4] sm:$0xf]  ;;  %v2058_v45 = vshll.u32 %v5547_v47, 16 }
 0x1d8   :  { %6780 = vst [vmem:[#allocation19_spill] sm:$0xff] %v5577_v43  ;;  %v2332_v51 = vmul.f32 %v5577_v43, %v2331_v6  ;;  %v2062_v55 = vadd.s32 %v2056_v22, %v2052_v3  ;;  %v5582_v1 = vadd.s32 %v2078_v37, %v2074_v12  ;;  %v5584_v25 = vadd.f32 0.008332121, %v1616_v29 }
 0x1d9   :  { %vm2060_vm5 = vc.u32 %v2052_v3, %v2056_v22  ;;  %vm2082_vm13 = vc.u32 %v2074_v12, %v2078_v37  ;;  %v2186_v15 = vand.u32 31, %v2184_v28  ;;  %v5588_v54 = vshrl.u32 %v1925_v23, 30 }
 0x1da   :  { %v6782_v6 = vand.u32 2147483647, %v5415_v27  ;;  %v2055_v43 = vmul.u32 %v2051_v33, %v2049_v32  ;;  %v2077_v4 = vmul.u32 %v2073_v36, %v2049_v32  ;;  %v5594_v59 = vadd.f32 %v2332_v51, %v2329_v7 }
 0x1db   :  { %6781 = vst [vmem:[#allocation30_spill] sm:$0xff] %v5588_v54  ;;  %v5592_v46 = vsub.s32 32, %v2186_v15  ;;  %v2061_v3 = vsel %vm2060_vm5, 1, %v6713_v39  ;;  %vm5597_vm6 = vc.u32 %v2062_v55, %v2058_v45  ;;  %v2083_v12 = vsel %vm2082_vm13, 1, %v6713_v39 }
 0x1dc   :  { %v2179_v48 = vand.u32 8388607, %v6782_v6  ;;  %v6785_v37 = vshll.u32 %v5551_v41, 16  ;;  %v2189_v29 = vshll.u32 %v6712_v30, %v2186_v15  ;;  %v2192_v32 = vshll.u32 %v6711_v50, %v2186_v15 }
 0x1dd   :  { %v2190_v33 = vshrl.u32 %v6711_v50, %v5592_v46  ;;  %v2193_v36 = vshrl.u32 %v6703_v35, %v5592_v46  ;;  %v1927_v23 = vshll.u32 %v5588_v54, 30  ;;  %v5612_v51 = vshrl.u32 %v2184_v28, 5 }
 0x1de   :  { %vm2086_vm8 = vc.u32 %v5582_v1, %v6785_v37  ;;  %v2180_v7 = vor.u32 8388608, %v2179_v48  ;;  %v2335_v45 = vstv %s5564_s17  ;;  %v2063_v55 = vadd.s32 %v2061_v3, %v2055_v43 }
 0x1df   :  { %v2085_v6 = vadd.s32 %v2083_v12, %v2077_v4  ;;  %v2195_v37 = vshll.u32 %v6703_v35, %v2186_v15  ;;  %v2196_v17 = vshrl.u32 %v6717_v60, %v5592_v46  ;;  %v2065_v63 = vsel %vm5597_vm6, 1, %v6713_v39 }
 0x1e0   :  { %v2087_v27 = vsel %vm2086_vm8, 1, %v6713_v39  ;;  %v2198_v48 = vshll.u32 %v6717_v60, %v2186_v15  ;;  %v2199_v28 = vshrl.u32 %v6688_v8, %v5592_v46  ;;  %v5627_v54 = vor.u32 %v2190_v33, %v2189_v29 }
 0x1e1   :  { %v5629_v43 = vor.u32 %v2193_v36, %v2192_v32  ;;  %v2201_v4 = vshll.u32 %v6688_v8, %v2186_v15  ;;  %v2202_v3 = vshrl.u32 %v6689_v20, %v5592_v46  ;;  %v5635_v12 = vsub.s32 %v5544_v40, %v1927_v23  ;;  %v5659_v40 = vld [vmem:[#allocation10 + $0x8] sm:$0xf] }
 0x1e2   :  { %v2015_v22 = vshrl.u32 %v6712_v30, %v5409_v61  ;;  %v2200_v35 = vor.u32 %v2199_v28, %v2198_v48  ;;  %vm2204_vm14 = vcmp.lt.s32.totalorder %v5612_v51, 1  ;;  %v2079_v60 = vshrl.u32 %v5541_v57, 16 }
 0x1e3   :  { %v2089_v29 = vadd.s32 %v2087_v27, %v2085_v6  ;;  %v5641_v33 = vor.u32 %v2196_v17, %v2195_v37  ;;  %vm2207_vm7 = vcmp.lt.s32.totalorder %v5612_v51, 4  ;;  %v2057_v15 = vshrl.u32 %v5535_v31, 16 }
 0x1e4   :  { %v2067_v32 = vadd.s32 %v2065_v63, %v2063_v55  ;;  %v2203_v36 = vor.u32 %v2202_v3, %v2201_v4  ;;  %vm2206_vm2 = vcmp.lt.s32.totalorder %v5612_v51, 3  ;;  %vm2205_vm12 = vcmp.lt.s32.totalorder %v5612_v51, 2 }
 0x1e5   :  { %v2212_v61 = vsel %vm2204_vm14, %v5627_v54, %v5629_v43  ;;  %v2213_v27 = vsel %vm2207_vm7, %v2200_v35, 920167782  ;;  %v5653_v57 = vshll.u32 %v2180_v7, 8  ;;  %vm1929_vm3 = vcmp.lt.s32.totalorder %v5635_v12, 0 }
 0x1e6   :  { %v2036_v31 = vsel %vm2034_vm9, %v5468_v18, 2102212464  ;;  %v2336_v63 = vmul.f32 %v5659_v40, %v2335_v45  ;;  %v2339_v17 = vstv %s5615_s18  ;;  %v2081_v23 = vshrl.u32 %v5551_v41, 16 }
 0x1e7   :  { %v2090_v55 = vadd.s32 %v2089_v29, %v2079_v60  ;;  %v2214_v6 = vsel %vm2206_vm2, %v5641_v33, %v2213_v27  ;;  %v2216_v7 = vsel %vm2204_vm14, %v5629_v43, %v5641_v33  ;;  %v2059_v37 = vshrl.u32 %v5547_v47, 16 }
 0x1e8   :  { %v2068_v18 = vadd.s32 %v2067_v32, %v2057_v15  ;;  %v2215_v48 = vsel %vm2205_vm12, %v2212_v61, %v2214_v6  ;;  %v2217_v45 = vsel %vm2207_vm7, %v2203_v36, 1326507024  ;;  %v1930_v60 = vsub.s32 0, %v5635_v12 }
 0x1e9   :  { %v2035_v28 = vsel %vm2031_vm0, %v2015_v22, %v5461_v49  ;;  %v2218_v4 = vsel %vm2206_vm2, %v2200_v35, %v2217_v45  ;;  %v2221_v3 = vand.u32 65535, %v5653_v57  ;;  %v2222_v29 = vshrl.u32 %v5653_v57, 16 }
 0x1ea   :  { %v2219_v47 = vsel %vm2205_vm12, %v2216_v7, %v2218_v4  ;;  %v2245_v15 = vand.u32 65535, %v2215_v48  ;;  %v2246_v32 = vshrl.u32 %v2215_v48, 16  ;;  %v2037_v36 = vsel %vm2033_vm15, %v5463_v42, %v2036_v31 }
 0x1eb   :  { %v2091_v61 = vadd.s32 %v2090_v55, %v2081_v23  ;;  %v2223_v49 = vand.u32 65535, %v2219_v47  ;;  %v2224_v22 = vshrl.u32 %v2219_v47, 16  ;;  %v6786_v35 = vand.u32 2147483647, %v5566_v38  ;;  %v5710_v23 = vld [vmem:[#allocation10 + $0xc] sm:$0xf] }
 0x1ec   :  { %v6787_v27 = vcvt.s32.f32 %v5562_v62  ;;  %v5695_v45 = vadd.s32 %v2068_v18, %v2059_v37  ;;  %v6788_v7 = vshll.u32 %v5551_v41, 16  ;;  %v5702_v4 = vmul.u32 %v2246_v32, %v2221_v3 }
 0x1ed   :  { %v1931_v42 = vsel %vm1929_vm3, %v1930_v60, %v5635_v12  ;;  %v5707_v31 = vmul.u32 %v2224_v22, %v2221_v3  ;;  %v2337_v38 = vadd.f32 %v2336_v63, %v5594_v59  ;;  %v2340_v62 = vmul.f32 %v5710_v23, %v2339_v17 }
 0x1ee   :  { %v1774_v6 = vmul.f32 %v6787_v27, %v6786_v35  ;;  %v5700_v48 = vadd.s32 %v5582_v1, %v6788_v7  ;;  %v2038_v41 = vsel %vm2032_vm4, %v2035_v28, %v2037_v36  ;;  %v2247_v55 = vmul.u32 %v2245_v15, %v2221_v3 }
 0x1ef   :  { %v5715_v1 = vmul.u32 %v2245_v15, %v2222_v29  ;;  %v2251_v37 = vshll.u32 %v5702_v4, 16  ;;  %v2095_v18 = vadd.s32 1, %v2091_v61  ;;  %v2225_v47 = vmul.u32 %v2223_v49, %v2221_v3 }
 0x1f0   :  { %6789 = vst [vmem:[#allocation31_spill] sm:$0xff] %v5700_v48  ;;  %v5718_v60 = vmul.u32 %v2223_v49, %v2222_v29  ;;  %v2229_v35 = vshll.u32 %v5707_v31, 16  ;;  %vm1280_vm0 = vcmp.lt.s32.totalorder %v5268_v52, 2  ;;  %v1448_v59 = vadd.f32 1.0, %v5556_v58 }
 0x1f1   :  { %v1611_v2 = vmul.f32 %v5572_v26, %v5533_v14  ;;  %v1932_v63 = vclz %v1931_v42  ;;  %vm2094_vm15 = vc.u32 %v5695_v45, %v5700_v48  ;;  %v1618_v17 = vmul.f32 %v5584_v25, %v5533_v14  ;;  %v6790_v25 = vld [vmem:[#allocation18_spill] sm:$0xff] }
 0x1f2   :  { %v1775_v28 = vxor.u32 2147483648, %v1774_v6  ;;  %v2092_v3 = vmul.u32 %v5478_v16, %v2038_v41  ;;  %v2341_v15 = vadd.f32 %v2340_v62, %v2337_v38  ;;  %vm1454_vm9 = vcmp.eq.s32.totalorder %v5406_v21, 0 }
 0x1f3   :  { %v2253_v36 = vshll.u32 %v5715_v1, 16  ;;  %vm2255_vm11 = vc.u32 %v2247_v55, %v2251_v37  ;;  %v5732_v58 = vadd.s32 %v2251_v37, %v2247_v55  ;;  %v2343_v49 = vstv %s5686_s19  ;;  %s3204_s19 = smov [#allocation11]  }
 0x1f4   :  { %v2096_v26 = vsel %vm2094_vm15, %v2095_v18, %v2091_v61  ;;  %v2231_v27 = vshll.u32 %v5718_v60, 16  ;;  %vm2233_vm4 = vc.u32 %v2225_v47, %v2229_v35  ;;  %v2235_v7 = vadd.s32 %v2229_v35, %v2225_v47 }
 0x1f5   :  { %v1449_v42 = vmul.f32 %v1448_v59, %v5282_v56  ;;  %vm1655_vm1 = vcmp.lt.s32.totalorder %v6790_v25, 0  ;;  %v3016_v48 = vadd.s32 4294967294, %v1932_v63  ;;  %v2250_v16 = vmul.u32 %v2246_v32, %v2222_v29 }
 0x1f6   :  { %v6791_v38 = vsel %vm5426_vm10, 0, %v5529_v0  ;;  %v6792_v41 = vand.u32 2147483647, %v6790_v25  ;;  %v2228_v61 = vmul.u32 %v2224_v22, %v2222_v29  ;;  %v2256_v37 = vsel %vm2255_vm11, 1, %v6713_v39 }
 0x1f7   :  { %v1624_v62 = vadd.s32 3, %v6791_v38  ;;  %v5749_v18 = vadd.s32 %v2096_v26, %v2092_v3  ;;  %v2234_v56 = vsel %vm2233_vm4, 1, %v6713_v39  ;;  %vm2259_vm13 = vc.u32 %v5732_v58, %v2253_v36 }
 0x1f8   :  { %vm5744_vm5 = vcmp.le.f32.partialorder %v6792_v41, 0.7853982  ;;  %v5755_v34 = vadd.f32 %v2343_v49, %v2341_v15  ;;  %v1612_v0 = vadd.f32 -0.4999988, %v1611_v2  ;;  %v1619_v32 = vadd.f32 -0.16666654, %v1618_v17 }
 0x1f9   :  { %v1776_v47 = vsel %vm1655_vm1, %v1775_v28, %v1774_v6  ;;  %vm2237_vm10 = vc.u32 %v2235_v7, %v2231_v27  ;;  %vm1457_vm6 = vcmp.eq.s32.totalorder %v5406_v21, 2  ;;  %v1458_v29 = vxor.u32 2147483648, %v5570_v24 }
 0x1fa   :  { %vm3017_vm8 = vcmp.lt.s32.totalorder %v3016_v48, 0  ;;  %v2258_v22 = vadd.s32 %v2256_v37, %v2250_v16  ;;  %v1455_v35 = vxor.u32 2147483648, %v1449_v42  ;;  %v5761_v59 = vand.u32 3, %v1624_v62 }
 0x1fb   :  { %v2236_v63 = vadd.s32 %v2234_v56, %v2228_v61  ;;  %v2260_v3 = vsel %vm2259_vm13, 1, %v6713_v39  ;;  %v5767_v2 = vsel %vm5744_vm5, %v6790_v25, %v1776_v47  ;;  %v2098_v6 = vadd.s32 536870912, %v5749_v18 }
 0x1fc   :  { %v2238_v17 = vsel %vm2237_vm10, 1, %v6713_v39  ;;  %v2348_v28 = vand.u32 2139095040, %v5755_v34  ;;  %v1287_v15 = vsel %vm1280_vm0, %v5404_v19, %v5390_v11  ;;  %v1613_v49 = vmul.f32 %v1612_v0, %v5533_v14 }
 0x1fd   :  { %v1620_v26 = vmul.f32 %v1619_v32, %v5533_v14  ;;  %v5778_v27 = vsel %vm3017_vm8, 0, %v3016_v48  ;;  %vm1104_vm3 = vweird.f32 %v6739_v10  ;;  %vm1277_vm15 = vweird.f32 %v6746_v13 }
 0x1fe   :  { %vm1453_vm11 = vcmp.lt.s32.totalorder %v5406_v21, 2  ;;  %v1459_v7 = vsel %vm1457_vm6, %v1458_v29, %v1449_v42  ;;  %v2252_v16 = vshrl.u32 %v5702_v4, 16  ;;  %v2262_v38 = vadd.s32 %v2260_v3, %v2258_v22 }
 0x1ff   :  { %v2349_v52 = vshrl.u32 %v2348_v28, 23  ;;  %v1456_v11 = vsel %vm1454_vm9, %v5570_v24, %v1455_v35  ;;  %v5791_v19 = vmul.f32 %v5767_v2, %v5767_v2  ;;  %v2230_v14 = vshrl.u32 %v5707_v31, 16 }
 0x200   :  { %v2240_v48 = vadd.s32 %v2238_v17, %v2236_v63  ;;  %vm1630_vm0 = vcmp.eq.s32.totalorder %v5761_v59, 2  ;;  %v1940_v62 = vsub.s32 4294967266, %v5778_v27  ;;  %v5796_v42 = vshrl.u32 %v2098_v6, 30 }
 0x201   :  { %v3039_v4 = vadd.s32 4294967169, %v2349_v52  ;;  %v5798_v41 = vadd.f32 1.0, %v1613_v49  ;;  %v1621_v61 = vadd.f32 1.0, %v1620_v26  ;;  %v1777_v37 = vsub.s32 4, %v5270_v9 }
 0x202   :  { %v1782_v24 = vmul.f32 -0.001358992, %v5791_v19  ;;  %v2188_v56 = vshrl.u32 %v6712_v30, %v5592_v46  ;;  %v2254_v31 = vshrl.u32 %v5715_v1, 16  ;;  %v2263_v0 = vadd.s32 %v2262_v38, %v2252_v16 }
 0x203   :  { %v2355_v32 = vadd.s32 1, %v3039_v4  ;;  %v1920_v47 = vadd.s32 %v5458_v53, %v5453_v44  ;;  %v1936_v29 = vsub.s32 32, %v5778_v27  ;;  %v2232_v22 = vshrl.u32 %v5718_v60, 16 }
 0x204   :  { %v2241_v35 = vadd.s32 %v2240_v48, %v2230_v14  ;;  %v1941_v63 = vadd.s32 127, %v1940_v62  ;;  %v2100_v3 = vshll.u32 %v5796_v42, 30  ;;  %v2209_v46 = vsel %vm2207_vm7, %v5641_v33, 2102212464  ;;  %v6795_v48 = vld [vmem:[#allocation22_spill] sm:$0xff] }
 0x205   :  { %vm2356_vm9 = vcmp.gt.s32.totalorder %v2355_v32, 0  ;;  %v5816_v6 = vmul.f32 %v1621_v61, %v5504_v5  ;;  %v1631_v44 = vxor.u32 2147483648, %v5798_v41  ;;  %v5822_v53 = vsel %vm1655_vm1, %v1777_v37, %v5270_v9 }
 0x206   :  { %v2357_v60 = vsel %vm2356_vm9, %v2355_v32, 0  ;;  %v1783_v17 = vadd.f32 0.041655596, %v1782_v24  ;;  %v1789_v28 = vmul.f32 -0.00019511016, %v5791_v19  ;;  %v2208_v33 = vsel %vm2204_vm14, %v2188_v56, %v5627_v54 }
 0x207   :  { %v2264_v49 = vadd.s32 %v2263_v0, %v2254_v31  ;;  %v2210_v5 = vsel %vm2206_vm2, %v5629_v43, %v2209_v46  ;;  %v5833_v26 = vadd.s32 %v2241_v35, %v2232_v22  ;;  %v5838_v9 = vadd.s32 %v5732_v58, %v2253_v36  ;;  %v6800_v46 = vld [vmem:[#allocation25_spill] sm:$0xff] }
 0x208   :  { %v2359_v16 = vand.u32 31, %v2357_v60  ;;  %v1937_v38 = vshll.u32 %v5635_v12, %v5778_v27  ;;  %v1938_v52 = vshrl.u32 %v1920_v47, %v1936_v29  ;;  %v1942_v14 = vshll.u32 %v1941_v63, 23 }
 0x209   :  { %v5843_v54 = vsub.s32 %v5749_v18, %v2100_v3  ;;  %v5848_v43 = vsel %vm1104_vm3, nan, %v6795_v48  ;;  %v5852_v1 = vsel %vm1277_vm15, nan, %v1287_v15  ;;  %v5856_v36 = vsel %vm1453_vm11, %v1456_v11, %v1459_v7 }
 0x20a   :  { %6796 = vst [vmem:[#allocation22_spill] sm:$0xff] %v5848_v43  ;;  %v5864_v10 = vsel %vm1630_vm0, %v1631_v44, %v5816_v6  ;;  %v2211_v13 = vsel %vm2205_vm12, %v2208_v33, %v2210_v5  ;;  %v2268_v58 = vadd.s32 1, %v2264_v49  ;;  %v6675_v18 = vand.u32 2147483647, %v5755_v34 }
 0x20b   :  { %6797 = vst [vmem:[#allocation32_spill] sm:$0xff] %v5852_v1  ;;  %v1790_v15 = vadd.f32 0.008332121, %v1789_v28  ;;  %vm2267_vm14 = vc.u32 %v5833_v26, %v5838_v9  ;;  %v5874_v27 = vsub.s32 32, %v2359_v16  ;;  %v1784_v7 = vmul.f32 %v1783_v17, %v5791_v19  ;;  %v6801_v17 = vld [vmem:[#allocation19_spill] sm:$0xff] }
 0x20c   :  { %v1939_v11 = vor.u32 %v1938_v52, %v1937_v38  ;;  %v1943_v62 = vor.u32 4788187, %v1942_v14  ;;  %v2103_v51 = vsub.s32 0, %v5843_v54  ;;  %vm2102_vm7 = vcmp.lt.s32.totalorder %v5843_v54, 0 }
 0x20d   :  { %v2265_v4 = vmul.u32 %v5653_v57, %v2211_v13  ;;  %v2501_v61 = vstv %s5809_s20  ;;  %v2504_v37 = vstv %s5824_s21  ;;  %v2269_v24 = vsel %vm2267_vm14, %v2268_v58, %v2264_v49  ;;  %s2918_s20 = sshll.u32 %s3204_s19, 4  ;;  %s2919_s20 = int_to_ptr.vmem [resolvable:$true] %s2918_s20 }
 0x20e   :  { %v2352_v56 = vand.u32 8388607, %v6675_v18  ;;  %v2362_v31 = vshll.u32 %v6712_v30, %v2359_v16  ;;  %v2365_v0 = vshll.u32 %v6711_v50, %v2359_v16  ;;  %v2363_v32 = vshrl.u32 %v6711_v50, %v5874_v27 }
 0x20f   :  { %v6798_v47 = vmov 2131351028   ;;  %v6799_v57 = vmov 2102212464   ;;  %v2372_v35 = vshrl.u32 %v6688_v8, %v5874_v27  ;;  %v2104_v63 = vsel %vm2102_vm7, %v2103_v51, %v5843_v54 }
 0x210   :  { %v2366_v29 = vshrl.u32 %v6798_v47, %v5874_v27  ;;  %v2371_v22 = vshll.u32 %v6799_v57, %v2359_v16  ;;  %v5896_v3 = vshrl.u32 %v2357_v60, 5  ;;  %v2502_v44 = vmul.f32 %v6800_v46, %v2501_v61 }
 0x211   :  { %v2505_v28 = vmul.f32 %v6801_v17, %v2504_v37  ;;  %v5900_v33 = vadd.s32 %v2269_v24, %v2265_v4  ;;  %v2368_v49 = vshll.u32 %v6798_v47, %v2359_v16  ;;  %v2369_v5 = vshrl.u32 %v6799_v57, %v5874_v27 }
 0x212   :  { %v2508_v38 = vstv %s5859_s22  ;;  %v1946_v52 = vcvt.s32.f32 %v1939_v11  ;;  %v2353_v14 = vor.u32 8388608, %v2352_v56  ;;  %v2374_v48 = vshll.u32 %v6688_v8, %v2359_v16 }
 0x213   :  { %v2375_v60 = vshrl.u32 %v6689_v20, %v5874_v27  ;;  %v1944_v13 = vand.u32 2147483647, %v1943_v62  ;;  %v5909_v58 = vor.u32 %v2363_v32, %v2362_v31  ;;  %v5911_v51 = vor.u32 %v2366_v29, %v2365_v0  ;;  %v6802_v32 = vld [vmem:[#allocation30_spill] sm:$0xff] }
 0x214   :  { %v2373_v4 = vor.u32 %v2372_v35, %v2371_v22  ;;  %v2105_v61 = vclz %v2104_v63  ;;  %vm2377_vm2 = vcmp.lt.s32.totalorder %v5896_v3, 1  ;;  %vm2380_vm12 = vcmp.lt.s32.totalorder %v5896_v3, 4 }
 0x215   :  { %v2509_v11 = vmul.f32 %v5659_v40, %v2508_v38  ;;  %v2271_v16 = vadd.s32 536870912, %v5900_v33  ;;  %v2370_v37 = vor.u32 %v2369_v5, %v2368_v49  ;;  %v2506_v24 = vadd.f32 %v2505_v28, %v2502_v44 }
 0x216   :  { %v2512_v56 = vstv %s5882_s23  ;;  %v1791_v62 = vmul.f32 %v1790_v15, %v5791_v19  ;;  %v2376_v31 = vor.u32 %v2375_v60, %v2374_v48  ;;  %vm2379_vm4 = vcmp.lt.s32.totalorder %v5896_v3, 3  ;;  %s2920_s23 = sshll.u32 %s6599_s5, 4  ;;  %s2921_s23 = int_to_ptr.hbm [resolvable:$true] %s2920_s23 }
 0x217   :  { %v5922_v0 = vshll.u32 %v2353_v14, 8  ;;  %vm2378_vm1 = vcmp.lt.s32.totalorder %v5896_v3, 2  ;;  %v2385_v22 = vsel %vm2377_vm2, %v5909_v58, %v5911_v51  ;;  %v2386_v35 = vsel %vm2380_vm12, %v2373_v4, 920167782 }
 0x218   :  { %v1785_v63 = vadd.f32 -0.4999988, %v1784_v7  ;;  %v5932_v44 = vmul.f32 %v1946_v52, %v1944_v13  ;;  %v3024_v15 = vadd.s32 4294967294, %v2105_v61  ;;  %v2513_v28 = vmul.f32 %v5710_v23, %v2512_v56 }
 0x219   :  { %v5935_v49 = vshrl.u32 %v2271_v16, 30  ;;  %v2387_v5 = vsel %vm2379_vm4, %v2370_v37, %v2386_v35  ;;  %v2389_v38 = vsel %vm2377_vm2, %v5911_v51, %v2370_v37  ;;  %v2510_v14 = vadd.f32 %v2509_v11, %v2506_v24 }
 0x21a   :  { %v2388_v48 = vsel %vm2378_vm1, %v2385_v22, %v2387_v5  ;;  %v2390_v7 = vsel %vm2380_vm12, %v2376_v31, 1326507024  ;;  %v2394_v52 = vand.u32 65535, %v5922_v0  ;;  %v2395_v60 = vshrl.u32 %v5922_v0, 16  ;;  %v6804_v22 = vld [vmem:[#allocation23_spill] sm:$0xff] }
 0x21b   :  { %6803 = vst [vmem:[#allocation25_spill] sm:$0xff] %v5935_v49  ;;  %v1792_v13 = vadd.f32 -0.16666654, %v1791_v62  ;;  %v2391_v61 = vsel %vm2379_vm4, %v2373_v4, %v2390_v7  ;;  %v2418_v16 = vand.u32 65535, %v2388_v48  ;;  %v2419_v56 = vshrl.u32 %v2388_v48, 16 }
 0x21c   :  { %v1948_v35 = vxor.u32 2147483648, %v5932_v44  ;;  %vm3025_vm13 = vcmp.lt.s32.totalorder %v3024_v15, 0  ;;  %v2392_v11 = vsel %vm2378_vm1, %v2389_v38, %v2391_v61  ;;  %v2516_v24 = vstv %s5916_s24 }
 0x21d   :  { %vm1828_vm10 = vcmp.lt.s32.totalorder %v6804_v22, 0  ;;  %v2273_v31 = vshll.u32 %v5935_v49, 30  ;;  %v2396_v5 = vand.u32 65535, %v2392_v11  ;;  %v2397_v18 = vshrl.u32 %v2392_v11, 16 }
 0x21e   :  { %v2514_v29 = vadd.f32 %v2513_v28, %v2510_v14  ;;  %v2361_v62 = vshrl.u32 %v6712_v30, %v5874_v27  ;;  %v2420_v4 = vmul.u32 %v2418_v16, %v2394_v52  ;;  %v2421_v7 = vmul.u32 %v2419_v56, %v2394_v52 }
 0x21f   :  { %v2422_v48 = vmul.u32 %v2418_v16, %v2395_v60  ;;  %v5958_v21 = vsel %vm3025_vm13, 0, %v3024_v15  ;;  %v2398_v12 = vmul.u32 %v2396_v5, %v2394_v52  ;;  %v2399_v1 = vmul.u32 %v2397_v18, %v2394_v52 }
 0x220   :  { %v2400_v43 = vmul.u32 %v2396_v5, %v2395_v60  ;;  %v2382_v38 = vsel %vm2380_vm12, %v2370_v37, 2102212464  ;;  %v2423_v61 = vmul.u32 %v2419_v56, %v2395_v60  ;;  %v2424_v25 = vshll.u32 %v2421_v7, 16 }
 0x221   :  { %v2426_v49 = vshll.u32 %v2422_v48, 16  ;;  %vm1627_vm6 = vcmp.eq.s32.totalorder %v5761_v59, 0  ;;  %v2401_v28 = vmul.u32 %v2397_v18, %v2395_v60  ;;  %v2402_v14 = vshll.u32 %v2399_v1, 16 }
 0x222   :  { %v2404_v11 = vshll.u32 %v2400_v43, 16  ;;  %v5963_v27 = vadd.f32 %v2516_v24, %v2514_v29  ;;  %v6805_v16 = vand.u32 2147483647, %v6804_v22  ;;  %v5972_v52 = vsub.s32 %v5900_v33, %v2273_v31 }
 0x223   :  { %v2381_v37 = vsel %vm2377_vm2, %v2361_v62, %v5909_v58  ;;  %vm2428_vm3 = vc.u32 %v2420_v4, %v2424_v25  ;;  %v2430_v56 = vadd.s32 %v2424_v25, %v2420_v4  ;;  %v2383_v18 = vsel %vm2379_vm4, %v5911_v51, %v2382_v38 }
 0x224   :  { %vm5967_vm8 = vcmp.le.f32.partialorder %v6805_v16, 0.7853982  ;;  %vm2406_vm15 = vc.u32 %v2398_v12, %v2402_v14  ;;  %v2408_v29 = vadd.s32 %v2402_v14, %v2398_v12  ;;  %v2429_v60 = vsel %vm2428_vm3, 1, %v6713_v39 }
 0x225   :  { %v2407_v24 = vsel %vm2406_vm15, 1, %v6713_v39  ;;  %v2425_v5 = vshrl.u32 %v2421_v7, 16  ;;  %v2431_v16 = vadd.s32 %v2429_v60, %v2423_v61  ;;  %vm2432_vm11 = vc.u32 %v2430_v56, %v2426_v49 }
 0x226   :  { %v2403_v33 = vshrl.u32 %v2399_v1, 16  ;;  %v2409_v31 = vadd.s32 %v2407_v24, %v2401_v28  ;;  %vm2410_vm0 = vc.u32 %v2408_v29, %v2404_v11  ;;  %v2433_v58 = vsel %vm2432_vm11, 1, %v6713_v39 }
 0x227   :  { %vm1626_vm9 = vcmp.lt.s32.totalorder %v5761_v59, 2  ;;  %v1786_v25 = vmul.f32 %v1785_v63, %v5791_v19  ;;  %v2411_v51 = vsel %vm2410_vm0, 1, %v6713_v39  ;;  %v2427_v62 = vshrl.u32 %v2422_v48, 16 }
 0x228   :  { %v2435_v12 = vadd.s32 %v2433_v58, %v2431_v16  ;;  %v2113_v4 = vsub.s32 4294967266, %v5958_v21  ;;  %v2405_v38 = vshrl.u32 %v2400_v43, 16  ;;  %v2413_v14 = vadd.s32 %v2411_v51, %v2409_v31  ;;  %v6808_v43 = vld [vmem:[#allocation31_spill] sm:$0xff] }
 0x229   :  { %v2521_v7 = vand.u32 2139095040, %v5963_v27  ;;  %v1793_v1 = vmul.f32 %v1792_v13, %v5791_v19  ;;  %v1949_v61 = vsel %vm1828_vm10, %v1948_v35, %v5932_v44  ;;  %v2384_v28 = vsel %vm2378_vm1, %v2381_v37, %v2383_v18 }
 0x22a   :  { %v2436_v63 = vadd.s32 %v2435_v12, %v2425_v5  ;;  %v2276_v11 = vsub.s32 0, %v5972_v52  ;;  %v2414_v48 = vadd.s32 %v2413_v14, %v2403_v33  ;;  %v5995_v29 = vadd.s32 %v2430_v56, %v2426_v49 }
 0x22b   :  { %v2522_v60 = vshrl.u32 %v2521_v7, 23  ;;  %v2093_v24 = vadd.s32 %v6808_v43, %v5695_v45  ;;  %v2109_v16 = vsub.s32 32, %v5958_v21  ;;  %vm2275_vm14 = vcmp.lt.s32.totalorder %v5972_v52, 0 }
 0x22c   :  { %v2437_v19 = vadd.s32 %v2436_v63, %v2427_v62  ;;  %v2114_v13 = vadd.s32 127, %v2113_v4  ;;  %v6001_v44 = vadd.s32 %v2414_v48, %v2405_v38  ;;  %v2438_v3 = vmul.u32 %v5922_v0, %v2384_v28 }
 0x22d   :  { %v3047_v35 = vadd.s32 4294967169, %v2522_v60  ;;  %v6809_v37 = vxor.u32 2147483648, %v5816_v6  ;;  %v6810_v45 = vsel %vm5744_vm5, 0, %v5822_v53  ;;  %v6811_v18 = vsub.s32 4, %v6802_v32 }
 0x22e   :  { %v1797_v56 = vadd.s32 3, %v6810_v45  ;;  %v2441_v0 = vadd.s32 1, %v2437_v19  ;;  %v6023_v6 = vsel %vm5967_vm8, %v6804_v22, %v1949_v61  ;;  %vm2440_vm7 = vc.u32 %v6001_v44, %v5995_v29 }
 0x22f   :  { %v1629_v49 = vsel %vm1627_vm6, %v5798_v41, %v6809_v37  ;;  %v6018_v5 = vsel %vm1828_vm10, %v6811_v18, %v6802_v32  ;;  %v2277_v41 = vsel %vm2275_vm14, %v2276_v11, %v5972_v52  ;;  %v2528_v55 = vadd.s32 1, %v3047_v35 }
 0x230   :  { %v6028_v53 = vadd.f32 1.0, %v1786_v25  ;;  %v1794_v33 = vadd.f32 1.0, %v1793_v1  ;;  %v2110_v31 = vshll.u32 %v5843_v54, %v5958_v21  ;;  %v2442_v32 = vsel %vm2440_vm7, %v2441_v0, %v2437_v19 }
 0x231   :  { %v2111_v58 = vshrl.u32 %v2093_v24, %v2109_v16  ;;  %v2115_v51 = vshll.u32 %v2114_v13, 23  ;;  %v2443_v62 = vadd.s32 %v2442_v32, %v2438_v3  ;;  %vm2529_vm5 = vcmp.gt.s32.totalorder %v2528_v55, 0 }
 0x232   :  { %v6036_v12 = vmul.f32 %v6023_v6, %v6023_v6  ;;  %v2278_v4 = vclz %v2277_v41  ;;  %v6679_v38 = vand.u32 2147483647, %v5963_v27  ;;  %v2530_v25 = vsel %vm2529_vm5, %v2528_v55, 0 }
 0x233   :  { %v6044_v54 = vsel %vm1626_vm9, %v1629_v49, %v5864_v10  ;;  %v6046_v21 = vand.u32 3, %v1797_v56  ;;  %v2444_v14 = vadd.s32 536870912, %v2443_v62  ;;  %v2532_v7 = vand.u32 31, %v2530_v25 }
 0x234   :  { %v6049_v1 = vmul.f32 %v1794_v33, %v5767_v2  ;;  %v1955_v63 = vmul.f32 -0.001358992, %v6036_v12  ;;  %v2112_v11 = vor.u32 %v2111_v58, %v2110_v31  ;;  %v2116_v48 = vor.u32 4788187, %v2115_v51 }
 0x235   :  { %v6056_v59 = vsub.s32 32, %v2532_v7  ;;  %v2535_v10 = vshll.u32 %v6712_v30, %v2532_v7  ;;  %v1962_v2 = vmul.f32 -0.00019511016, %v6036_v12  ;;  %v3032_v60 = vadd.s32 4294967294, %v2278_v4 }
 0x236   :  { %v2525_v43 = vand.u32 8388607, %v6679_v38  ;;  %v2538_v24 = vshll.u32 %v6711_v50, %v2532_v7  ;;  %v6065_v16 = vshrl.u32 %v2444_v14, 30  ;;  %v2541_v13 = vshll.u32 %v6798_v47, %v2532_v7 }
 0x237   :  { %v2536_v19 = vshrl.u32 %v6711_v50, %v6056_v59  ;;  %v2544_v3 = vshll.u32 %v6799_v57, %v2532_v7  ;;  %v6071_v35 = vshrl.u32 %v2530_v25, 5  ;;  %v2539_v37 = vshrl.u32 %v6798_v47, %v6056_v59 }
 0x238   :  { %v2542_v49 = vshrl.u32 %v6799_v57, %v6056_v59  ;;  %v2545_v45 = vshrl.u32 %v6688_v8, %v6056_v59  ;;  %v2117_v56 = vand.u32 2147483647, %v2116_v48  ;;  %v2119_v18 = vcvt.s32.f32 %v2112_v11 }
 0x239   :  { %v6079_v0 = vor.u32 %v2536_v19, %v2535_v10  ;;  %v2674_v41 = vstv %s6032_s25  ;;  %vm3033_vm2 = vcmp.lt.s32.totalorder %v3032_v60, 0  ;;  %v2526_v55 = vor.u32 8388608, %v2525_v43 }
 0x23a   :  { %v6082_v33 = vor.u32 %v2539_v37, %v2538_v24  ;;  %v2677_v31 = vstv %s6039_s26  ;;  %v2446_v32 = vshll.u32 %v6065_v16, 30  ;;  %v6088_v58 = vor.u32 %v2542_v49, %v2541_v13 }
 0x23b   :  { %v2546_v51 = vor.u32 %v2545_v45, %v2544_v3  ;;  %v2547_v4 = vshll.u32 %v6688_v8, %v2532_v7  ;;  %v2548_v25 = vshrl.u32 %v6689_v20, %v6056_v59  ;;  %vm2550_vm12 = vcmp.lt.s32.totalorder %v6071_v35, 1 }
 0x23c   :  { %vm2552_vm4 = vcmp.lt.s32.totalorder %v6071_v35, 3  ;;  %v2675_v14 = vmul.f32 %v6800_v46, %v2674_v41  ;;  %vm2551_vm1 = vcmp.lt.s32.totalorder %v6071_v35, 2  ;;  %vm2553_vm13 = vcmp.lt.s32.totalorder %v6071_v35, 4 }
 0x23d   :  { %v2558_v11 = vsel %vm2550_vm12, %v6079_v0, %v6082_v33  ;;  %v2678_v7 = vmul.f32 %v6801_v17, %v2677_v31  ;;  %v2549_v48 = vor.u32 %v2548_v25, %v2547_v4  ;;  %v2559_v10 = vsel %vm2553_vm13, %v2546_v51, 920167782 }
 0x23e   :  { %v6105_v43 = vshll.u32 %v2526_v55, 8  ;;  %v2681_v24 = vstv %s6059_s27  ;;  %v1956_v19 = vadd.f32 0.041655596, %v1955_v63  ;;  %v6108_v46 = vsub.s32 %v2443_v62, %v2446_v32 }
 0x23f   :  { %v2560_v13 = vsel %vm2552_vm4, %v6088_v58, %v2559_v10  ;;  %v2562_v17 = vsel %vm2550_vm12, %v6082_v33, %v6088_v58  ;;  %v1963_v3 = vadd.f32 0.008332121, %v1962_v2  ;;  %v6117_v37 = vmul.f32 %v2119_v18, %v2117_v56 }
 0x240   :  { %v2561_v49 = vsel %vm2551_vm1, %v2558_v11, %v2560_v13  ;;  %v2563_v63 = vsel %vm2553_vm13, %v2549_v48, 1326507024  ;;  %v6126_v62 = vsel %vm3033_vm2, 0, %v3032_v60  ;;  %v2679_v41 = vadd.f32 %v2678_v7, %v2675_v14 }
 0x241   :  { %v2564_v45 = vsel %vm2552_vm4, %v2546_v51, %v2563_v63  ;;  %v2682_v55 = vmul.f32 %v5659_v40, %v2681_v24  ;;  %v2567_v56 = vand.u32 65535, %v6105_v43  ;;  %v2568_v18 = vshrl.u32 %v6105_v43, 16 }
 0x242   :  { %v2565_v2 = vsel %vm2551_vm1, %v2562_v17, %v2564_v45  ;;  %v2685_v31 = vstv %s6085_s28  ;;  %v2449_v32 = vsub.s32 0, %v6108_v46  ;;  %v2592_v60 = vshrl.u32 %v2561_v49, 16 }
 0x243   :  { %v2569_v4 = vand.u32 65535, %v2565_v2  ;;  %v2570_v25 = vshrl.u32 %v2565_v2, 16  ;;  %v6138_v11 = vmul.f32 %v1956_v19, %v6036_v12  ;;  %v6141_v51 = vmul.f32 %v1963_v3, %v6036_v12 }
 0x244   :  { %v2286_v40 = vsub.s32 4294967266, %v6126_v62  ;;  %vm2448_vm10 = vcmp.lt.s32.totalorder %v6108_v46, 0  ;;  %v2266_v14 = vadd.s32 %v5838_v9, %v5833_v26  ;;  %v2591_v7 = vand.u32 65535, %v2561_v49 }
 0x245   :  { %v2683_v48 = vadd.f32 %v2682_v55, %v2679_v41  ;;  %v2686_v10 = vmul.f32 %v5710_v23, %v2685_v31  ;;  %v2282_v19 = vsub.s32 32, %v6126_v62  ;;  %v2571_v13 = vmul.u32 %v2569_v4, %v2567_v56 }
 0x246   :  { %v2572_v17 = vmul.u32 %v2570_v25, %v2567_v56  ;;  %v2450_v63 = vsel %vm2448_vm10, %v2449_v32, %v6108_v46  ;;  %v2573_v45 = vmul.u32 %v2569_v4, %v2568_v18  ;;  %v2594_v2 = vmul.u32 %v2592_v60, %v2567_v56 }
 0x247   :  { %v2287_v38 = vadd.s32 127, %v2286_v40  ;;  %v2574_v28 = vmul.u32 %v2570_v25, %v2568_v18  ;;  %v2689_v9 = vstv %s6123_s29  ;;  %v2593_v41 = vmul.u32 %v2591_v7, %v2567_v56 }
 0x248   :  { %v2575_v26 = vshll.u32 %v2572_v17, 16  ;;  %v2577_v49 = vshll.u32 %v2573_v45, 16  ;;  %v2595_v23 = vmul.u32 %v2591_v7, %v2568_v18  ;;  %v2687_v55 = vadd.f32 %v2686_v10, %v2683_v48 }
 0x249   :  { %v2451_v31 = vclz %v2450_v63  ;;  %v2534_v61 = vshrl.u32 %v6712_v30, %v6056_v59  ;;  %vm1803_vm3 = vcmp.eq.s32.totalorder %v6046_v21, 2  ;;  %v2596_v4 = vmul.u32 %v2592_v60, %v2568_v18 }
 0x24a   :  { %vm2579_vm6 = vc.u32 %v2571_v13, %v2575_v26  ;;  %v2581_v24 = vadd.s32 %v2575_v26, %v2571_v13  ;;  %v2597_v3 = vshll.u32 %v2594_v2, 16  ;;  %v2599_v40 = vshll.u32 %v2595_v23, 16  ;;  %v6812_v26 = vld [vmem:[#allocation28_spill] sm:$0xff] }
 0x24b   :  { %v2580_v32 = vsel %vm2579_vm6, 1, %v6713_v39  ;;  %vm1800_vm15 = vcmp.eq.s32.totalorder %v6046_v21, 0  ;;  %v2555_v56 = vsel %vm2553_vm13, %v6088_v58, 2102212464  ;;  %v2576_v25 = vshrl.u32 %v2572_v17, 16  ;;  %v6813_v17 = vld [vmem:[#allocation29_spill] sm:$0xff] }
 0x24c   :  { %v2582_v7 = vadd.s32 %v2580_v32, %v2574_v28  ;;  %vm2583_vm11 = vc.u32 %v2581_v24, %v2577_v49  ;;  %vm2601_vm0 = vc.u32 %v2593_v41, %v2597_v3  ;;  %v2603_v48 = vadd.s32 %v2597_v3, %v2593_v41  ;;  %v6814_v32 = vld [vmem:[#allocation21_spill] sm:$0xff] }
 0x24d   :  { %v2584_v59 = vsel %vm2583_vm11, 1, %v6713_v39  ;;  %v6163_v10 = vadd.f32 %v2689_v9, %v2687_v55  ;;  %v2554_v18 = vsel %vm2550_vm12, %v2534_v61, %v6079_v0  ;;  %v2578_v60 = vshrl.u32 %v2573_v45, 16 }
 0x24e   :  { %v2586_v13 = vadd.s32 %v2584_v59, %v2582_v7  ;;  %v2602_v63 = vsel %vm2601_vm0, 1, %v6713_v39  ;;  %vm1450_vm9 = vweird.f32 %v6812_v26  ;;  %v2556_v28 = vsel %vm2552_vm4, %v6082_v33, %v2555_v56 }
 0x24f   :  { %v2598_v58 = vshrl.u32 %v2594_v2, 16  ;;  %v2604_v24 = vadd.s32 %v2602_v63, %v2596_v4  ;;  %vm2605_vm14 = vc.u32 %v2603_v48, %v2599_v40  ;;  %vm1623_vm7 = vweird.f32 %v6813_v17 }
 0x250   :  { %vm1799_vm5 = vcmp.lt.s32.totalorder %v6046_v21, 2  ;;  %v3040_v3 = vadd.s32 4294967294, %v2451_v31  ;;  %v2587_v9 = vadd.s32 %v2586_v13, %v2576_v25  ;;  %v2606_v61 = vsel %vm2605_vm14, 1, %v6713_v39 }
 0x251   :  { %v2694_v0 = vand.u32 2139095040, %v6163_v10  ;;  %v2284_v45 = vshrl.u32 %v2266_v14, %v2282_v19  ;;  %v2288_v49 = vshll.u32 %v2287_v38, 23  ;;  %v2600_v41 = vshrl.u32 %v2595_v23, 16 }
 0x252   :  { %v2608_v55 = vadd.s32 %v2606_v61, %v2604_v24  ;;  %vm2001_vm2 = vcmp.lt.s32.totalorder %v6814_v32, 0  ;;  %v6178_v33 = vadd.s32 %v2587_v9, %v2578_v60  ;;  %v6180_v2 = vadd.s32 %v2603_v48, %v2599_v40 }
 0x253   :  { %v2695_v4 = vshrl.u32 %v2694_v0, 23  ;;  %v1801_v56 = vxor.u32 2147483648, %v6049_v1  ;;  %v6815_v31 = vand.u32 2147483647, %v6814_v32  ;;  %v2557_v38 = vsel %vm2551_vm1, %v2554_v18, %v2556_v28 }
 0x254   :  { %v2609_v14 = vadd.s32 %v2608_v55, %v2598_v58  ;;  %v1958_v19 = vadd.f32 -0.4999988, %v6138_v11  ;;  %v1965_v23 = vadd.f32 -0.16666654, %v6141_v51  ;;  %vm3041_vm4 = vcmp.lt.s32.totalorder %v3040_v3, 0 }
 0x255   :  { %vm6185_vm12 = vcmp.le.f32.partialorder %v6815_v31, 0.7853982  ;;  %v3055_v40 = vadd.s32 4294967169, %v2695_v4  ;;  %v6818_v7 = vxor.u32 2147483648, %v6117_v37  ;;  %v6819_v48 = vshll.u32 %v5972_v52, %v6126_v62  ;;  %v6822_v31 = vld [vmem:[#allocation17_spill] sm:$0xff] }
 0x256   :  { %v2289_v13 = vor.u32 4788187, %v2288_v49  ;;  %v2610_v35 = vadd.s32 %v2609_v14, %v2600_v41  ;;  %v6820_v18 = vxor.u32 2147483648, %v6028_v53  ;;  %v2611_v51 = vmul.u32 %v6105_v43, %v2557_v38 }
 0x257   :  { %v2122_v59 = vsel %vm2001_vm2, %v6818_v7, %v6117_v37  ;;  %v2285_v60 = vor.u32 %v2284_v45, %v6819_v48  ;;  %vm2613_vm1 = vc.u32 %v6178_v33, %v6180_v2  ;;  %v2701_v63 = vadd.s32 1, %v3055_v40 }
 0x258   :  { %v1805_v11 = vsel %vm1803_vm3, %v6820_v18, %v6049_v1  ;;  %v1802_v37 = vsel %vm1800_vm15, %v6028_v53, %v1801_v56  ;;  %v6821_v52 = vsel %vm5967_vm8, 0, %v6018_v5  ;;  %v2454_v28 = vsel %vm3041_vm4, 0, %v3040_v3 }
 0x259   :  { %v1970_v62 = vadd.s32 3, %v6821_v52  ;;  %v2614_v58 = vadd.s32 1, %v2610_v35  ;;  %v1959_v24 = vmul.f32 %v1958_v19, %v6036_v12  ;;  %v1966_v1 = vmul.f32 %v1965_v23, %v6036_v12 }
 0x25a   :  { %v6221_v43 = vsel %vm6185_vm12, %v6814_v32, %v2122_v59  ;;  %vm2702_vm13 = vcmp.gt.s32.totalorder %v2701_v63, 0  ;;  %v2290_v9 = vand.u32 2147483647, %v2289_v13  ;;  %v2292_v61 = vcvt.s32.f32 %v2285_v60 }
 0x25b   :  { %v2615_v53 = vsel %vm2613_vm1, %v2614_v58, %v2610_v35  ;;  %v2703_v0 = vsel %vm2702_vm13, %v2701_v63, 0  ;;  %v6226_v15 = vsel %vm1450_vm9, nan, %v5856_v36  ;;  %v2459_v5 = vsub.s32 4294967266, %v2454_v28 }
 0x25c   :  { %v2616_v3 = vadd.s32 %v2615_v53, %v2611_v51  ;;  %v2691_v45 = vand.u32 2147483647, %v6163_v10  ;;  %v6232_v12 = vsel %vm1623_vm7, nan, %v6044_v54  ;;  %v6236_v49 = vsel %vm1799_vm5, %v1802_v37, %v1805_v11 }
 0x25d   :  { %v6238_v41 = vand.u32 3, %v1970_v62  ;;  %v2705_v55 = vand.u32 31, %v2703_v0  ;;  %v6240_v4 = vadd.f32 1.0, %v1959_v24  ;;  %v6242_v36 = vadd.f32 1.0, %v1966_v1 }
 0x25e   :  { %v6246_v26 = vmul.f32 %v6221_v43, %v6221_v43  ;;  %v2617_v56 = vadd.s32 536870912, %v2616_v3  ;;  %vm2174_vm8 = vcmp.lt.s32.totalorder %v6822_v31, 0  ;;  %v2293_v54 = vmul.f32 %v2292_v61, %v2290_v9 }
 0x25f   :  { %v2439_v21 = vadd.s32 %v5995_v29, %v6001_v44  ;;  %v2455_v17 = vsub.s32 32, %v2454_v28  ;;  %v6251_v38 = vsub.s32 32, %v2705_v55  ;;  %v2460_v14 = vadd.s32 127, %v2459_v5 }
 0x260   :  { %v6253_v19 = vshrl.u32 %v2617_v56, 30  ;;  %v2698_v23 = vand.u32 8388607, %v2691_v45  ;;  %v6257_v40 = vshrl.u32 %v2703_v0, 5  ;;  %v2708_v7 = vshll.u32 %v6712_v30, %v2705_v55 }
 0x261   :  { %v2709_v59 = vshrl.u32 %v6711_v50, %v6251_v38  ;;  %v2711_v48 = vshll.u32 %v6711_v50, %v2705_v55  ;;  %v2712_v29 = vshrl.u32 %v6798_v47, %v6251_v38  ;;  %v2714_v60 = vshll.u32 %v6798_v47, %v2705_v55 }
 0x262   :  { %v2619_v44 = vshll.u32 %v6253_v19, 30  ;;  %v2715_v13 = vshrl.u32 %v6799_v57, %v6251_v38  ;;  %v2717_v35 = vshll.u32 %v6799_v57, %v2705_v55  ;;  %v2294_v18 = vxor.u32 2147483648, %v2293_v54 }
 0x263   :  { %v2456_v11 = vshll.u32 %v6108_v46, %v2454_v28  ;;  %v2457_v51 = vshrl.u32 %v2439_v21, %v2455_v17  ;;  %v2718_v63 = vshrl.u32 %v6688_v8, %v6251_v38  ;;  %v2461_v50 = vshll.u32 %v2460_v14, 23 }
 0x264   :  { %v2620_v37 = vsub.s32 %v2616_v3, %v2619_v44  ;;  %v2699_v52 = vor.u32 8388608, %v2698_v23  ;;  %vm2723_vm10 = vcmp.lt.s32.totalorder %v6257_v40, 1  ;;  %v6274_v62 = vor.u32 %v2709_v59, %v2708_v7 }
 0x265   :  { %v6276_v47 = vor.u32 %v2712_v29, %v2711_v48  ;;  %v2720_v58 = vshll.u32 %v6688_v8, %v2705_v55  ;;  %v2721_v57 = vshrl.u32 %v6689_v20, %v6251_v38  ;;  %v2716_v28 = vor.u32 %v2715_v13, %v2714_v60 }
 0x266   :  { %vm2621_vm6 = vcmp.lt.s32.totalorder %v2620_v37, 0  ;;  %v2622_v46 = vsub.s32 0, %v2620_v37  ;;  %v2719_v24 = vor.u32 %v2718_v63, %v2717_v35  ;;  %v2123_v1 = vsub.s32 4, %v5796_v42 }
 0x267   :  { %v6823_v9 = vand.u32 2147483647, %v6822_v31  ;;  %v2458_v53 = vor.u32 %v2457_v51, %v2456_v11  ;;  %v2722_v0 = vor.u32 %v2721_v57, %v2720_v58  ;;  %vm2726_vm15 = vcmp.lt.s32.totalorder %v6257_v40, 4 }
 0x268   :  { %v2128_v8 = vmul.f32 -0.001358992, %v6246_v26  ;;  %v2462_v5 = vor.u32 4788187, %v2461_v50  ;;  %v2623_v20 = vsel %vm2621_vm6, %v2622_v46, %v2620_v37  ;;  %vm2725_vm11 = vcmp.lt.s32.totalorder %v6257_v40, 3 }
 0x269   :  { %vm6284_vm3 = vcmp.le.f32.partialorder %v6823_v9, 0.7853982  ;;  %v2624_v3 = vclz %v2623_v20  ;;  %vm2724_vm0 = vcmp.lt.s32.totalorder %v6257_v40, 2  ;;  %v2731_v55 = vsel %vm2723_vm10, %v6274_v62, %v6276_v47 }
 0x26a   :  { %v6296_v56 = vshll.u32 %v2699_v52, 8  ;;  %v2135_v21 = vmul.f32 -0.00019511016, %v6246_v26  ;;  %v2295_v17 = vsel %vm2174_vm8, %v2294_v18, %v2293_v54  ;;  %v2732_v14 = vsel %vm2726_vm15, %v2719_v24, 920167782 }
 0x26b   :  { %v2735_v23 = vsel %vm2723_vm10, %v6276_v47, %v2716_v28  ;;  %v2465_v7 = vcvt.s32.f32 %v2458_v53  ;;  %v3048_v59 = vadd.s32 4294967294, %v2624_v3  ;;  %v2733_v48 = vsel %vm2725_vm11, %v2716_v28, %v2732_v14 }
 0x26c   :  { %v2736_v29 = vsel %vm2726_vm15, %v2722_v0, 1326507024  ;;  %v2463_v44 = vand.u32 2147483647, %v2462_v5  ;;  %v2612_v60 = vadd.s32 %v6180_v2, %v6178_v33  ;;  %v2734_v54 = vsel %vm2724_vm0, %v2731_v55, %v2733_v48 }
 0x26d   :  { %v2737_v13 = vsel %vm2725_vm11, %v2719_v24, %v2736_v29  ;;  %vm3049_vm9 = vcmp.lt.s32.totalorder %v3048_v59, 0  ;;  %v2740_v18 = vand.u32 65535, %v6296_v56  ;;  %v2741_v11 = vshrl.u32 %v6296_v56, 16 }
 0x26e   :  { %v2738_v35 = vsel %vm2724_vm0, %v2735_v23, %v2737_v13  ;;  %v2627_v51 = vsel %vm3049_vm9, 0, %v3048_v59  ;;  %v2764_v52 = vand.u32 65535, %v2734_v54  ;;  %v2765_v57 = vshrl.u32 %v2734_v54, 16 }
 0x26f   :  { %v2742_v63 = vand.u32 65535, %v2738_v35  ;;  %v2743_v50 = vshrl.u32 %v2738_v35, 16  ;;  %v2628_v58 = vsub.s32 32, %v2627_v51  ;;  %v2629_v33 = vshll.u32 %v2620_v37, %v2627_v51 }
 0x270   :  { %v2632_v2 = vsub.s32 4294967266, %v2627_v51  ;;  %v6322_v46 = vmul.f32 %v6242_v36, %v6023_v6  ;;  %v6327_v24 = vsel %vm2001_vm2, %v2123_v1, %v5796_v42  ;;  %v2129_v9 = vadd.f32 0.041655596, %v2128_v8 }
 0x271   :  { %v2136_v53 = vadd.f32 0.008332121, %v2135_v21  ;;  %v2630_v0 = vshrl.u32 %v2612_v60, %v2628_v58  ;;  %v2745_v20 = vmul.u32 %v2743_v50, %v2740_v18  ;;  %v2746_v3 = vmul.u32 %v2742_v63, %v2741_v11 }
 0x272   :  { %v2633_v5 = vadd.s32 127, %v2632_v2  ;;  %v6332_v37 = vsel %vm6284_vm3, %v6822_v31, %v2295_v17  ;;  %v2744_v55 = vmul.u32 %v2742_v63, %v2740_v18  ;;  %v2767_v14 = vmul.u32 %v2765_v57, %v2740_v18 }
 0x273   :  { %v2768_v6 = vmul.u32 %v2764_v52, %v2741_v11  ;;  %v2466_v36 = vmul.f32 %v2465_v7, %v2463_v44  ;;  %v2631_v23 = vor.u32 %v2630_v0, %v2629_v33  ;;  %v2766_v48 = vmul.u32 %v2764_v52, %v2740_v18 }
 0x274   :  { %v2634_v59 = vshll.u32 %v2633_v5, 23  ;;  %v2707_v42 = vshrl.u32 %v6712_v30, %v6251_v38  ;;  %v2747_v1 = vmul.u32 %v2743_v50, %v2741_v11  ;;  %v2748_v8 = vshll.u32 %v2745_v20, 16 }
 0x275   :  { %v2750_v21 = vshll.u32 %v2746_v3, 16  ;;  %v2728_v60 = vsel %vm2726_vm15, %v2716_v28, 2102212464  ;;  %v2769_v54 = vmul.u32 %v2765_v57, %v2741_v11  ;;  %v2770_v17 = vshll.u32 %v2767_v14, 16 }
 0x276   :  { %v2635_v29 = vor.u32 4788187, %v2634_v59  ;;  %v2749_v13 = vshrl.u32 %v2745_v20, 16  ;;  %vm2752_vm14 = vc.u32 %v2744_v55, %v2748_v8  ;;  %v2754_v35 = vadd.s32 %v2748_v8, %v2744_v55 }
 0x277   :  { %v2772_v51 = vshll.u32 %v2768_v6, 16  ;;  %v2638_v44 = vcvt.s32.f32 %v2631_v23  ;;  %v2753_v18 = vsel %vm2752_vm14, 1, %v6713_v39  ;;  %vm2774_vm7 = vc.u32 %v2766_v48, %v2770_v17 }
 0x278   :  { %v2636_v7 = vand.u32 2147483647, %v2635_v29  ;;  %v2755_v63 = vadd.s32 %v2753_v18, %v2747_v1  ;;  %vm2756_vm5 = vc.u32 %v2754_v35, %v2750_v21  ;;  %v2775_v30 = vsel %vm2774_vm7, 1, %v6713_v39 }
 0x279   :  { %v2776_v38 = vadd.s32 %v2770_v17, %v2766_v48  ;;  %v6344_v28 = vmul.f32 %v6332_v37, %v6332_v37  ;;  %vm2347_vm2 = vcmp.lt.s32.totalorder %v5755_v34, 0  ;;  %v2757_v11 = vsel %vm2756_vm5, 1, %v6713_v39 }
 0x27a   :  { %v2777_v50 = vadd.s32 %v2775_v30, %v2769_v54  ;;  %vm1976_vm4 = vcmp.eq.s32.totalorder %v6238_v41, 2  ;;  %v2751_v52 = vshrl.u32 %v2746_v3, 16  ;;  %v2759_v58 = vadd.s32 %v2757_v11, %v2755_v63  ;;  %v6831_v63 = vld [vmem:[#allocation24_spill] sm:$0xff] }
 0x27b   :  { %v2771_v33 = vshrl.u32 %v2767_v14, 16  ;;  %vm2778_vm1 = vc.u32 %v2776_v38, %v2772_v51  ;;  %vm1973_vm13 = vcmp.eq.s32.totalorder %v6238_v41, 0  ;;  %v2467_v2 = vxor.u32 2147483648, %v2466_v36 }
 0x27c   :  { %v2727_v57 = vsel %vm2723_vm10, %v2707_v42, %v6274_v62  ;;  %v2729_v0 = vsel %vm2725_vm11, %v6276_v47, %v2728_v60  ;;  %v2779_v5 = vsel %vm2778_vm1, 1, %v6713_v39  ;;  %v2639_v20 = vmul.f32 %v2638_v44, %v2636_v7  ;;  %v6826_v42 = vld [vmem:[#allocation18_spill] sm:$0xff] }
 0x27d   :  { %v2760_v55 = vadd.s32 %v2759_v58, %v2749_v13  ;;  %v2773_v23 = vshrl.u32 %v2768_v6, 16  ;;  %v2781_v3 = vadd.s32 %v2779_v5, %v2777_v50  ;;  %v1974_v14 = vxor.u32 2147483648, %v6322_v46 }
 0x27e   :  { %v1977_v59 = vxor.u32 2147483648, %v6240_v4  ;;  %v2130_v48 = vmul.f32 %v2129_v9, %v6246_v26  ;;  %v6364_v62 = vadd.s32 %v2776_v38, %v2772_v51  ;;  %vm1796_vm10 = vweird.f32 %v6826_v42  ;;  %v6832_v38 = vld [vmem:[#allocation20_spill] sm:$0xff] }
 0x27f   :  { %v2137_v47 = vmul.f32 %v2136_v53, %v6246_v26  ;;  %v2730_v39 = vsel %vm2724_vm0, %v2727_v57, %v2729_v0  ;;  %v6370_v6 = vadd.s32 %v2760_v55, %v2751_v52  ;;  %v2782_v1 = vadd.s32 %v2781_v3, %v2771_v33  ;;  %v6830_v53 = vld [vmem:[#allocation25_spill] sm:$0xff] }
 0x280   :  { %v2126_v8 = vsel %vm6185_vm12, 0, %v6327_v24  ;;  %v2308_v21 = vmul.f32 -0.00019511016, %v6344_v28  ;;  %v6827_v9 = vand.u32 2147483647, %v5755_v34  ;;  %v2468_v40 = vsel %vm2347_vm2, %v2467_v2, %v2466_v36 }
 0x281   :  { %v2296_v60 = vsub.s32 4, %v6830_v53  ;;  %v2640_v54 = vxor.u32 2147483648, %v2639_v20  ;;  %v2783_v17 = vadd.s32 %v2782_v1, %v2773_v23  ;;  %v2847_v13 = vstv %s6340_s30 }
 0x282   :  { %vm6378_vm6 = vcmp.le.f32.partialorder %v6827_v9, 0.7853982  ;;  %vm2520_vm12 = vcmp.lt.s32.totalorder %v5963_v27, 0  ;;  %v2784_v25 = vmul.u32 %v6296_v56, %v2730_v39  ;;  %vm2786_vm15 = vc.u32 %v6370_v6, %v6364_v62 }
 0x283   :  { %v2850_v24 = vstv %s6348_s1  ;;  %v2131_v35 = vadd.f32 -0.4999988, %v2130_v48  ;;  %v2138_v51 = vadd.f32 -0.16666654, %v2137_v47  ;;  %v6396_v36 = vsel %vm6378_vm6, %v5755_v34, %v2468_v40  ;;  %v6836_v48 = vld [vmem:[#allocation16_spill] sm:$0xff] }
 0x284   :  { %v2787_v7 = vadd.s32 1, %v2783_v17  ;;  %v2301_v44 = vmul.f32 -0.001358992, %v6344_v28  ;;  %v2309_v18 = vadd.f32 0.008332121, %v2308_v21  ;;  %v2848_v30 = vmul.f32 %v2847_v13, %v6831_v63 }
 0x285   :  { %v2851_v11 = vmul.f32 %v2850_v24, %v6832_v38  ;;  %v6833_v56 = vand.u32 2147483647, %v5963_v27  ;;  %v2641_v52 = vsel %vm2520_vm12, %v2640_v54, %v2639_v20  ;;  %v2854_v33 = vstv %s6359_s6 }
 0x286   :  { %v2788_v58 = vsel %vm2786_vm15, %v2787_v7, %v2783_v17  ;;  %vm1972_vm0 = vcmp.lt.s32.totalorder %v6238_v41, 2  ;;  %v1978_v2 = vsel %vm1976_vm4, %v1977_v59, %v6322_v46  ;;  %v6418_v57 = vmul.f32 %v6396_v36, %v6396_v36  ;;  %v6837_v17 = vld [vmem:[#allocation26_spill] sm:$0xff] }
 0x287   :  { %vm6403_vm11 = vcmp.le.f32.partialorder %v6833_v56, 0.7853982  ;;  %v2789_v0 = vadd.s32 %v2788_v58, %v2784_v25  ;;  %v1975_v5 = vsel %vm1973_vm13, %v6240_v4, %v1974_v14  ;;  %v2139_v20 = vmul.f32 %v2138_v51, %v6246_v26 }
 0x288   :  { %v2143_v55 = vadd.s32 3, %v2126_v8  ;;  %v2297_v23 = vsel %vm2174_vm8, %v2296_v60, %v6830_v53  ;;  %v6430_v46 = vsel %vm6403_vm11, %v5963_v27, %v2641_v52  ;;  %v2852_v59 = vadd.f32 %v2851_v11, %v2848_v30  ;;  %v6838_v11 = vld [vmem:[#allocation27_spill] sm:$0xff] }
 0x289   :  { %v2790_v3 = vadd.s32 536870912, %v2789_v0  ;;  %v2855_v47 = vmul.f32 %v2854_v33, %v6836_v48  ;;  %v2132_v39 = vmul.f32 %v2131_v35, %v6246_v26  ;;  %v2302_v1 = vadd.f32 0.041655596, %v2301_v44 }
 0x28a   :  { %v2310_v4 = vmul.f32 %v2309_v18, %v6344_v28  ;;  %v2858_v14 = vstv %s6386_s7  ;;  %v6441_v8 = vsel %vm1796_vm10, nan, %v6236_v49  ;;  %vm1969_vm8 = vweird.f32 %v6804_v22 }
 0x28b   :  { %v2481_v21 = vmul.f32 -0.00019511016, %v6418_v57  ;;  %v6445_v9 = vshrl.u32 %v2790_v3, 30  ;;  %v1979_v26 = vsel %vm1972_vm0, %v1975_v5, %v1978_v2  ;;  %v2140_v40 = vadd.f32 1.0, %v2139_v20 }
 0x28c   :  { %v6449_v53 = vand.u32 3, %v2143_v55  ;;  %v6453_v60 = vmul.f32 %v6430_v46, %v6430_v46  ;;  %v2299_v49 = vsel %vm6284_vm3, 0, %v2297_v23  ;;  %v2856_v54 = vadd.f32 %v2855_v47, %v2852_v59 }
 0x28d   :  { %v2792_v42 = vshll.u32 %v6445_v9, 30  ;;  %v2859_v13 = vmul.f32 %v2858_v14, %v6837_v17  ;;  %v6459_v25 = vadd.f32 1.0, %v2132_v39  ;;  %v2303_v41 = vmul.f32 %v2302_v1, %v6344_v28  ;;  %v6839_v39 = vld [vmem:[#allocation22_spill] sm:$0xff] }
 0x28e   :  { %v2311_v24 = vadd.f32 -0.16666654, %v2310_v4  ;;  %v2862_v35 = vstv %s6410_s8  ;;  %v6467_v51 = vsel %vm1969_vm8, nan, %v1979_v26  ;;  %v2474_v61 = vmul.f32 -0.001358992, %v6418_v57 }
 0x28f   :  { %v2482_v7 = vadd.f32 0.008332121, %v2481_v21  ;;  %v6470_v44 = vsub.s32 %v2789_v0, %v2792_v42  ;;  %v2141_v18 = vmul.f32 %v2140_v40, %v6221_v43  ;;  %vm2149_vm3 = vcmp.eq.s32.totalorder %v6449_v53, 2 }
 0x290   :  { %v2316_v63 = vadd.s32 3, %v2299_v49  ;;  %v2654_v30 = vmul.f32 -0.00019511016, %v6453_v60  ;;  %v2860_v22 = vadd.f32 %v2859_v13, %v2856_v54  ;;  %v2863_v56 = vmul.f32 %v2862_v35, %v6838_v11 }
 0x291   :  { %vm2794_vm9 = vcmp.lt.s32.totalorder %v6470_v44, 0  ;;  %v2795_v38 = vsub.s32 0, %v6470_v44  ;;  %v2150_v52 = vxor.u32 2147483648, %v6459_v25  ;;  %v2304_v58 = vadd.f32 -0.4999988, %v2303_v41 }
 0x292   :  { %v2312_v33 = vmul.f32 %v2311_v24, %v6344_v28  ;;  %v2866_v2 = vstv %s6436_s0  ;;  %v2475_v43 = vadd.f32 0.041655596, %v2474_v61  ;;  %v2483_v0 = vmul.f32 %v2482_v7, %v6418_v57  ;;  %v6840_v61 = vld [vmem:[#allocation32_spill] sm:$0xff] }
 0x293   :  { %v2647_v5 = vmul.f32 -0.001358992, %v6453_v60  ;;  %v2796_v20 = vsel %vm2794_vm9, %v2795_v38, %v6470_v44  ;;  %vm2146_vm14 = vcmp.eq.s32.totalorder %v6449_v53, 0  ;;  %v2469_v55 = vsub.s32 4, %v6065_v16 }
 0x294   :  { %v2655_v23 = vadd.f32 0.008332121, %v2654_v30  ;;  %v2797_v3 = vclz %v2796_v20  ;;  %v2147_v59 = vxor.u32 2147483648, %v2141_v18  ;;  %v6488_v48 = vand.u32 3, %v2316_v63 }
 0x295   :  { %v2864_v47 = vadd.f32 %v2863_v56, %v2860_v22  ;;  %v2867_v1 = vmul.f32 %v2866_v2, %v6839_v39  ;;  %v2151_v4 = vsel %vm2149_vm3, %v2150_v52, %v2141_v18  ;;  %v2305_v14 = vmul.f32 %v2304_v58, %v6344_v28 }
 0x296   :  { %v3056_v21 = vadd.s32 4294967294, %v2797_v3  ;;  %v2870_v26 = vstv %s6463_s9  ;;  %vm2145_vm7 = vcmp.lt.s32.totalorder %v6449_v53, 2  ;;  %v2313_v40 = vadd.f32 1.0, %v2312_v33 }
 0x297   :  { %v2476_v49 = vmul.f32 %v2475_v43, %v6418_v57  ;;  %v2484_v42 = vadd.f32 -0.16666654, %v2483_v0  ;;  %v2648_v54 = vadd.f32 0.041655596, %v2647_v5  ;;  %v2470_v17 = vsel %vm2347_vm2, %v2469_v55, %v6065_v16 }
 0x298   :  { %v2656_v13 = vmul.f32 %v2655_v23, %v6453_v60  ;;  %v2785_v28 = vadd.s32 %v6364_v62, %v6370_v6  ;;  %vm3057_vm5 = vcmp.lt.s32.totalorder %v3056_v21, 0  ;;  %v2642_v41 = vsub.s32 4, %v6253_v19 }
 0x299   :  { %v2800_v24 = vsel %vm3057_vm5, 0, %v3056_v21  ;;  %v2868_v35 = vadd.f32 %v2867_v1, %v2864_v47  ;;  %v2871_v7 = vmul.f32 %v2870_v26, %v6840_v61  ;;  %v2874_v38 = vstv %s6481_s2 }
 0x29a   :  { %v2801_v18 = vsub.s32 32, %v2800_v24  ;;  %v2802_v63 = vshll.u32 %v6470_v44, %v2800_v24  ;;  %v2805_v30 = vsub.s32 4294967266, %v2800_v24  ;;  %v2306_v16 = vadd.f32 1.0, %v2305_v14 }
 0x29b   :  { %vm2319_vm2 = vcmp.eq.s32.totalorder %v6488_v48, 0  ;;  %v2477_v22 = vadd.f32 -0.4999988, %v2476_v49  ;;  %v2485_v62 = vmul.f32 %v2484_v42, %v6418_v57  ;;  %v2649_v6 = vmul.f32 %v2648_v54, %v6453_v60 }
 0x29c   :  { %v2472_v11 = vsel %vm6378_vm6, 0, %v2470_v17  ;;  %v2657_v56 = vadd.f32 -0.16666654, %v2656_v13  ;;  %v2803_v52 = vshrl.u32 %v2785_v28, %v2801_v18  ;;  %v2806_v58 = vadd.s32 127, %v2805_v30 }
 0x29d   :  { %v2148_v44 = vsel %vm2146_vm14, %v6459_v25, %v2147_v59  ;;  %v2314_v33 = vmul.f32 %v2313_v40, %v6332_v37  ;;  %v2872_v2 = vadd.f32 %v2871_v7, %v2868_v35  ;;  %v2875_v43 = vmul.f32 %v2874_v38, %v6226_v15 }
 0x29e   :  { %v2643_v0 = vsel %vm2520_vm12, %v2642_v41, %v6253_v19  ;;  %v2804_v5 = vor.u32 %v2803_v52, %v2802_v63  ;;  %v2807_v20 = vshll.u32 %v2806_v58, 23  ;;  %v2878_v29 = vstv %s6495_s10 }
 0x29f   :  { %vm2142_vm4 = vweird.f32 %v6814_v32  ;;  %vm2318_vm1 = vcmp.lt.s32.totalorder %v6488_v48, 2  ;;  %v2478_v25 = vmul.f32 %v2477_v22, %v6418_v57  ;;  %v2486_v37 = vadd.f32 1.0, %v2485_v62 }
 0x2a0   :  { %v2489_v55 = vadd.s32 3, %v2472_v11  ;;  %v2650_v23 = vadd.f32 -0.4999988, %v2649_v6  ;;  %v2323_v15 = vxor.u32 2147483648, %v2306_v16  ;;  %v2658_v3 = vmul.f32 %v2657_v56, %v6453_v60 }
 0x2a1   :  { %v2808_v59 = vor.u32 4788187, %v2807_v20  ;;  %v2811_v19 = vcvt.s32.f32 %v2804_v5  ;;  %vm2322_vm13 = vcmp.eq.s32.totalorder %v6488_v48, 2  ;;  %v2645_v47 = vsel %vm6403_vm11, 0, %v2643_v0 }
 0x2a2   :  { %v2876_v39 = vadd.f32 %v2875_v43, %v2872_v2  ;;  %v2879_v1 = vmul.f32 %v2878_v29, %v6232_v12  ;;  %v2152_v14 = vsel %vm2145_vm7, %v2148_v44, %v2151_v4  ;;  %v2320_v57 = vxor.u32 2147483648, %v2314_v33 }
 0x2a3   :  { %v2809_v21 = vand.u32 2147483647, %v2808_v59  ;;  %v2882_v26 = vstv %s6509_s11  ;;  %vm2315_vm10 = vweird.f32 %v6822_v31  ;;  %v2479_v40 = vadd.f32 1.0, %v2478_v25 }
 0x2a4   :  { %v2487_v49 = vmul.f32 %v2486_v37, %v6396_v36  ;;  %v2490_v42 = vand.u32 3, %v2489_v55  ;;  %v2651_v50 = vmul.f32 %v2650_v23, %v6453_v60  ;;  %v2324_v54 = vsel %vm2322_vm13, %v2323_v15, %v2314_v33 }
 0x2a5   :  { %v2659_v17 = vadd.f32 1.0, %v2658_v3  ;;  %v2662_v12 = vadd.s32 3, %v2645_v47  ;;  %v2812_v13 = vmul.f32 %v2811_v19, %v2809_v21  ;;  %vm2693_vm6 = vcmp.lt.s32.totalorder %v6163_v10, 0 }
 0x2a6   :  { %v2815_v53 = vsub.s32 4, %v6445_v9  ;;  %v2880_v4 = vadd.f32 %v2879_v1, %v2876_v39  ;;  %v2883_v28 = vmul.f32 %v2882_v26, %v6441_v8  ;;  %v2321_v41 = vsel %vm2319_vm2, %v2306_v16, %v2320_v57 }
 0x2a7   :  { %vm6550_vm12 = vcmp.le.f32.partialorder %v2691_v45, 0.7853982  ;;  %v2813_v60 = vxor.u32 2147483648, %v2812_v13  ;;  %v2886_v24 = vstv %s6525_s4  ;;  %vm2492_vm15 = vcmp.eq.s32.totalorder %v2490_v42, 0 }
 0x2a8   :  { %v2493_v35 = vxor.u32 2147483648, %v2487_v49  ;;  %v2496_v61 = vxor.u32 2147483648, %v2479_v40  ;;  %v2652_v7 = vadd.f32 1.0, %v2651_v50  ;;  %vm2495_vm11 = vcmp.eq.s32.totalorder %v2490_v42, 2 }
 0x2a9   :  { %v2660_v8 = vmul.f32 %v2659_v17, %v6430_v46  ;;  %v2663_v18 = vand.u32 3, %v2662_v12  ;;  %v2814_v63 = vsel %vm2693_vm6, %v2813_v60, %v2812_v13  ;;  %v2816_v45 = vsel %vm2693_vm6, %v2815_v53, %v6445_v9 }
 0x2aa   :  { %v2817_v30 = vsel %vm6550_vm12, %v6163_v10, %v2814_v63  ;;  %v2884_v38 = vadd.f32 %v2883_v28, %v2880_v4  ;;  %v2887_v16 = vmul.f32 %v2886_v24, %v6467_v51  ;;  %v2153_v22 = vsel %vm2142_vm4, nan, %v2152_v14 }
 0x2ab   :  { %v2325_v46 = vsel %vm2318_vm1, %v2321_v41, %v2324_v54  ;;  %v2819_v62 = vmul.f32 %v2817_v30, %v2817_v30  ;;  %v2890_v6 = vstv %s6538_s12  ;;  %vm2491_vm0 = vcmp.lt.s32.totalorder %v2490_v42, 2 }
 0x2ac   :  { %v2494_v9 = vsel %vm2492_vm15, %v2479_v40, %v2493_v35  ;;  %v2497_v11 = vsel %vm2495_vm11, %v2496_v61, %v2487_v49  ;;  %v2669_v56 = vxor.u32 2147483648, %v2652_v7  ;;  %v2666_v52 = vxor.u32 2147483648, %v2660_v8 }
 0x2ad   :  { %v2818_v51 = vsel %vm6550_vm12, 0, %v2816_v45  ;;  %v2820_v58 = vmul.f32 -0.001358992, %v2819_v62  ;;  %v2827_v32 = vmul.f32 -0.00019511016, %v2819_v62  ;;  %vm2665_vm8 = vcmp.eq.s32.totalorder %v2663_v18, 0 }
 0x2ae   :  { %vm2668_vm3 = vcmp.eq.s32.totalorder %v2663_v18, 2  ;;  %v2888_v48 = vadd.f32 %v2887_v16, %v2884_v38  ;;  %v2891_v44 = vmul.f32 %v2890_v6, %v2153_v22  ;;  %v2326_v33 = vsel %vm2315_vm10, nan, %v2325_v46 }
 0x2af   :  { %v2821_v2 = vadd.f32 0.041655596, %v2820_v58  ;;  %v2828_v43 = vadd.f32 0.008332121, %v2827_v32  ;;  %v2894_v0 = vstv %s6555_s13  ;;  %vm2488_vm9 = vweird.f32 %v5755_v34 }
 0x2b0   :  { %v2498_v5 = vsel %vm2491_vm0, %v2494_v9, %v2497_v11  ;;  %vm2664_vm14 = vcmp.lt.s32.totalorder %v2663_v18, 2  ;;  %v2835_v20 = vadd.s32 3, %v2818_v51  ;;  %v2667_v29 = vsel %vm2665_vm8, %v2652_v7, %v2666_v52 }
 0x2b1   :  { %v2670_v25 = vsel %vm2668_vm3, %v2669_v56, %v2660_v8  ;;  %v2822_v37 = vmul.f32 %v2821_v2, %v2819_v62  ;;  %v2829_v55 = vmul.f32 %v2828_v43, %v2819_v62  ;;  %v2892_v23 = vadd.f32 %v2891_v44, %v2888_v48 }
 0x2b2   :  { %v2895_v15 = vmul.f32 %v2894_v0, %v2326_v33  ;;  %v2499_v3 = vsel %vm2488_vm9, nan, %v2498_v5  ;;  %v2898_v19 = vstv %s6572_s14  ;;  %vm2661_vm7 = vweird.f32 %v5963_v27 }
 0x2b3   :  { %v2823_v31 = vadd.f32 -0.4999988, %v2822_v37  ;;  %v2830_v59 = vadd.f32 -0.16666654, %v2829_v55  ;;  %v2671_v47 = vsel %vm2664_vm14, %v2667_v29, %v2670_v25  ;;  %v2836_v39 = vand.u32 3, %v2835_v20 }
 0x2b4   :  { %v2896_v14 = vadd.f32 %v2895_v15, %v2892_v23  ;;  %v2899_v57 = vmul.f32 %v2898_v19, %v2499_v3  ;;  %v2672_v21 = vsel %vm2661_vm7, nan, %v2671_v47  ;;  %v2902_v49 = vstv %s6577_s15 }
 0x2b5   :  { %v2824_v34 = vmul.f32 %v2823_v31, %v2819_v62  ;;  %v2831_v1 = vmul.f32 %v2830_v59, %v2819_v62  ;;  %vm2841_vm5 = vcmp.eq.s32.totalorder %v2836_v39, 2  ;;  %vm2838_vm2 = vcmp.eq.s32.totalorder %v2836_v39, 0 }
 0x2b6   :  { %v2900_v54 = vadd.f32 %v2899_v57, %v2896_v14  ;;  %v2903_v17 = vmul.f32 %v2902_v49, %v2672_v21  ;;  %vm2837_vm4 = vcmp.lt.s32.totalorder %v2836_v39, 2  ;;  %vm2834_vm1 = vweird.f32 %v6163_v10 }
 0x2b7   :  { %v2825_v26 = vadd.f32 1.0, %v2824_v34  ;;  %v2832_v40 = vadd.f32 1.0, %v2831_v1  ;;  %v2906_v53 = vstv %s3072_s16  ;;  %v2910_v60 = vstv %s6597_s3 }
 0x2b8   :  { %v2904_v28 = vadd.f32 %v2903_v17, %v2900_v54 }
 0x2b9   :  { %v2833_v42 = vmul.f32 %v2832_v40, %v2817_v30  ;;  %v2842_v50 = vxor.u32 2147483648, %v2825_v26 }
 0x2bb   :  { %v2839_v12 = vxor.u32 2147483648, %v2833_v42  ;;  %v2843_v27 = vsel %vm2841_vm5, %v2842_v50, %v2833_v42 }
 0x2bd   :  { %v2840_v13 = vsel %vm2838_vm2, %v2825_v26, %v2839_v12 }
 0x2be   :  { %v2844_v4 = vsel %vm2837_vm4, %v2840_v13, %v2843_v27 }
 0x2bf   :  { %v2845_v41 = vsel %vm2834_vm1, nan, %v2844_v4 }
 0x2c0   :  { %v2907_v36 = vmul.f32 %v2906_v53, %v2845_v41 }
 0x2c2   :  { %v2908_v24 = vadd.f32 %v2907_v36, %v2904_v28 }
 0x2c4   :  { %v2911_v35 = vadd.f32 %v2910_v60, %v2908_v24 }
 0x2c6   :  { %2912 = vst [vmem:[#allocation11] sm:$0xf] %v2911_v35 }
 0x2c7   :  { %2923 = dma.vmem_to_hbm [thread:$0]  %s2919_s20, 64, %s2921_s23, [#allocation5]  }
 0x2c8   :  { %3189 = dma.done.wait [#allocation5], 64  }
 0x2c9   :  { %3190 = vsyncadd [#allocation5], 4294967232 }
 0x2ca   :  { %2928 = vsyncpa [#allocation4], 1 }
 0x2cb   :  { %2929 = vsyncpa [#allocation5], 1 }
 0x2cc   :  { %2930 = vsyncpa [#allocation6], 1 }
 0x2cd   :  { %2931 = vsyncpa [#allocation8], 1 }

</bundles_post_ra>
